<compile_context>
chip_gen: v7x
topology: tpu7x:2x2x1
jax: 0.10.0
libtpu: 0.0.40
codegen_flags: <defaults>
</compile_context>

<pallas_src>
import functools

import jax
import jax.numpy as jnp
from jax.experimental import pallas as pl
from jax.experimental.pallas import tpu as pltpu


def _cdiv(a, b):
    return (a + b - 1) // b


def _images_per_step(batch):
    # Keep grid length >= 2 when possible (v7x megacore) while folding several
    # images into each step's matmul M dimension for larger batches.
    if batch <= 2:
        return 1
    if batch <= 8:
        return 2
    return 4


# ---------------------------------------------------------------------------
# In-kernel building block: Conv2d(3x3, stride 1, pad 1) + bias + ReLU +
# MaxPool2d(2) on a stack of NB images.  Uses only ops that lower cleanly on
# TPU: static slices, concatenate, one MXU matmul, f32 maxima.
# ---------------------------------------------------------------------------
def _conv3x3_relu_pool(ximg, w_mat, bias, *, NB, H, W, Cin, Cout):
    """ximg : (NB*H*W, Cin) f32, pixels in (image, h, w) row-major order.
       w_mat: (9*Cin, Cout) bf16, row index (kh*3 + kw)*Cin + cin.
       bias : (1, Cout) f32.
       Returns (NB*(H//2)*(W//2), Cout) f32 pooled activations, same ordering.
    """
    wp2 = W + 2                        # padded row length
    P = (H + 2) * wp2                  # rows of one zero-padded flattened image
    margin = wp2 + 1                   # extra zero rows so every tap is in range
    Hp, Wp = H // 2, W // 2

    # ---- zero-padded, flattened image stack, built entirely in VMEM --------
    pieces = []
    zero_rows = margin
    for n in range(NB):
        zero_rows += wp2 + 1
        for h in range(H):
            pieces.append(jnp.zeros((zero_rows, Cin), jnp.float32))
            base = (n * H + h) * W
            pieces.append(ximg[base:base + W, :])
            zero_rows = 2 if h + 1 < H else wp2 + 1
    pieces.append(jnp.zeros((zero_rows + margin, Cin), jnp.float32))
    xflat = jnp.concatenate(pieces, axis=0)          # (NB*P + 2*margin, Cin)

    # ---- 3x3 conv: ONE MXU matmul over nine lane-concatenated taps ---------
    taps = []
    for di in range(3):
        for dj in range(3):
            start = margin + (di - 1) * wp2 + (dj - 1)
            taps.append(xflat[start:start + NB * P, :])
    lhs = jnp.concatenate(taps, axis=1)              # (NB*P, 9*Cin) f32
    acc = jnp.dot(lhs.astype(jnp.bfloat16), w_mat,
                  preferred_element_type=jnp.float32)
    acc = jnp.maximum(acc + bias, 0.0)               # bias + ReLU, f32

    # ---- 2x2 max pool: shifted maxima (VPU, f32) ... -----------------------
    m1 = jnp.maximum(acc[:NB * P - 1, :], acc[1:, :])          # w-neighbour max
    L = NB * P - 1 - wp2
    m2 = jnp.maximum(m1[:L, :], m1[wp2:wp2 + L, :])            # h-neighbour max
    # ... then gather the kept pixels with static single-row slices
    # (VMEM-local copies).  TODO(synk): for large images, switch this gather to
    # strided reads from a VMEM scratch (ref[pl.ds(start, Wp, stride=2)]) to
    # cut the per-pixel op count.
    rows = []
    for n in range(NB):
        for hp in range(Hp):
            for wp in range(Wp):
                r = n * P + (2 * hp + 1) * wp2 + (2 * wp + 1)
                rows.append(m2[r:r + 1, :])
    return jnp.concatenate(rows, axis=0)             # (NB*Hp*Wp, Cout) f32


# ---------------------------------------------------------------------------
# Fully fused forward kernel (one grid step = NB images through the whole net)
# ---------------------------------------------------------------------------
def _cnn_simclr_kernel(x_ref, w1_ref, b1_ref, w2_ref, b2_ref,
                       fcw_ref, fcb_ref, p1w_ref, p1b_ref, p2w_ref, p2b_ref,
                       out_ref, *, NB, H, W, Cin, C1, C2, validation):
    # ----- encoder: two fused conv + ReLU + pool blocks ---------------------
    x = x_ref[...]                                              # (NB*H*W, Cin) f32
    pooled1 = _conv3x3_relu_pool(
        x, w1_ref[...], b1_ref[...],
        NB=NB, H=H, W=W, Cin=Cin, Cout=C1)                      # (NB*(H/2)*(W/2), C1)
    pooled2 = _conv3x3_relu_pool(
        pooled1, w2_ref[...], b2_ref[...],
        NB=NB, H=H // 2, W=W // 2, Cin=C1, Cout=C2)             # (NB*(H/4)*(W/4), C2)

    # ----- flatten per image in (h, w, c) order (lane-concat of pixel rows) -
    S2 = (H // 4) * (W // 4)
    img_vecs = []
    for n in range(NB):
        pix = [pooled2[n * S2 + s:n * S2 + s + 1, :] for s in range(S2)]
        img_vecs.append(jnp.concatenate(pix, axis=1))           # (1, S2*C2) f32
    flat = jnp.concatenate(img_vecs, axis=0)                    # (NB, F) f32

    # ----- fc (+ReLU) encoding, then projection head ------------------------
    enc = jnp.dot(flat.astype(jnp.bfloat16), fcw_ref[...],
                  preferred_element_type=jnp.float32)
    enc = jnp.maximum(enc + fcb_ref[...], 0.0)                  # (NB, D) f32
    if validation:
        out_ref[0] = enc.astype(out_ref.dtype)
    else:
        p = jnp.dot(enc.astype(jnp.bfloat16), p1w_ref[...],
                    preferred_element_type=jnp.float32)
        p = jnp.maximum(p + p1b_ref[...], 0.0)
        p = jnp.dot(p.astype(jnp.bfloat16), p2w_ref[...],
                    preferred_element_type=jnp.float32)
        out_ref[0] = (p + p2b_ref[...]).astype(out_ref.dtype)


def cnn_simclr_forward(params, x_nchw, validation=False):
    """Pallas forward pass for CNN_SimCLR.

    x_nchw: (B, Cin, H, W) float32.  Returns the (B, out_dim) encoding when
    validation=True, otherwise the (B, 128) projection (matching the module).
    """
    B, Cin, H, W = x_nchw.shape
    assert H % 4 == 0 and W % 4 == 0, "spatial size must be divisible by 4"

    C1 = params["conv1_w"].shape[0]
    C2 = params["conv2_w"].shape[0]
    D = params["fc_w"].shape[1]
    Dp = params["proj2_w"].shape[1]
    F = (H // 4) * (W // 4) * C2
    assert params["fc_w"].shape[0] == F

    NB = _images_per_step(B)
    steps = _cdiv(B, NB)
    Bpad = steps * NB

    # Single layout change at the network input: NCHW -> pixel-major rows with
    # channels on lanes.  (Kept f32: the input is tiny and all in-kernel
    # assembly / pooling math stays f32; MXU operands are cast to bf16 in the
    # kernel right at each dot.)
    x = jnp.transpose(x_nchw, (0, 2, 3, 1)).reshape(B * H * W, Cin)
    x = x.astype(jnp.float32)
    if Bpad != B:
        x = jnp.pad(x, ((0, (Bpad - B) * H * W), (0, 0)))

    # Conv weights -> (9*Cin, Cout) with row index (kh*3 + kw)*Cin + cin.
    def conv_mat(w):
        co, ci = w.shape[0], w.shape[1]
        return jnp.transpose(w, (2, 3, 1, 0)).reshape(9 * ci, co).astype(jnp.bfloat16)

    w1 = conv_mat(params["conv1_w"])
    b1 = params["conv1_b"].reshape(1, C1).astype(jnp.float32)
    w2 = conv_mat(params["conv2_w"])
    b2 = params["conv2_b"].reshape(1, C2).astype(jnp.float32)
    fcw = params["fc_w"].astype(jnp.bfloat16)
    fcb = params["fc_b"].reshape(1, D).astype(jnp.float32)
    p1w = params["proj1_w"].astype(jnp.bfloat16)
    p1b = params["proj1_b"].reshape(1, D).astype(jnp.float32)
    p2w = params["proj2_w"].astype(jnp.bfloat16)
    p2b = params["proj2_b"].reshape(1, Dp).astype(jnp.float32)

    out_dim = D if validation else Dp
    kernel = functools.partial(
        _cnn_simclr_kernel, NB=NB, H=H, W=W, Cin=Cin, C1=C1, C2=C2,
        validation=validation)

    # Constant-index weight blocks stay VMEM-resident across grid steps.
    # TODO(synk): add pipeline_mode=pl.Buffered(1) on the weight specs if the
    # weight footprint ever matters on v7x (irrelevant at ~0.5 MB of weights).
    def wspec(shape):
        return pl.BlockSpec(shape, lambda i: (0, 0))

    out = pl.pallas_call(
        kernel,
        out_shape=jax.ShapeDtypeStruct((steps, NB, out_dim), jnp.float32),
        grid=(steps,),
        in_specs=[
            pl.BlockSpec((NB * H * W, Cin), lambda i: (i, 0)),
            wspec((9 * Cin, C1)), wspec((1, C1)),
            wspec((9 * C1, C2)), wspec((1, C2)),
            wspec((F, D)), wspec((1, D)),
            wspec((D, D)), wspec((1, D)),
            wspec((D, Dp)), wspec((1, Dp)),
        ],
        out_specs=pl.BlockSpec((1, NB, out_dim), lambda i: (i, 0, 0)),
        compiler_params=pltpu.CompilerParams(
            dimension_semantics=("parallel",),
            vmem_limit_bytes=32 * 1024 * 1024),
    )(x, w1, b1, w2, b2, fcw, fcb, p1w, p1b, p2w, p2b)

    return out.reshape(Bpad, out_dim)[:B]


# ---------------------------------------------------------------------------
# Parameter init (deterministic, fan-in scaled), matching the assumed encoder
# ---------------------------------------------------------------------------
def init_params(key, n_channels=4, tile_size=16, out_dim=256):
    def u(k, shape, fan_in):
        bound = 1.0 / jnp.sqrt(jnp.float32(fan_in))
        return jax.random.uniform(k, shape, jnp.float32, -bound, bound)

    ks = jax.random.split(key, 10)
    flat = 32 * (tile_size // 4) ** 2
    return {
        # encoder (assumed SimpleCNN)
        "conv1_w": u(ks[0], (16, n_channels, 3, 3), n_channels * 9),
        "conv1_b": u(ks[1], (16,), n_channels * 9),
        "conv2_w": u(ks[2], (32, 16, 3, 3), 16 * 9),
        "conv2_b": u(ks[3], (32,), 16 * 9),
        # fc consumes the NHWC-flattened (h, w, c) feature order
        "fc_w": u(ks[4], (flat, out_dim), flat),
        "fc_b": u(ks[5], (out_dim,), flat),
        # projection head: Linear(out_dim,out_dim) -> ReLU -> Linear(out_dim,128)
        "proj1_w": u(ks[6], (out_dim, out_dim), out_dim),
        "proj1_b": u(ks[7], (out_dim,), out_dim),
        "proj2_w": u(ks[8], (out_dim, 128), out_dim),
        "proj2_b": u(ks[9], (128,), out_dim),
    }


# ---------------------------------------------------------------------------
# Pure-JAX reference (loose numerical sanity check; bf16-MXU tolerance)
# ---------------------------------------------------------------------------
def _reference_forward(params, x_nchw, validation=False):
    x = jnp.transpose(x_nchw, (0, 2, 3, 1))

    def conv_block(h, w, b):
        y = jax.lax.conv_general_dilated(
            h, jnp.transpose(w, (2, 3, 1, 0)), (1, 1), "SAME",
            dimension_numbers=("NHWC", "HWIO", "NHWC"))
        y = jax.nn.relu(y + b)
        B, H, W, C = y.shape
        return y.reshape(B, H // 2, 2, W // 2, 2, C).max(axis=(2, 4))

    h = conv_block(x, params["conv1_w"], params["conv1_b"])
    h = conv_block(h, params["conv2_w"], params["conv2_b"])
    h = h.reshape(x.shape[0], -1)
    enc = jax.nn.relu(h @ params["fc_w"] + params["fc_b"])
    p = jax.nn.relu(enc @ params["proj1_w"] + params["proj1_b"])
    proj = p @ params["proj2_w"] + params["proj2_b"]
    return enc if validation else proj


if __name__ == "__main__":
    key = jax.random.PRNGKey(0)
    k_param, k_x = jax.random.split(key)

    batch, n_channels, tile_size, out_dim = 2, 4, 16, 256
    params = init_params(k_param, n_channels=n_channels,
                         tile_size=tile_size, out_dim=out_dim)
    x = jax.random.normal(k_x, (batch, n_channels, tile_size, tile_size),
                          dtype=jnp.float32)

    fwd = jax.jit(cnn_simclr_forward, static_argnames=("validation",))

    proj = jax.block_until_ready(fwd(params, x, validation=False))
    assert proj.shape == (batch, 128), proj.shape
    assert proj.dtype == jnp.float32

    enc = jax.block_until_ready(fwd(params, x, validation=True))
    assert enc.shape == (batch, out_dim), enc.shape
    assert enc.dtype == jnp.float32

    # Loose sanity check against a plain-JAX reference (bf16 MXU tolerance).
    ref_proj = _reference_forward(params, x, validation=False)
    ref_enc = _reference_forward(params, x, validation=True)
    assert jnp.allclose(proj, ref_proj, rtol=5e-2, atol=5e-2)
    assert jnp.allclose(enc, ref_enc, rtol=5e-2, atol=5e-2)

    print("KERNEL_OK")
</pallas_src>

<mosaic_0001>
module attributes {stable_mosaic.version = 11 : i64} {
  func.func @_cnn_simclr_kernel(%arg0: i32, %arg1: memref<256x4xf32, #tpu.memory_space<vmem>>, %arg2: memref<36x16xbf16, #tpu.memory_space<vmem>>, %arg3: memref<1x16xf32, #tpu.memory_space<vmem>>, %arg4: memref<144x32xbf16, #tpu.memory_space<vmem>>, %arg5: memref<1x32xf32, #tpu.memory_space<vmem>>, %arg6: memref<512x256xbf16, #tpu.memory_space<vmem>>, %arg7: memref<1x256xf32, #tpu.memory_space<vmem>>, %arg8: memref<256x256xbf16, #tpu.memory_space<vmem>>, %arg9: memref<1x256xf32, #tpu.memory_space<vmem>>, %arg10: memref<256x128xbf16, #tpu.memory_space<vmem>>, %arg11: memref<1x128xf32, #tpu.memory_space<vmem>>, %arg12: memref<1x1x128xf32, #tpu.memory_space<vmem>>) attributes {dimension_semantics = [#tpu.dimension_semantics<parallel>], iteration_bounds = array<i64: 2>, scalar_prefetch = 0 : i64, scratch_operands = 0 : i64, tpu.core_type = #tpu.core_type<tc>, window_params = [{transform_indices = @transform_0, window_bounds = array<i64: 256, 4>}, {pipeline_mode = #tpu.pipeline_mode<synchronous>, transform_indices = @transform_1, window_bounds = array<i64: 36, 16>}, {pipeline_mode = #tpu.pipeline_mode<synchronous>, transform_indices = @transform_2, window_bounds = array<i64: 1, 16>}, {pipeline_mode = #tpu.pipeline_mode<synchronous>, transform_indices = @transform_3, window_bounds = array<i64: 144, 32>}, {pipeline_mode = #tpu.pipeline_mode<synchronous>, transform_indices = @transform_4, window_bounds = array<i64: 1, 32>}, {pipeline_mode = #tpu.pipeline_mode<synchronous>, transform_indices = @transform_5, window_bounds = array<i64: 512, 256>}, {pipeline_mode = #tpu.pipeline_mode<synchronous>, transform_indices = @transform_6, window_bounds = array<i64: 1, 256>}, {pipeline_mode = #tpu.pipeline_mode<synchronous>, transform_indices = @transform_7, window_bounds = array<i64: 256, 256>}, {pipeline_mode = #tpu.pipeline_mode<synchronous>, transform_indices = @transform_8, window_bounds = array<i64: 1, 256>}, {pipeline_mode = #tpu.pipeline_mode<synchronous>, transform_indices = @transform_9, window_bounds = array<i64: 256, 128>}, {pipeline_mode = #tpu.pipeline_mode<synchronous>, transform_indices = @transform_10, window_bounds = array<i64: 1, 128>}, {transform_indices = @transform_11, window_bounds = array<i64: 1, 1, 128>}]} {
    %c0 = arith.constant 0 : index
    %c0_0 = arith.constant 0 : index
    %0 = vector.load %arg1[%c0, %c0_0] : memref<256x4xf32, #tpu.memory_space<vmem>>, vector<256x4xf32>
    %c0_1 = arith.constant 0 : index
    %c0_2 = arith.constant 0 : index
    %1 = vector.load %arg2[%c0_1, %c0_2] : memref<36x16xbf16, #tpu.memory_space<vmem>>, vector<36x16xbf16>
    %c0_3 = arith.constant 0 : index
    %c0_4 = arith.constant 0 : index
    %2 = vector.load %arg3[%c0_3, %c0_4] : memref<1x16xf32, #tpu.memory_space<vmem>>, vector<1x16xf32>
    %cst = arith.constant 0.000000e+00 : f32
    %3 = vector.broadcast %cst : f32 to vector<38x4xf32>
    %4 = vector.extract_strided_slice %0 {offsets = [0, 0], sizes = [16, 4], strides = [1, 1]} : vector<256x4xf32> to vector<16x4xf32>
    %cst_5 = arith.constant 0.000000e+00 : f32
    %5 = vector.broadcast %cst_5 : f32 to vector<2x4xf32>
    %6 = vector.extract_strided_slice %0 {offsets = [16, 0], sizes = [16, 4], strides = [1, 1]} : vector<256x4xf32> to vector<16x4xf32>
    %cst_6 = arith.constant 0.000000e+00 : f32
    %7 = vector.broadcast %cst_6 : f32 to vector<2x4xf32>
    %8 = vector.extract_strided_slice %0 {offsets = [32, 0], sizes = [16, 4], strides = [1, 1]} : vector<256x4xf32> to vector<16x4xf32>
    %cst_7 = arith.constant 0.000000e+00 : f32
    %9 = vector.broadcast %cst_7 : f32 to vector<2x4xf32>
    %10 = vector.extract_strided_slice %0 {offsets = [48, 0], sizes = [16, 4], strides = [1, 1]} : vector<256x4xf32> to vector<16x4xf32>
    %cst_8 = arith.constant 0.000000e+00 : f32
    %11 = vector.broadcast %cst_8 : f32 to vector<2x4xf32>
    %12 = vector.extract_strided_slice %0 {offsets = [64, 0], sizes = [16, 4], strides = [1, 1]} : vector<256x4xf32> to vector<16x4xf32>
    %cst_9 = arith.constant 0.000000e+00 : f32
    %13 = vector.broadcast %cst_9 : f32 to vector<2x4xf32>
    %14 = vector.extract_strided_slice %0 {offsets = [80, 0], sizes = [16, 4], strides = [1, 1]} : vector<256x4xf32> to vector<16x4xf32>
    %cst_10 = arith.constant 0.000000e+00 : f32
    %15 = vector.broadcast %cst_10 : f32 to vector<2x4xf32>
    %16 = vector.extract_strided_slice %0 {offsets = [96, 0], sizes = [16, 4], strides = [1, 1]} : vector<256x4xf32> to vector<16x4xf32>
    %cst_11 = arith.constant 0.000000e+00 : f32
    %17 = vector.broadcast %cst_11 : f32 to vector<2x4xf32>
    %18 = vector.extract_strided_slice %0 {offsets = [112, 0], sizes = [16, 4], strides = [1, 1]} : vector<256x4xf32> to vector<16x4xf32>
    %cst_12 = arith.constant 0.000000e+00 : f32
    %19 = vector.broadcast %cst_12 : f32 to vector<2x4xf32>
    %20 = vector.extract_strided_slice %0 {offsets = [128, 0], sizes = [16, 4], strides = [1, 1]} : vector<256x4xf32> to vector<16x4xf32>
    %cst_13 = arith.constant 0.000000e+00 : f32
    %21 = vector.broadcast %cst_13 : f32 to vector<2x4xf32>
    %22 = vector.extract_strided_slice %0 {offsets = [144, 0], sizes = [16, 4], strides = [1, 1]} : vector<256x4xf32> to vector<16x4xf32>
    %cst_14 = arith.constant 0.000000e+00 : f32
    %23 = vector.broadcast %cst_14 : f32 to vector<2x4xf32>
    %24 = vector.extract_strided_slice %0 {offsets = [160, 0], sizes = [16, 4], strides = [1, 1]} : vector<256x4xf32> to vector<16x4xf32>
    %cst_15 = arith.constant 0.000000e+00 : f32
    %25 = vector.broadcast %cst_15 : f32 to vector<2x4xf32>
    %26 = vector.extract_strided_slice %0 {offsets = [176, 0], sizes = [16, 4], strides = [1, 1]} : vector<256x4xf32> to vector<16x4xf32>
    %cst_16 = arith.constant 0.000000e+00 : f32
    %27 = vector.broadcast %cst_16 : f32 to vector<2x4xf32>
    %28 = vector.extract_strided_slice %0 {offsets = [192, 0], sizes = [16, 4], strides = [1, 1]} : vector<256x4xf32> to vector<16x4xf32>
    %cst_17 = arith.constant 0.000000e+00 : f32
    %29 = vector.broadcast %cst_17 : f32 to vector<2x4xf32>
    %30 = vector.extract_strided_slice %0 {offsets = [208, 0], sizes = [16, 4], strides = [1, 1]} : vector<256x4xf32> to vector<16x4xf32>
    %cst_18 = arith.constant 0.000000e+00 : f32
    %31 = vector.broadcast %cst_18 : f32 to vector<2x4xf32>
    %32 = vector.extract_strided_slice %0 {offsets = [224, 0], sizes = [16, 4], strides = [1, 1]} : vector<256x4xf32> to vector<16x4xf32>
    %cst_19 = arith.constant 0.000000e+00 : f32
    %33 = vector.broadcast %cst_19 : f32 to vector<2x4xf32>
    %34 = vector.extract_strided_slice %0 {offsets = [240, 0], sizes = [16, 4], strides = [1, 1]} : vector<256x4xf32> to vector<16x4xf32>
    %cst_20 = arith.constant 0.000000e+00 : f32
    %35 = vector.broadcast %cst_20 : f32 to vector<38x4xf32>
    %36 = tpu.concatenate %3, %4, %5, %6, %7, %8, %9, %10, %11, %12, %13, %14, %15, %16, %17, %18 in 0 : vector<38x4xf32>, vector<16x4xf32>, vector<2x4xf32>, vector<16x4xf32>, vector<2x4xf32>, vector<16x4xf32>, vector<2x4xf32>, vector<16x4xf32>, vector<2x4xf32>, vector<16x4xf32>, vector<2x4xf32>, vector<16x4xf32>, vector<2x4xf32>, vector<16x4xf32>, vector<2x4xf32>, vector<16x4xf32> -> vector<180x4xf32>
    %37 = tpu.concatenate %19, %20, %21, %22, %23, %24, %25, %26, %27, %28, %29, %30, %31, %32, %33, %34 in 0 : vector<2x4xf32>, vector<16x4xf32>, vector<2x4xf32>, vector<16x4xf32>, vector<2x4xf32>, vector<16x4xf32>, vector<2x4xf32>, vector<16x4xf32>, vector<2x4xf32>, vector<16x4xf32>, vector<2x4xf32>, vector<16x4xf32>, vector<2x4xf32>, vector<16x4xf32>, vector<2x4xf32>, vector<16x4xf32> -> vector<144x4xf32>
    %38 = tpu.concatenate %36, %37, %35 in 0 : vector<180x4xf32>, vector<144x4xf32>, vector<38x4xf32> -> vector<362x4xf32>
    %39 = vector.extract_strided_slice %38 {offsets = [0, 0], sizes = [324, 4], strides = [1, 1]} : vector<362x4xf32> to vector<324x4xf32>
    %40 = vector.extract_strided_slice %38 {offsets = [1, 0], sizes = [324, 4], strides = [1, 1]} : vector<362x4xf32> to vector<324x4xf32>
    %41 = vector.extract_strided_slice %38 {offsets = [2, 0], sizes = [324, 4], strides = [1, 1]} : vector<362x4xf32> to vector<324x4xf32>
    %42 = vector.extract_strided_slice %38 {offsets = [18, 0], sizes = [324, 4], strides = [1, 1]} : vector<362x4xf32> to vector<324x4xf32>
    %43 = vector.extract_strided_slice %38 {offsets = [19, 0], sizes = [324, 4], strides = [1, 1]} : vector<362x4xf32> to vector<324x4xf32>
    %44 = vector.extract_strided_slice %38 {offsets = [20, 0], sizes = [324, 4], strides = [1, 1]} : vector<362x4xf32> to vector<324x4xf32>
    %45 = vector.extract_strided_slice %38 {offsets = [36, 0], sizes = [324, 4], strides = [1, 1]} : vector<362x4xf32> to vector<324x4xf32>
    %46 = vector.extract_strided_slice %38 {offsets = [37, 0], sizes = [324, 4], strides = [1, 1]} : vector<362x4xf32> to vector<324x4xf32>
    %47 = vector.extract_strided_slice %38 {offsets = [38, 0], sizes = [324, 4], strides = [1, 1]} : vector<362x4xf32> to vector<324x4xf32>
    %48 = tpu.concatenate %39, %40, %41, %42, %43, %44, %45, %46, %47 in 1 : vector<324x4xf32>, vector<324x4xf32>, vector<324x4xf32>, vector<324x4xf32>, vector<324x4xf32>, vector<324x4xf32>, vector<324x4xf32>, vector<324x4xf32>, vector<324x4xf32> -> vector<324x36xf32>
    %49 = arith.truncf %48 : vector<324x36xf32> to vector<324x36xbf16>
    %cst_21 = arith.constant dense<0.000000e+00> : vector<324x16xf32>
    %50 = tpu.matmul %49, %1, %cst_21 {dimension_numbers = #tpu.dot_dimension_numbers<[1], [0], [0], [1], [0, 0, 1, 1], [], []>} : vector<324x36xbf16>, vector<36x16xbf16>, vector<324x16xf32> -> vector<324x16xf32>
    %51 = vector.broadcast %2 : vector<1x16xf32> to vector<324x16xf32>
    %52 = arith.addf %50, %51 : vector<324x16xf32>
    %cst_22 = arith.constant 0.000000e+00 : f32
    %53 = vector.broadcast %cst_22 : f32 to vector<324x16xf32>
    %54 = arith.maximumf %52, %53 : vector<324x16xf32>
    %55 = vector.extract_strided_slice %54 {offsets = [0, 0], sizes = [323, 16], strides = [1, 1]} : vector<324x16xf32> to vector<323x16xf32>
    %56 = vector.extract_strided_slice %54 {offsets = [1, 0], sizes = [323, 16], strides = [1, 1]} : vector<324x16xf32> to vector<323x16xf32>
    %57 = arith.maximumf %55, %56 : vector<323x16xf32>
    %58 = vector.extract_strided_slice %57 {offsets = [0, 0], sizes = [305, 16], strides = [1, 1]} : vector<323x16xf32> to vector<305x16xf32>
    %59 = vector.extract_strided_slice %57 {offsets = [18, 0], sizes = [305, 16], strides = [1, 1]} : vector<323x16xf32> to vector<305x16xf32>
    %60 = arith.maximumf %58, %59 : vector<305x16xf32>
    %61 = vector.extract_strided_slice %60 {offsets = [19, 0], sizes = [1, 16], strides = [1, 1]} : vector<305x16xf32> to vector<1x16xf32>
    %62 = vector.extract_strided_slice %60 {offsets = [21, 0], sizes = [1, 16], strides = [1, 1]} : vector<305x16xf32> to vector<1x16xf32>
    %63 = vector.extract_strided_slice %60 {offsets = [23, 0], sizes = [1, 16], strides = [1, 1]} : vector<305x16xf32> to vector<1x16xf32>
    %64 = vector.extract_strided_slice %60 {offsets = [25, 0], sizes = [1, 16], strides = [1, 1]} : vector<305x16xf32> to vector<1x16xf32>
    %65 = vector.extract_strided_slice %60 {offsets = [27, 0], sizes = [1, 16], strides = [1, 1]} : vector<305x16xf32> to vector<1x16xf32>
    %66 = vector.extract_strided_slice %60 {offsets = [29, 0], sizes = [1, 16], strides = [1, 1]} : vector<305x16xf32> to vector<1x16xf32>
    %67 = vector.extract_strided_slice %60 {offsets = [31, 0], sizes = [1, 16], strides = [1, 1]} : vector<305x16xf32> to vector<1x16xf32>
    %68 = vector.extract_strided_slice %60 {offsets = [33, 0], sizes = [1, 16], strides = [1, 1]} : vector<305x16xf32> to vector<1x16xf32>
    %69 = vector.extract_strided_slice %60 {offsets = [55, 0], sizes = [1, 16], strides = [1, 1]} : vector<305x16xf32> to vector<1x16xf32>
    %70 = vector.extract_strided_slice %60 {offsets = [57, 0], sizes = [1, 16], strides = [1, 1]} : vector<305x16xf32> to vector<1x16xf32>
    %71 = vector.extract_strided_slice %60 {offsets = [59, 0], sizes = [1, 16], strides = [1, 1]} : vector<305x16xf32> to vector<1x16xf32>
    %72 = vector.extract_strided_slice %60 {offsets = [61, 0], sizes = [1, 16], strides = [1, 1]} : vector<305x16xf32> to vector<1x16xf32>
    %73 = vector.extract_strided_slice %60 {offsets = [63, 0], sizes = [1, 16], strides = [1, 1]} : vector<305x16xf32> to vector<1x16xf32>
    %74 = vector.extract_strided_slice %60 {offsets = [65, 0], sizes = [1, 16], strides = [1, 1]} : vector<305x16xf32> to vector<1x16xf32>
    %75 = vector.extract_strided_slice %60 {offsets = [67, 0], sizes = [1, 16], strides = [1, 1]} : vector<305x16xf32> to vector<1x16xf32>
    %76 = vector.extract_strided_slice %60 {offsets = [69, 0], sizes = [1, 16], strides = [1, 1]} : vector<305x16xf32> to vector<1x16xf32>
    %77 = vector.extract_strided_slice %60 {offsets = [91, 0], sizes = [1, 16], strides = [1, 1]} : vector<305x16xf32> to vector<1x16xf32>
    %78 = vector.extract_strided_slice %60 {offsets = [93, 0], sizes = [1, 16], strides = [1, 1]} : vector<305x16xf32> to vector<1x16xf32>
    %79 = vector.extract_strided_slice %60 {offsets = [95, 0], sizes = [1, 16], strides = [1, 1]} : vector<305x16xf32> to vector<1x16xf32>
    %80 = vector.extract_strided_slice %60 {offsets = [97, 0], sizes = [1, 16], strides = [1, 1]} : vector<305x16xf32> to vector<1x16xf32>
    %81 = vector.extract_strided_slice %60 {offsets = [99, 0], sizes = [1, 16], strides = [1, 1]} : vector<305x16xf32> to vector<1x16xf32>
    %82 = vector.extract_strided_slice %60 {offsets = [101, 0], sizes = [1, 16], strides = [1, 1]} : vector<305x16xf32> to vector<1x16xf32>
    %83 = vector.extract_strided_slice %60 {offsets = [103, 0], sizes = [1, 16], strides = [1, 1]} : vector<305x16xf32> to vector<1x16xf32>
    %84 = vector.extract_strided_slice %60 {offsets = [105, 0], sizes = [1, 16], strides = [1, 1]} : vector<305x16xf32> to vector<1x16xf32>
    %85 = vector.extract_strided_slice %60 {offsets = [127, 0], sizes = [1, 16], strides = [1, 1]} : vector<305x16xf32> to vector<1x16xf32>
    %86 = vector.extract_strided_slice %60 {offsets = [129, 0], sizes = [1, 16], strides = [1, 1]} : vector<305x16xf32> to vector<1x16xf32>
    %87 = vector.extract_strided_slice %60 {offsets = [131, 0], sizes = [1, 16], strides = [1, 1]} : vector<305x16xf32> to vector<1x16xf32>
    %88 = vector.extract_strided_slice %60 {offsets = [133, 0], sizes = [1, 16], strides = [1, 1]} : vector<305x16xf32> to vector<1x16xf32>
    %89 = vector.extract_strided_slice %60 {offsets = [135, 0], sizes = [1, 16], strides = [1, 1]} : vector<305x16xf32> to vector<1x16xf32>
    %90 = vector.extract_strided_slice %60 {offsets = [137, 0], sizes = [1, 16], strides = [1, 1]} : vector<305x16xf32> to vector<1x16xf32>
    %91 = vector.extract_strided_slice %60 {offsets = [139, 0], sizes = [1, 16], strides = [1, 1]} : vector<305x16xf32> to vector<1x16xf32>
    %92 = vector.extract_strided_slice %60 {offsets = [141, 0], sizes = [1, 16], strides = [1, 1]} : vector<305x16xf32> to vector<1x16xf32>
    %93 = vector.extract_strided_slice %60 {offsets = [163, 0], sizes = [1, 16], strides = [1, 1]} : vector<305x16xf32> to vector<1x16xf32>
    %94 = vector.extract_strided_slice %60 {offsets = [165, 0], sizes = [1, 16], strides = [1, 1]} : vector<305x16xf32> to vector<1x16xf32>
    %95 = vector.extract_strided_slice %60 {offsets = [167, 0], sizes = [1, 16], strides = [1, 1]} : vector<305x16xf32> to vector<1x16xf32>
    %96 = vector.extract_strided_slice %60 {offsets = [169, 0], sizes = [1, 16], strides = [1, 1]} : vector<305x16xf32> to vector<1x16xf32>
    %97 = vector.extract_strided_slice %60 {offsets = [171, 0], sizes = [1, 16], strides = [1, 1]} : vector<305x16xf32> to vector<1x16xf32>
    %98 = vector.extract_strided_slice %60 {offsets = [173, 0], sizes = [1, 16], strides = [1, 1]} : vector<305x16xf32> to vector<1x16xf32>
    %99 = vector.extract_strided_slice %60 {offsets = [175, 0], sizes = [1, 16], strides = [1, 1]} : vector<305x16xf32> to vector<1x16xf32>
    %100 = vector.extract_strided_slice %60 {offsets = [177, 0], sizes = [1, 16], strides = [1, 1]} : vector<305x16xf32> to vector<1x16xf32>
    %101 = vector.extract_strided_slice %60 {offsets = [199, 0], sizes = [1, 16], strides = [1, 1]} : vector<305x16xf32> to vector<1x16xf32>
    %102 = vector.extract_strided_slice %60 {offsets = [201, 0], sizes = [1, 16], strides = [1, 1]} : vector<305x16xf32> to vector<1x16xf32>
    %103 = vector.extract_strided_slice %60 {offsets = [203, 0], sizes = [1, 16], strides = [1, 1]} : vector<305x16xf32> to vector<1x16xf32>
    %104 = vector.extract_strided_slice %60 {offsets = [205, 0], sizes = [1, 16], strides = [1, 1]} : vector<305x16xf32> to vector<1x16xf32>
    %105 = vector.extract_strided_slice %60 {offsets = [207, 0], sizes = [1, 16], strides = [1, 1]} : vector<305x16xf32> to vector<1x16xf32>
    %106 = vector.extract_strided_slice %60 {offsets = [209, 0], sizes = [1, 16], strides = [1, 1]} : vector<305x16xf32> to vector<1x16xf32>
    %107 = vector.extract_strided_slice %60 {offsets = [211, 0], sizes = [1, 16], strides = [1, 1]} : vector<305x16xf32> to vector<1x16xf32>
    %108 = vector.extract_strided_slice %60 {offsets = [213, 0], sizes = [1, 16], strides = [1, 1]} : vector<305x16xf32> to vector<1x16xf32>
    %109 = vector.extract_strided_slice %60 {offsets = [235, 0], sizes = [1, 16], strides = [1, 1]} : vector<305x16xf32> to vector<1x16xf32>
    %110 = vector.extract_strided_slice %60 {offsets = [237, 0], sizes = [1, 16], strides = [1, 1]} : vector<305x16xf32> to vector<1x16xf32>
    %111 = vector.extract_strided_slice %60 {offsets = [239, 0], sizes = [1, 16], strides = [1, 1]} : vector<305x16xf32> to vector<1x16xf32>
    %112 = vector.extract_strided_slice %60 {offsets = [241, 0], sizes = [1, 16], strides = [1, 1]} : vector<305x16xf32> to vector<1x16xf32>
    %113 = vector.extract_strided_slice %60 {offsets = [243, 0], sizes = [1, 16], strides = [1, 1]} : vector<305x16xf32> to vector<1x16xf32>
    %114 = vector.extract_strided_slice %60 {offsets = [245, 0], sizes = [1, 16], strides = [1, 1]} : vector<305x16xf32> to vector<1x16xf32>
    %115 = vector.extract_strided_slice %60 {offsets = [247, 0], sizes = [1, 16], strides = [1, 1]} : vector<305x16xf32> to vector<1x16xf32>
    %116 = vector.extract_strided_slice %60 {offsets = [249, 0], sizes = [1, 16], strides = [1, 1]} : vector<305x16xf32> to vector<1x16xf32>
    %117 = vector.extract_strided_slice %60 {offsets = [271, 0], sizes = [1, 16], strides = [1, 1]} : vector<305x16xf32> to vector<1x16xf32>
    %118 = vector.extract_strided_slice %60 {offsets = [273, 0], sizes = [1, 16], strides = [1, 1]} : vector<305x16xf32> to vector<1x16xf32>
    %119 = vector.extract_strided_slice %60 {offsets = [275, 0], sizes = [1, 16], strides = [1, 1]} : vector<305x16xf32> to vector<1x16xf32>
    %120 = vector.extract_strided_slice %60 {offsets = [277, 0], sizes = [1, 16], strides = [1, 1]} : vector<305x16xf32> to vector<1x16xf32>
    %121 = vector.extract_strided_slice %60 {offsets = [279, 0], sizes = [1, 16], strides = [1, 1]} : vector<305x16xf32> to vector<1x16xf32>
    %122 = vector.extract_strided_slice %60 {offsets = [281, 0], sizes = [1, 16], strides = [1, 1]} : vector<305x16xf32> to vector<1x16xf32>
    %123 = vector.extract_strided_slice %60 {offsets = [283, 0], sizes = [1, 16], strides = [1, 1]} : vector<305x16xf32> to vector<1x16xf32>
    %124 = vector.extract_strided_slice %60 {offsets = [285, 0], sizes = [1, 16], strides = [1, 1]} : vector<305x16xf32> to vector<1x16xf32>
    %125 = tpu.concatenate %61, %62, %63, %64, %65, %66, %67, %68, %69, %70, %71, %72, %73, %74, %75, %76 in 0 : vector<1x16xf32>, vector<1x16xf32>, vector<1x16xf32>, vector<1x16xf32>, vector<1x16xf32>, vector<1x16xf32>, vector<1x16xf32>, vector<1x16xf32>, vector<1x16xf32>, vector<1x16xf32>, vector<1x16xf32>, vector<1x16xf32>, vector<1x16xf32>, vector<1x16xf32>, vector<1x16xf32>, vector<1x16xf32> -> vector<16x16xf32>
    %126 = tpu.concatenate %77, %78, %79, %80, %81, %82, %83, %84, %85, %86, %87, %88, %89, %90, %91, %92 in 0 : vector<1x16xf32>, vector<1x16xf32>, vector<1x16xf32>, vector<1x16xf32>, vector<1x16xf32>, vector<1x16xf32>, vector<1x16xf32>, vector<1x16xf32>, vector<1x16xf32>, vector<1x16xf32>, vector<1x16xf32>, vector<1x16xf32>, vector<1x16xf32>, vector<1x16xf32>, vector<1x16xf32>, vector<1x16xf32> -> vector<16x16xf32>
    %127 = tpu.concatenate %93, %94, %95, %96, %97, %98, %99, %100, %101, %102, %103, %104, %105, %106, %107, %108 in 0 : vector<1x16xf32>, vector<1x16xf32>, vector<1x16xf32>, vector<1x16xf32>, vector<1x16xf32>, vector<1x16xf32>, vector<1x16xf32>, vector<1x16xf32>, vector<1x16xf32>, vector<1x16xf32>, vector<1x16xf32>, vector<1x16xf32>, vector<1x16xf32>, vector<1x16xf32>, vector<1x16xf32>, vector<1x16xf32> -> vector<16x16xf32>
    %128 = tpu.concatenate %109, %110, %111, %112, %113, %114, %115, %116, %117, %118, %119, %120, %121, %122, %123, %124 in 0 : vector<1x16xf32>, vector<1x16xf32>, vector<1x16xf32>, vector<1x16xf32>, vector<1x16xf32>, vector<1x16xf32>, vector<1x16xf32>, vector<1x16xf32>, vector<1x16xf32>, vector<1x16xf32>, vector<1x16xf32>, vector<1x16xf32>, vector<1x16xf32>, vector<1x16xf32>, vector<1x16xf32>, vector<1x16xf32> -> vector<16x16xf32>
    %129 = tpu.concatenate %125, %126, %127, %128 in 0 : vector<16x16xf32>, vector<16x16xf32>, vector<16x16xf32>, vector<16x16xf32> -> vector<64x16xf32>
    %c0_23 = arith.constant 0 : index
    %c0_24 = arith.constant 0 : index
    %130 = vector.load %arg4[%c0_23, %c0_24] : memref<144x32xbf16, #tpu.memory_space<vmem>>, vector<144x32xbf16>
    %c0_25 = arith.constant 0 : index
    %c0_26 = arith.constant 0 : index
    %131 = vector.load %arg5[%c0_25, %c0_26] : memref<1x32xf32, #tpu.memory_space<vmem>>, vector<1x32xf32>
    %cst_27 = arith.constant 0.000000e+00 : f32
    %132 = vector.broadcast %cst_27 : f32 to vector<22x16xf32>
    %133 = vector.extract_strided_slice %129 {offsets = [0, 0], sizes = [8, 16], strides = [1, 1]} : vector<64x16xf32> to vector<8x16xf32>
    %cst_28 = arith.constant 0.000000e+00 : f32
    %134 = vector.broadcast %cst_28 : f32 to vector<2x16xf32>
    %135 = vector.extract_strided_slice %129 {offsets = [8, 0], sizes = [8, 16], strides = [1, 1]} : vector<64x16xf32> to vector<8x16xf32>
    %cst_29 = arith.constant 0.000000e+00 : f32
    %136 = vector.broadcast %cst_29 : f32 to vector<2x16xf32>
    %137 = vector.extract_strided_slice %129 {offsets = [16, 0], sizes = [8, 16], strides = [1, 1]} : vector<64x16xf32> to vector<8x16xf32>
    %cst_30 = arith.constant 0.000000e+00 : f32
    %138 = vector.broadcast %cst_30 : f32 to vector<2x16xf32>
    %139 = vector.extract_strided_slice %129 {offsets = [24, 0], sizes = [8, 16], strides = [1, 1]} : vector<64x16xf32> to vector<8x16xf32>
    %cst_31 = arith.constant 0.000000e+00 : f32
    %140 = vector.broadcast %cst_31 : f32 to vector<2x16xf32>
    %141 = vector.extract_strided_slice %129 {offsets = [32, 0], sizes = [8, 16], strides = [1, 1]} : vector<64x16xf32> to vector<8x16xf32>
    %cst_32 = arith.constant 0.000000e+00 : f32
    %142 = vector.broadcast %cst_32 : f32 to vector<2x16xf32>
    %143 = vector.extract_strided_slice %129 {offsets = [40, 0], sizes = [8, 16], strides = [1, 1]} : vector<64x16xf32> to vector<8x16xf32>
    %cst_33 = arith.constant 0.000000e+00 : f32
    %144 = vector.broadcast %cst_33 : f32 to vector<2x16xf32>
    %145 = vector.extract_strided_slice %129 {offsets = [48, 0], sizes = [8, 16], strides = [1, 1]} : vector<64x16xf32> to vector<8x16xf32>
    %cst_34 = arith.constant 0.000000e+00 : f32
    %146 = vector.broadcast %cst_34 : f32 to vector<2x16xf32>
    %147 = vector.extract_strided_slice %129 {offsets = [56, 0], sizes = [8, 16], strides = [1, 1]} : vector<64x16xf32> to vector<8x16xf32>
    %cst_35 = arith.constant 0.000000e+00 : f32
    %148 = vector.broadcast %cst_35 : f32 to vector<22x16xf32>
    %149 = tpu.concatenate %132, %133, %134, %135, %136, %137, %138, %139, %140, %141, %142, %143, %144, %145, %146, %147 in 0 : vector<22x16xf32>, vector<8x16xf32>, vector<2x16xf32>, vector<8x16xf32>, vector<2x16xf32>, vector<8x16xf32>, vector<2x16xf32>, vector<8x16xf32>, vector<2x16xf32>, vector<8x16xf32>, vector<2x16xf32>, vector<8x16xf32>, vector<2x16xf32>, vector<8x16xf32>, vector<2x16xf32>, vector<8x16xf32> -> vector<100x16xf32>
    %150 = tpu.concatenate %149, %148 in 0 : vector<100x16xf32>, vector<22x16xf32> -> vector<122x16xf32>
    %151 = vector.extract_strided_slice %150 {offsets = [0, 0], sizes = [100, 16], strides = [1, 1]} : vector<122x16xf32> to vector<100x16xf32>
    %152 = vector.extract_strided_slice %150 {offsets = [1, 0], sizes = [100, 16], strides = [1, 1]} : vector<122x16xf32> to vector<100x16xf32>
    %153 = vector.extract_strided_slice %150 {offsets = [2, 0], sizes = [100, 16], strides = [1, 1]} : vector<122x16xf32> to vector<100x16xf32>
    %154 = vector.extract_strided_slice %150 {offsets = [10, 0], sizes = [100, 16], strides = [1, 1]} : vector<122x16xf32> to vector<100x16xf32>
    %155 = vector.extract_strided_slice %150 {offsets = [11, 0], sizes = [100, 16], strides = [1, 1]} : vector<122x16xf32> to vector<100x16xf32>
    %156 = vector.extract_strided_slice %150 {offsets = [12, 0], sizes = [100, 16], strides = [1, 1]} : vector<122x16xf32> to vector<100x16xf32>
    %157 = vector.extract_strided_slice %150 {offsets = [20, 0], sizes = [100, 16], strides = [1, 1]} : vector<122x16xf32> to vector<100x16xf32>
    %158 = vector.extract_strided_slice %150 {offsets = [21, 0], sizes = [100, 16], strides = [1, 1]} : vector<122x16xf32> to vector<100x16xf32>
    %159 = vector.extract_strided_slice %150 {offsets = [22, 0], sizes = [100, 16], strides = [1, 1]} : vector<122x16xf32> to vector<100x16xf32>
    %160 = tpu.concatenate %151, %152, %153, %154, %155, %156, %157, %158, %159 in 1 : vector<100x16xf32>, vector<100x16xf32>, vector<100x16xf32>, vector<100x16xf32>, vector<100x16xf32>, vector<100x16xf32>, vector<100x16xf32>, vector<100x16xf32>, vector<100x16xf32> -> vector<100x144xf32>
    %161 = arith.truncf %160 : vector<100x144xf32> to vector<100x144xbf16>
    %cst_36 = arith.constant dense<0.000000e+00> : vector<100x32xf32>
    %162 = tpu.matmul %161, %130, %cst_36 {dimension_numbers = #tpu.dot_dimension_numbers<[1], [0], [0], [1], [0, 0, 1, 1], [], []>} : vector<100x144xbf16>, vector<144x32xbf16>, vector<100x32xf32> -> vector<100x32xf32>
    %163 = vector.broadcast %131 : vector<1x32xf32> to vector<100x32xf32>
    %164 = arith.addf %162, %163 : vector<100x32xf32>
    %cst_37 = arith.constant 0.000000e+00 : f32
    %165 = vector.broadcast %cst_37 : f32 to vector<100x32xf32>
    %166 = arith.maximumf %164, %165 : vector<100x32xf32>
    %167 = vector.extract_strided_slice %166 {offsets = [0, 0], sizes = [99, 32], strides = [1, 1]} : vector<100x32xf32> to vector<99x32xf32>
    %168 = vector.extract_strided_slice %166 {offsets = [1, 0], sizes = [99, 32], strides = [1, 1]} : vector<100x32xf32> to vector<99x32xf32>
    %169 = arith.maximumf %167, %168 : vector<99x32xf32>
    %170 = vector.extract_strided_slice %169 {offsets = [0, 0], sizes = [89, 32], strides = [1, 1]} : vector<99x32xf32> to vector<89x32xf32>
    %171 = vector.extract_strided_slice %169 {offsets = [10, 0], sizes = [89, 32], strides = [1, 1]} : vector<99x32xf32> to vector<89x32xf32>
    %172 = arith.maximumf %170, %171 : vector<89x32xf32>
    %173 = vector.extract_strided_slice %172 {offsets = [11, 0], sizes = [1, 32], strides = [1, 1]} : vector<89x32xf32> to vector<1x32xf32>
    %174 = vector.extract_strided_slice %172 {offsets = [13, 0], sizes = [1, 32], strides = [1, 1]} : vector<89x32xf32> to vector<1x32xf32>
    %175 = vector.extract_strided_slice %172 {offsets = [15, 0], sizes = [1, 32], strides = [1, 1]} : vector<89x32xf32> to vector<1x32xf32>
    %176 = vector.extract_strided_slice %172 {offsets = [17, 0], sizes = [1, 32], strides = [1, 1]} : vector<89x32xf32> to vector<1x32xf32>
    %177 = vector.extract_strided_slice %172 {offsets = [31, 0], sizes = [1, 32], strides = [1, 1]} : vector<89x32xf32> to vector<1x32xf32>
    %178 = vector.extract_strided_slice %172 {offsets = [33, 0], sizes = [1, 32], strides = [1, 1]} : vector<89x32xf32> to vector<1x32xf32>
    %179 = vector.extract_strided_slice %172 {offsets = [35, 0], sizes = [1, 32], strides = [1, 1]} : vector<89x32xf32> to vector<1x32xf32>
    %180 = vector.extract_strided_slice %172 {offsets = [37, 0], sizes = [1, 32], strides = [1, 1]} : vector<89x32xf32> to vector<1x32xf32>
    %181 = vector.extract_strided_slice %172 {offsets = [51, 0], sizes = [1, 32], strides = [1, 1]} : vector<89x32xf32> to vector<1x32xf32>
    %182 = vector.extract_strided_slice %172 {offsets = [53, 0], sizes = [1, 32], strides = [1, 1]} : vector<89x32xf32> to vector<1x32xf32>
    %183 = vector.extract_strided_slice %172 {offsets = [55, 0], sizes = [1, 32], strides = [1, 1]} : vector<89x32xf32> to vector<1x32xf32>
    %184 = vector.extract_strided_slice %172 {offsets = [57, 0], sizes = [1, 32], strides = [1, 1]} : vector<89x32xf32> to vector<1x32xf32>
    %185 = vector.extract_strided_slice %172 {offsets = [71, 0], sizes = [1, 32], strides = [1, 1]} : vector<89x32xf32> to vector<1x32xf32>
    %186 = vector.extract_strided_slice %172 {offsets = [73, 0], sizes = [1, 32], strides = [1, 1]} : vector<89x32xf32> to vector<1x32xf32>
    %187 = vector.extract_strided_slice %172 {offsets = [75, 0], sizes = [1, 32], strides = [1, 1]} : vector<89x32xf32> to vector<1x32xf32>
    %188 = vector.extract_strided_slice %172 {offsets = [77, 0], sizes = [1, 32], strides = [1, 1]} : vector<89x32xf32> to vector<1x32xf32>
    %189 = tpu.concatenate %173, %174, %175, %176, %177, %178, %179, %180, %181, %182, %183, %184, %185, %186, %187, %188 in 0 : vector<1x32xf32>, vector<1x32xf32>, vector<1x32xf32>, vector<1x32xf32>, vector<1x32xf32>, vector<1x32xf32>, vector<1x32xf32>, vector<1x32xf32>, vector<1x32xf32>, vector<1x32xf32>, vector<1x32xf32>, vector<1x32xf32>, vector<1x32xf32>, vector<1x32xf32>, vector<1x32xf32>, vector<1x32xf32> -> vector<16x32xf32>
    %190 = vector.extract_strided_slice %189 {offsets = [0, 0], sizes = [1, 32], strides = [1, 1]} : vector<16x32xf32> to vector<1x32xf32>
    %191 = vector.extract_strided_slice %189 {offsets = [1, 0], sizes = [1, 32], strides = [1, 1]} : vector<16x32xf32> to vector<1x32xf32>
    %192 = vector.extract_strided_slice %189 {offsets = [2, 0], sizes = [1, 32], strides = [1, 1]} : vector<16x32xf32> to vector<1x32xf32>
    %193 = vector.extract_strided_slice %189 {offsets = [3, 0], sizes = [1, 32], strides = [1, 1]} : vector<16x32xf32> to vector<1x32xf32>
    %194 = vector.extract_strided_slice %189 {offsets = [4, 0], sizes = [1, 32], strides = [1, 1]} : vector<16x32xf32> to vector<1x32xf32>
    %195 = vector.extract_strided_slice %189 {offsets = [5, 0], sizes = [1, 32], strides = [1, 1]} : vector<16x32xf32> to vector<1x32xf32>
    %196 = vector.extract_strided_slice %189 {offsets = [6, 0], sizes = [1, 32], strides = [1, 1]} : vector<16x32xf32> to vector<1x32xf32>
    %197 = vector.extract_strided_slice %189 {offsets = [7, 0], sizes = [1, 32], strides = [1, 1]} : vector<16x32xf32> to vector<1x32xf32>
    %198 = vector.extract_strided_slice %189 {offsets = [8, 0], sizes = [1, 32], strides = [1, 1]} : vector<16x32xf32> to vector<1x32xf32>
    %199 = vector.extract_strided_slice %189 {offsets = [9, 0], sizes = [1, 32], strides = [1, 1]} : vector<16x32xf32> to vector<1x32xf32>
    %200 = vector.extract_strided_slice %189 {offsets = [10, 0], sizes = [1, 32], strides = [1, 1]} : vector<16x32xf32> to vector<1x32xf32>
    %201 = vector.extract_strided_slice %189 {offsets = [11, 0], sizes = [1, 32], strides = [1, 1]} : vector<16x32xf32> to vector<1x32xf32>
    %202 = vector.extract_strided_slice %189 {offsets = [12, 0], sizes = [1, 32], strides = [1, 1]} : vector<16x32xf32> to vector<1x32xf32>
    %203 = vector.extract_strided_slice %189 {offsets = [13, 0], sizes = [1, 32], strides = [1, 1]} : vector<16x32xf32> to vector<1x32xf32>
    %204 = vector.extract_strided_slice %189 {offsets = [14, 0], sizes = [1, 32], strides = [1, 1]} : vector<16x32xf32> to vector<1x32xf32>
    %205 = vector.extract_strided_slice %189 {offsets = [15, 0], sizes = [1, 32], strides = [1, 1]} : vector<16x32xf32> to vector<1x32xf32>
    %206 = tpu.concatenate %190, %191, %192, %193, %194, %195, %196, %197, %198, %199, %200, %201, %202, %203, %204, %205 in 1 : vector<1x32xf32>, vector<1x32xf32>, vector<1x32xf32>, vector<1x32xf32>, vector<1x32xf32>, vector<1x32xf32>, vector<1x32xf32>, vector<1x32xf32>, vector<1x32xf32>, vector<1x32xf32>, vector<1x32xf32>, vector<1x32xf32>, vector<1x32xf32>, vector<1x32xf32>, vector<1x32xf32>, vector<1x32xf32> -> vector<1x512xf32>
    %207 = arith.truncf %206 : vector<1x512xf32> to vector<1x512xbf16>
    %c0_38 = arith.constant 0 : index
    %c0_39 = arith.constant 0 : index
    %208 = vector.load %arg6[%c0_38, %c0_39] : memref<512x256xbf16, #tpu.memory_space<vmem>>, vector<512x256xbf16>
    %cst_40 = arith.constant dense<0.000000e+00> : vector<1x256xf32>
    %209 = tpu.matmul %207, %208, %cst_40 {dimension_numbers = #tpu.dot_dimension_numbers<[1], [0], [0], [1], [0, 0, 1, 1], [], []>} : vector<1x512xbf16>, vector<512x256xbf16>, vector<1x256xf32> -> vector<1x256xf32>
    %c0_41 = arith.constant 0 : index
    %c0_42 = arith.constant 0 : index
    %210 = vector.load %arg7[%c0_41, %c0_42] : memref<1x256xf32, #tpu.memory_space<vmem>>, vector<1x256xf32>
    %211 = arith.addf %209, %210 : vector<1x256xf32>
    %cst_43 = arith.constant 0.000000e+00 : f32
    %212 = vector.broadcast %cst_43 : f32 to vector<1x256xf32>
    %213 = arith.maximumf %211, %212 : vector<1x256xf32>
    %214 = arith.truncf %213 : vector<1x256xf32> to vector<1x256xbf16>
    %c0_44 = arith.constant 0 : index
    %c0_45 = arith.constant 0 : index
    %215 = vector.load %arg8[%c0_44, %c0_45] : memref<256x256xbf16, #tpu.memory_space<vmem>>, vector<256x256xbf16>
    %cst_46 = arith.constant dense<0.000000e+00> : vector<1x256xf32>
    %216 = tpu.matmul %214, %215, %cst_46 {dimension_numbers = #tpu.dot_dimension_numbers<[1], [0], [0], [1], [0, 0, 1, 1], [], []>} : vector<1x256xbf16>, vector<256x256xbf16>, vector<1x256xf32> -> vector<1x256xf32>
    %c0_47 = arith.constant 0 : index
    %c0_48 = arith.constant 0 : index
    %217 = vector.load %arg9[%c0_47, %c0_48] : memref<1x256xf32, #tpu.memory_space<vmem>>, vector<1x256xf32>
    %218 = arith.addf %216, %217 : vector<1x256xf32>
    %cst_49 = arith.constant 0.000000e+00 : f32
    %219 = vector.broadcast %cst_49 : f32 to vector<1x256xf32>
    %220 = arith.maximumf %218, %219 : vector<1x256xf32>
    %221 = arith.truncf %220 : vector<1x256xf32> to vector<1x256xbf16>
    %c0_50 = arith.constant 0 : index
    %c0_51 = arith.constant 0 : index
    %222 = vector.load %arg10[%c0_50, %c0_51] : memref<256x128xbf16, #tpu.memory_space<vmem>>, vector<256x128xbf16>
    %cst_52 = arith.constant dense<0.000000e+00> : vector<1x128xf32>
    %223 = tpu.matmul %221, %222, %cst_52 {dimension_numbers = #tpu.dot_dimension_numbers<[1], [0], [0], [1], [0, 0, 1, 1], [], []>} : vector<1x256xbf16>, vector<256x128xbf16>, vector<1x128xf32> -> vector<1x128xf32>
    %c0_53 = arith.constant 0 : index
    %c0_54 = arith.constant 0 : index
    %224 = vector.load %arg11[%c0_53, %c0_54] : memref<1x128xf32, #tpu.memory_space<vmem>>, vector<1x128xf32>
    %225 = arith.addf %223, %224 : vector<1x128xf32>
    %c0_55 = arith.constant 0 : index
    %c0_56 = arith.constant 0 : index
    %c0_57 = arith.constant 0 : index
    %226 = vector.load %arg12[%c0_55, %c0_56, %c0_57] : memref<1x1x128xf32, #tpu.memory_space<vmem>>, vector<1x1x128xf32>
    %227 = vector.shape_cast %226 : vector<1x1x128xf32> to vector<1x128xf32>
    %228 = vector.shape_cast %225 : vector<1x128xf32> to vector<1x1x128xf32>
    tpu.vector_store %arg12[%c0_55, %c0_56, %c0_57], %228 {strides = array<i32>} : memref<1x1x128xf32, #tpu.memory_space<vmem>>, vector<1x1x128xf32>,
    return
  }
  func.func @transform_0(%arg0: i32) -> (i32, i32) {
    %c0_i32 = arith.constant 0 : i32
    %c0_i32_0 = arith.constant 0 : i32
    return %arg0, %c0_i32 : i32, i32
  }
  func.func @transform_1(%arg0: i32) -> (i32, i32) {
    %c0_i32 = arith.constant 0 : i32
    %c0_i32_0 = arith.constant 0 : i32
    %c0_i32_1 = arith.constant 0 : i32
    return %c0_i32, %c0_i32_0 : i32, i32
  }
  func.func @transform_2(%arg0: i32) -> (i32, i32) {
    %c0_i32 = arith.constant 0 : i32
    %c0_i32_0 = arith.constant 0 : i32
    %c0_i32_1 = arith.constant 0 : i32
    return %c0_i32, %c0_i32_0 : i32, i32
  }
  func.func @transform_3(%arg0: i32) -> (i32, i32) {
    %c0_i32 = arith.constant 0 : i32
    %c0_i32_0 = arith.constant 0 : i32
    %c0_i32_1 = arith.constant 0 : i32
    return %c0_i32, %c0_i32_0 : i32, i32
  }
  func.func @transform_4(%arg0: i32) -> (i32, i32) {
    %c0_i32 = arith.constant 0 : i32
    %c0_i32_0 = arith.constant 0 : i32
    %c0_i32_1 = arith.constant 0 : i32
    return %c0_i32, %c0_i32_0 : i32, i32
  }
  func.func @transform_5(%arg0: i32) -> (i32, i32) {
    %c0_i32 = arith.constant 0 : i32
    %c0_i32_0 = arith.constant 0 : i32
    %c0_i32_1 = arith.constant 0 : i32
    return %c0_i32, %c0_i32_0 : i32, i32
  }
  func.func @transform_6(%arg0: i32) -> (i32, i32) {
    %c0_i32 = arith.constant 0 : i32
    %c0_i32_0 = arith.constant 0 : i32
    %c0_i32_1 = arith.constant 0 : i32
    return %c0_i32, %c0_i32_0 : i32, i32
  }
  func.func @transform_7(%arg0: i32) -> (i32, i32) {
    %c0_i32 = arith.constant 0 : i32
    %c0_i32_0 = arith.constant 0 : i32
    %c0_i32_1 = arith.constant 0 : i32
    return %c0_i32, %c0_i32_0 : i32, i32
  }
  func.func @transform_8(%arg0: i32) -> (i32, i32) {
    %c0_i32 = arith.constant 0 : i32
    %c0_i32_0 = arith.constant 0 : i32
    %c0_i32_1 = arith.constant 0 : i32
    return %c0_i32, %c0_i32_0 : i32, i32
  }
  func.func @transform_9(%arg0: i32) -> (i32, i32) {
    %c0_i32 = arith.constant 0 : i32
    %c0_i32_0 = arith.constant 0 : i32
    %c0_i32_1 = arith.constant 0 : i32
    return %c0_i32, %c0_i32_0 : i32, i32
  }
  func.func @transform_10(%arg0: i32) -> (i32, i32) {
    %c0_i32 = arith.constant 0 : i32
    %c0_i32_0 = arith.constant 0 : i32
    %c0_i32_1 = arith.constant 0 : i32
    return %c0_i32, %c0_i32_0 : i32, i32
  }
  func.func @transform_11(%arg0: i32) -> (i32, i32, i32) {
    %c0_i32 = arith.constant 0 : i32
    %c0_i32_0 = arith.constant 0 : i32
    %c0_i32_1 = arith.constant 0 : i32
    return %arg0, %c0_i32, %c0_i32_0 : i32, i32, i32
  }
}

</mosaic_0001>

<bundles_post_ra>
// kernel: cnn_simclr_forward.1
= control target key start
LH: loop header
LB: loop body
LE: loop exit
PB: predicated region body
PF: predicated region fallthrough
CT: control target
= control target key end

     0   :  { %s10506_s0 = inlined_call_operand.vmem [shape: f32[512,4], index: 0, kind: input, shape index: {}]   ;;  %s10507_s1 = inlined_call_operand.vmem [shape: bf16[36,16], index: 1, kind: input, shape index: {}]   ;;  %s10508_s2 = inlined_call_operand.vmem [shape: f32[1,16], index: 2, kind: input, shape index: {}]   ;;  %s10509_s3 = inlined_call_operand.vmem [shape: bf16[144,32], index: 3, kind: input, shape index: {}]   ;;  %s10510_s4 = inlined_call_operand.vmem [shape: f32[1,32], index: 4, kind: input, shape index: {}]   ;;  %s10511_s5 = inlined_call_operand.vmem [shape: bf16[512,256], index: 5, kind: input, shape index: {}]   ;;  %s10512_s6 = inlined_call_operand.vmem [shape: f32[1,256], index: 6, kind: input, shape index: {}]   ;;  %s10513_s7 = inlined_call_operand.vmem [shape: bf16[256,256], index: 7, kind: input, shape index: {}]   ;;  %s10514_s8 = inlined_call_operand.vmem [shape: f32[1,256], index: 8, kind: input, shape index: {}]   ;;  %s10515_s9 = inlined_call_operand.vmem [shape: bf16[256,128], index: 9, kind: input, shape index: {}]   ;;  %s10516_s10 = inlined_call_operand.vmem [shape: f32[1,128], index: 10, kind: input, shape index: {}]   ;;  %s10517_s11 = inlined_call_operand.hbm [shape: f32[2,1,128], index: 11, kind: output, shape index: {}]  }
   0x1   :  { %10573 = sst [smem:[#allocation18_spill]] %s10506_s0 }
   0x2   :  { %16 = vsyncpa [#allocation3], 0 }
   0x3   :  { %18 = vsyncpa [#allocation3 + $0x1], 0  ;;  %s6856_s17 = smov 0   ;;  %s6858_s18 = smov 0  }
   0x4   :  { %s6860_s19 = smov 0   ;;  %s6862_s20 = smov 0  }
   0x5 LB: > { %s6877_s21 = sadd.s32 4294967295, %s6777_s20   ;;  %s5178_s22 = sadd.s32 4294967294, %s6777_s20   ;;  %s6777_s20 = sphi %s6862_s20, %s10751_s20   ;;  %s6773_s19 = sphi %s6860_s19, %s10750_s19   ;;  %s6769_s18 = sphi %s6858_s18, %s10749_s18   ;;  %s6765_s17 = sphi %s6856_s17, %s10748_s17  }
   0x6   : > { %s6881_s23 = sadd.s32 1, %s6777_s20   ;;  %s267_s24 = sadd.s32 1, %s6773_s19 }
   0x7   : > { %s264_s25 = ssub.s32 %s6777_s20, %s6881_s23  ;;  %p277_p0 = scmp.ne.s32.totalorder %s6773_s19, %s6769_s18 }
   0x8   : > { %p265_p1 = scmp.eq.s32.totalorder %s264_s25, 0  ;;  %p278_p2 = scmp.eq.s32.totalorder %s6877_s21, 1 }
   0x9   : > { %p283_p3 = scmp.ne.s32.totalorder %s6769_s18, %s6765_s17  ;;  %p284_p4 = scmp.eq.s32.totalorder %s5178_s22, 1 }
   0xa   : > { %s6892_s26 = scalar_select %p265_p1, %s6773_s19, %s267_s24  }
   0xb   : > { %p6894_p5 = por %p278_p2, %p277_p0  ;;  %p6898_p6 = por %p284_p4, %p283_p3 }
   0xc   : > { %p5181_p7 = scmp.ge.s32.totalorder %s6777_s20, 1  ;;  %p341_p8 = scmp.lt.s32.totalorder %s6777_s20, 3 }
   0xe   : > { %p342_p9 = pnand %p5181_p7, %p341_p8 }
  0x10   : > { %345 = sbr.rel (%p342_p9) target bundleno = 1908 (0x774), region = 64 }
  0x17   : > { %s5182_s29 = sshll.u32 %s6877_s21, 5  ;;  %v10520_v0 = vmov 0.0   ;;  %s10576_s0 = sld [smem:[#allocation18_spill]]  ;;  %vm427_vm0 = vcmask 1045504   ;;  %vm624_vm1 = vcmask 1046528   ;;  %vm1132_vm2 = vcmask 1044480  }
  0x18   : > { %p381_p10 = scmp.lt.s32.totalorder %s5182_s29, 63  ;;  %5387 = vmatprep.subr.bf16.mxu0 %v10520_v0  ;;  %v6914_v5 = vrot.slane %v10520_v0, 1  ;;  %v6917_v6 = vrot.slane %v10520_v0, 2  ;;  %v6920_v7 = vrot.slane %v10520_v0, 3  ;;  %v6926_v9 = vrot.slane %v10520_v0, 4  ;;  %v6538_v21 = vld [vmem:[%s10507_s1] sm:$0xff]  }
  0x19   : > { %vm445_vm3 = vcmask 1043456   ;;  %vm10556_vm4 = vcmask 1042432   ;;  %vm10557_vm5 = vcmask 1041408   ;;  %5388 = vmatpush3.bf16.msra.mxu0 %v6538_v21  ;;  %v6539_v27 = vld [vmem:[%s10507_s1 + $0x8] sm:$0xff]   ;;  %s10568_s25 = smov 4   ;;  %s10567_s12 = smov 16  }
  0x1a   : > { %s10753_s29 = smov (!%p381_p10, %s5182_s29), 63  ;;  %10577 = vst [vmem:[#allocation5_spill] sm:$0xff] %v6914_v5  ;;  %10578 = vst [vmem:[#allocation6_spill] sm:$0xff] %v6917_v6  ;;  %5389 = vmatprep.subr.bf16.mxu0 %v10520_v0  ;;  %s10559_s13 = smov 20   ;;  %vm6788_vm6 = vmmov 0   ;;  %vm2025_vm7 = vcmask 31744  }
  0x1b   : > { %s5183_s30 = sshll.u32 %s10753_s29, 3  ;;  %10579 = vst [vmem:[#allocation7_spill] sm:$0xff] %v6920_v7  ;;  %10580 = vst [vmem:[#allocation8_spill] sm:$0xff] %v6926_v9  ;;  %s10560_s29 = smov 12   ;;  %5393 = vmatprep.mubr.msk.bf16.mxu0 %vm6788_vm6, %v10520_v0  ;;  %vm2065_vm8 = vcmask 64512   ;;  %vm10566_vm9 = vcmask 97280  }
  0x1c   : > { %s10558_s15 = smov 24   ;;  %s6786_s16 = smov 28   ;;  %vm2147_vm10 = vcmask 130048   ;;  %vm10565_vm11 = vcmask 162816   ;;  %vm10564_vm12 = vcmask 195584   ;;  %vm10563_vm13 = vcmask 228352  }
  0x1d   : > { %s6909_s14 = scalar_lea.vmem %s10576_s0, %s5183_s30  ;;  %5390 = vmatpush3.bf16.msra.mxu0 %v6539_v27  ;;  %s10561_s30 = smov 8   ;;  %vm10555_vm14 = vcmask 261120   ;;  %vm10562_vm15 = vcmask 293888  }
  0x1e   : > { %v387_v1 = vld [vmem:[%s6909_s14] sm:$0xff]  ;;  %v388_v2 = vld [vmem:[%s6909_s14 + $0x8] sm:$0xff]  ;;  %v6975_v37 = vld [vmem:[%s6909_s14 + $0x10] sm:$0xff]  ;;  %5391 = vmatprep.subr.bf16.mxu0 %v10520_v0  ;;  %s10518_s22 = smov 32   ;;  %s6793_s24 = smov 112  }
  0x1f   : > { %v428_v3 = vrot.slane %v387_v1, 2  ;;  %v429_v4 = vrot.slane %v388_v2, 2  ;;  %v6978_v38 = vld [vmem:[%s6909_s14 + $0x18] sm:$0xff]  ;;  %v1338_v49 = vrot.slane %v6975_v37, 4  ;;  %v1650_v57 = vrot.slane %v6975_v37, 5  ;;  %v391_v63 = vld [vmem:[%s6909_s14 + $0x20] sm:$0xff] }
  0x20   : > { %v1340_v50 = vrot.slane %v6978_v38, 4  ;;  %v1652_v58 = vrot.slane %v6978_v38, 5  ;;  %v1840_v61 = vrot.slane %v6975_v37, 6  ;;  %v1842_v62 = vrot.slane %v6978_v38, 6  ;;  %v392_v1 = vld [vmem:[%s6909_s14 + $0x28] sm:$0xff]  ;;  %s10728_s0 = smov 64  }
  0x21   : > { %v6923_v8 = vsel %vm427_vm0, 0.0, %v428_v3  ;;  %v6929_v10 = vsel %vm427_vm0, %v428_v3, %v429_v4  ;;  %v6932_v11 = vsel %vm427_vm0, %v429_v4, 0.0  ;;  %v826_v21 = vrot.slane %v6975_v37, 2 }
  0x22   : > { %v627_v12 = vrot.slane %v6923_v8, 1  ;;  %v820_v13 = vrot.slane %v6923_v8, 2  ;;  %v1135_v14 = vrot.slane %v6923_v8, 3  ;;  %v1332_v15 = vrot.slane %v6923_v8, 4 }
  0x23   : > { %v1334_v16 = vrot.slane %v6929_v10, 4  ;;  %v1336_v17 = vrot.slane %v6932_v11, 4  ;;  %v1645_v25 = vrot.slane %v6923_v8, 5  ;;  %v1646_v26 = vrot.slane %v6929_v10, 5 }
  0x24   : > { %v628_v18 = vsel %vm624_vm1, %v6914_v5, %v627_v12  ;;  %v821_v19 = vsel %vm427_vm0, %v6917_v6, %v820_v13  ;;  %v1136_v20 = vsel %vm1132_vm2, %v6920_v7, %v1135_v14  ;;  %v1333_v24 = vsel %vm445_vm3, %v6926_v9, %v1332_v15 }
  0x25   : > { %v5538_v22 = vpack.i.bf16 %v628_v18, %v6914_v5  ;;  %v5548_v23 = vpack.i.bf16 %v821_v19, %v6917_v6  ;;  %v5553_v28 = vpack.i.bf16 %v1136_v20, %v6920_v7  ;;  %v1335_v29 = vsel %vm445_vm3, %v1332_v15, %v1334_v16 }
  0x26   : > { %v1337_v30 = vsel %vm445_vm3, %v1334_v16, %v1336_v17  ;;  %v1648_v31 = vrot.slane %v6932_v11, 5  ;;  %v1835_v32 = vrot.slane %v6923_v8, 6  ;;  %v1836_v33 = vrot.slane %v6929_v10, 6 }
  0x27   : > { %5539 = vrot.lane.b32.xlu0 %v5538_v22, %s10568_s25  ;;  %5549 = vrot.lane.b32.xlu1 %v5548_v23, %s10560_s29  ;;  %v1838_v34 = vrot.slane %v6932_v11, 6  ;;  %v822_v35 = vrot.slane %v6929_v10, 2  ;;  %v824_v36 = vrot.slane %v6932_v11, 2  ;;  %v5558_v39 = vpack.i.bf16 %v1333_v24, %v6926_v9 }
  0x28   : > { %v5563_v40 = vpack.i.bf16 %v1337_v30, %v1335_v29  ;;  %v1137_v41 = vrot.slane %v6929_v10, 3  ;;  %v1139_v42 = vrot.slane %v6932_v11, 3  ;;  %v1647_v43 = vsel %vm10556_vm4, %v1645_v25, %v1646_v26 }
  0x29   : > { %v1649_v44 = vsel %vm10556_vm4, %v1646_v26, %v1648_v31  ;;  %v1837_v45 = vsel %vm10557_vm5, %v1835_v32, %v1836_v33  ;;  %v1839_v46 = vsel %vm10557_vm5, %v1836_v33, %v1838_v34  ;;  %v823_v51 = vsel %vm427_vm0, %v820_v13, %v822_v35 }
  0x2a   : > { %v5568_v47 = vpack.i.bf16 %v1649_v44, %v1647_v43  ;;  %v5573_v48 = vpack.i.bf16 %v1839_v46, %v1837_v45  ;;  %v825_v52 = vsel %vm427_vm0, %v822_v35, %v824_v36  ;;  %v1138_v53 = vsel %vm1132_vm2, %v1135_v14, %v1137_v41  ;;  %v393_v45 = vld [vmem:[%s6909_s14 + $0x30] sm:$0xff]  ;;  %v394_v46 = vld [vmem:[%s6909_s14 + $0x38] sm:$0xff] }
  0x2b   : > { %5544 = vrot.lane.b32.xlu0 %v5548_v23, %s10561_s30  ;;  %5554 = vrot.lane.b32.xlu1 %v5553_v28, %s10567_s12  ;;  %v1140_v54 = vsel %vm1132_vm2, %v1137_v41, %v1139_v42  ;;  %v5578_v55 = vpack.i.bf16 %v825_v52, %v823_v51  ;;  %v1339_v59 = vsel %vm445_vm3, %v1336_v17, %v1338_v49  ;;  %v629_v4 = vrot.slane %v6929_v10, 1 }
  0x2c   : > { %v5583_v56 = vpack.i.bf16 %v1140_v54, %v1138_v53  ;;  %v1341_v60 = vsel %vm445_vm3, %v1338_v49, %v1340_v50  ;;  %v1651_v3 = vsel %vm10556_vm4, %v1648_v31, %v1650_v57  ;;  %v1653_v13 = vsel %vm10556_vm4, %v1650_v57, %v1652_v58 }
  0x2d   : > { %v5593_v2 = vpack.i.bf16 %v1341_v60, %v1339_v59  ;;  %v1841_v14 = vsel %vm10557_vm5, %v1838_v34, %v1840_v61  ;;  %v1843_v15 = vsel %vm10557_vm5, %v1840_v61, %v1842_v62  ;;  %v631_v16 = vrot.slane %v6932_v11, 1 }
  0x2e   : > { %v437_v17 = vrot.slane %v391_v63, 6  ;;  %v438_v18 = vrot.slane %v392_v1, 6  ;;  %v5598_v19 = vpack.i.bf16 %v1653_v13, %v1651_v3  ;;  %v5603_v20 = vpack.i.bf16 %v1843_v15, %v1841_v14 }
  0x2f   : > { %5559 = vrot.lane.b32.xlu0 %v5558_v39, %s10559_s13  ;;  %5564 = vrot.lane.b32.xlu1 %v5563_v40, %s10558_s15  ;;  %v828_v22 = vrot.slane %v6978_v38, 2  ;;  %v630_v23 = vsel %vm624_vm1, %v627_v12, %v629_v4  ;;  %v632_v24 = vsel %vm624_vm1, %v629_v4, %v631_v16  ;;  %v1141_v25 = vrot.slane %v6975_v37, 3 }
  0x30   : > { %v1143_v26 = vrot.slane %v6978_v38, 3  ;;  %v7031_v27 = vsel %vm10557_vm5, %v437_v17, %v438_v18  ;;  %v7034_v28 = vsel %vm10557_vm5, 0.0, %v437_v17  ;;  %v5608_v29 = vpack.i.bf16 %v632_v24, %v630_v23 }
  0x31   : > { %v827_v12 = vsel %vm427_vm0, %v824_v36, %v826_v21  ;;  %v829_v30 = vsel %vm427_vm0, %v826_v21, %v828_v22  ;;  %v1142_v31 = vsel %vm1132_vm2, %v1139_v42, %v1141_v25  ;;  %v1342_v33 = vrot.slane %v7034_v28, 4  ;;  %v395_v21 = vld [vmem:[%s6909_s14 + $0x40] sm:$0xff] }
  0x32   : > { %v1144_v32 = vsel %vm1132_vm2, %v1141_v25, %v1143_v26  ;;  %v1344_v34 = vrot.slane %v7031_v27, 4  ;;  %v5618_v35 = vpack.i.bf16 %v829_v30, %v827_v12  ;;  %v1654_v36 = vrot.slane %v7034_v28, 5 }
  0x33   : > { %5569 = vrot.lane.b32.xlu0 %v5568_v47, %s6786_s16  ;;  %5574 = vrot.lane.b32.xlu1 %v5573_v48, %s10518_s22  ;;  %v5623_v39 = vpack.i.bf16 %v1144_v32, %v1142_v31  ;;  %v1343_v41 = vsel %vm445_vm3, %v1340_v50, %v1342_v33  ;;  %v1844_v43 = vrot.slane %v7034_v28, 6  ;;  %v1846_v44 = vrot.slane %v7031_v27, 6 }
  0x34   : > { %v1345_v42 = vsel %vm445_vm3, %v1342_v33, %v1344_v34  ;;  %v633_v47 = vrot.slane %v6975_v37, 1  ;;  %v635_v48 = vrot.slane %v6978_v38, 1  ;;  %v1655_v51 = vsel %vm10556_vm4, %v1652_v58, %v1654_v36 }
  0x35   : > { %v5633_v49 = vpack.i.bf16 %v1345_v42, %v1343_v41  ;;  %v1845_v52 = vsel %vm10557_vm5, %v1842_v62, %v1844_v43  ;;  %v1847_v53 = vsel %vm10557_vm5, %v1844_v43, %v1846_v44  ;;  %v446_v54 = vrot.slane %v393_v45, 4 }
  0x36   : > { %v636_v37 = vsel %vm624_vm1, %v633_v47, %v635_v48  ;;  %v479_v38 = vsel %vm10557_vm5, %v438_v18, 0.0  ;;  %v5643_v58 = vpack.i.bf16 %v1847_v53, %v1845_v52  ;;  %v830_v59 = vrot.slane %v7034_v28, 2 }
  0x37   : > { %5579 = vrot.lane.b32.xlu0 %v5578_v55, %s10560_s29  ;;  %5584 = vrot.lane.b32.xlu1 %v5583_v56, %s10567_s12  ;;  %v634_v56 = vsel %vm624_vm1, %v631_v16, %v633_v47  ;;  %v832_v60 = vrot.slane %v7031_v27, 2  ;;  %v1145_v61 = vrot.slane %v7034_v28, 3  ;;  %v1147_v62 = vrot.slane %v7031_v27, 3 }
  0x38   : > { %v7077_v1 = vsel %vm445_vm3, %v479_v38, %v446_v54  ;;  %v831_v3 = vsel %vm427_vm0, %v828_v22, %v830_v59  ;;  %v639_v12 = vrot.slane %v7031_v27, 1 }
  0x39   : > { %v833_v4 = vsel %vm427_vm0, %v830_v59, %v832_v60  ;;  %v1146_v13 = vsel %vm1132_vm2, %v1143_v26, %v1145_v61  ;;  %v1148_v14 = vsel %vm1132_vm2, %v1145_v61, %v1147_v62  ;;  %v1346_v15 = vrot.slane %v7077_v1, 4  ;;  %v396_v26 = vld [vmem:[%s6909_s14 + $0x48] sm:$0xff] }
  0x3a   : > { %v5658_v17 = vpack.i.bf16 %v833_v4, %v831_v3  ;;  %v5663_v18 = vpack.i.bf16 %v1148_v14, %v1146_v13  ;;  %v1848_v24 = vrot.slane %v7077_v1, 6  ;;  %v834_v33 = vrot.slane %v7077_v1, 2 }
  0x3b   : > { %5589 = vrot.lane.b32.xlu0 %v5563_v40, %s10559_s13  ;;  %5594 = vrot.lane.b32.xlu1 %v5593_v2, %s10558_s15  ;;  %v1656_v40 = vrot.slane %v7031_v27, 5  ;;  %v1347_v22 = vsel %vm445_vm3, %v1344_v34, %v1346_v15  ;;  %v641_v3 = vrot.slane %v7077_v1, 1 }
  0x3c   : > { %v1849_v34 = vsel %vm10557_vm5, %v1846_v44, %v1848_v24  ;;  %v1149_v44 = vrot.slane %v7077_v1, 3 }
  0x3d   : > { %v1657_v50 = vsel %vm10556_vm4, %v1654_v36, %v1656_v40  ;;  %v455_v36 = vrot.slane %v396_v26, 2 }
  0x3e   : > { %v5638_v57 = vpack.i.bf16 %v1657_v50, %v1655_v51  ;;  %v1150_v53 = vsel %vm1132_vm2, %v1147_v62, %v1149_v44 }
  0x3f   : > { %5599 = vrot.lane.b32.xlu0 %v5598_v19, %s6786_s16  ;;  %5604 = vrot.lane.b32.xlu1 %v5603_v20, %s10518_s22  ;;  %v1658_v19 = vrot.slane %v7077_v1, 5 }
  0x41   : > { %v1659_v31 = vsel %vm10556_vm4, %v1656_v40, %v1658_v19 }
  0x43   : > { %5609 = vrot.lane.b32.xlu0 %v5608_v29, %s10568_s25  ;;  %5614 = vrot.lane.b32.xlu1 %v5578_v55, %s10561_s30  ;;  %v447_v55 = vrot.slane %v394_v46, 4  ;;  %v637_v29 = vrot.slane %v7034_v28, 1 }
  0x45   : > { %v7074_v63 = vsel %vm445_vm3, %v446_v54, %v447_v55  ;;  %v481_v42 = vsel %vm445_vm3, %v447_v55, 0.0  ;;  %v638_v45 = vsel %vm624_vm1, %v635_v48, %v637_v29  ;;  %v640_v46 = vsel %vm624_vm1, %v637_v29, %v639_v12 }
  0x46   : > { %v1348_v16 = vrot.slane %v7074_v63, 4  ;;  %v1660_v20 = vrot.slane %v7074_v63, 5  ;;  %v1850_v25 = vrot.slane %v7074_v63, 6  ;;  %v836_v41 = vrot.slane %v7074_v63, 2 }
  0x47   : > { %5619 = vrot.lane.b32.xlu0 %v5618_v35, %s10560_s29  ;;  %5624 = vrot.lane.b32.xlu1 %v5623_v39, %s10567_s12  ;;  %v454_v39 = vrot.slane %v395_v21, 2  ;;  %v1151_v47 = vrot.slane %v7074_v63, 3  ;;  %v5688_v52 = vpack.i.bf16 %v640_v46, %v638_v45  ;;  %v835_v48 = vsel %vm427_vm0, %v832_v60, %v834_v33  ;;  %v7160_v21 = vld [vmem:[%s6909_s14 + $0x50] sm:$0xff] }
  0x48   : > { %v1349_v23 = vsel %vm445_vm3, %v1346_v15, %v1348_v16  ;;  %v1661_v32 = vsel %vm10556_vm4, %v1658_v19, %v1660_v20  ;;  %v643_v14 = vrot.slane %v7074_v63, 1  ;;  %v7156_v19 = vsel %vm427_vm0, %v455_v36, 0.0 }
  0x49   : > { %v5673_v30 = vpack.i.bf16 %v1349_v23, %v1347_v22  ;;  %v5678_v43 = vpack.i.bf16 %v1661_v32, %v1659_v31  ;;  %v7115_v51 = vsel %vm427_vm0, %v454_v39, %v455_v36  ;;  %v7118_v50 = vsel %vm427_vm0, %v481_v42, %v454_v39 }
  0x4a   : > { %10581 = vst [vmem:[#allocation9_spill] sm:$0xff] %v7115_v51  ;;  %v1152_v54 = vsel %vm1132_vm2, %v1149_v44, %v1151_v47  ;;  %v1350_v55 = vrot.slane %v7118_v50, 4  ;;  %v1852_v61 = vrot.slane %v7118_v50, 6  ;;  %v1854_v62 = vrot.slane %v7115_v51, 6 }
  0x4b   : > { %5629 = vrot.lane.b32.xlu0 %v5593_v2, %s10559_s13  ;;  %5634 = vrot.lane.b32.xlu1 %v5633_v49, %s10558_s15  ;;  %v5648_v2 = vpack.i.bf16 %v636_v37, %v634_v56  ;;  %v1352_v56 = vrot.slane %v7115_v51, 4  ;;  %v5703_v38 = vpack.i.bf16 %v1152_v54, %v1150_v53  ;;  %v644_v26 = vsel %vm624_vm1, %v641_v3, %v643_v14 }
  0x4c   : > { %v1351_v59 = vsel %vm445_vm3, %v1348_v16, %v1350_v55  ;;  %v1853_v16 = vsel %vm10557_vm5, %v1850_v25, %v1852_v61  ;;  %v1153_v29 = vrot.slane %v7118_v50, 3  ;;  %v1354_v31 = vrot.slane %v7156_v19, 4 }
  0x4d   : > { %v1353_v60 = vsel %vm445_vm3, %v1350_v55, %v1352_v56  ;;  %v1356_v32 = vrot.slane %v7160_v21, 4  ;;  %v647_v53 = vrot.slane %v7115_v51, 1  ;;  %v400_v55 = vld [vmem:[%s6909_s14 + $0x68] sm:$0xff] }
  0x4e   : > { %v7144_v4 = vpack.i.bf16 %v1353_v60, %v1351_v59  ;;  %v1154_v45 = vsel %vm1132_vm2, %v1151_v47, %v1153_v29  ;;  %v1355_v46 = vsel %vm445_vm3, %v1352_v56, %v1354_v31 }
  0x4f   : > { %5639 = vrot.lane.b32.xlu0 %v5638_v57, %s6786_s16  ;;  %5644 = vrot.lane.b32.xlu1 %v5643_v58, %s10518_s22  ;;  %v1662_v57 = vrot.slane %v7118_v50, 5  ;;  %v1664_v58 = vrot.slane %v7115_v51, 5  ;;  %v1357_v44 = vsel %vm445_vm3, %v1354_v31, %v1356_v32 }
  0x50   : > { %v7213_v59 = vpack.i.bf16 %v1357_v44, %v1355_v46 }
  0x51   : > { %v1663_v13 = vsel %vm10556_vm4, %v1660_v20, %v1662_v57  ;;  %v1665_v15 = vsel %vm10556_vm4, %v1662_v57, %v1664_v58  ;;  %v642_v20 = vsel %vm624_vm1, %v639_v12, %v641_v3  ;;  %v1155_v12 = vrot.slane %v7115_v51, 3 }
  0x52   : > { %v5718_v22 = vpack.i.bf16 %v1665_v15, %v1663_v13  ;;  %v5728_v39 = vpack.i.bf16 %v644_v26, %v642_v20  ;;  %v842_v57 = vrot.slane %v7156_v19, 2  ;;  %v7228_v15 = vld [vmem:[%s6909_s14 + $0x70] sm:$0xff]  ;;  %v651_v20 = vrot.slane %v7160_v21, 1 }
  0x53   : > { %5649 = vrot.lane.b32.xlu0 %v5648_v2, %s10568_s25  ;;  %5654 = vrot.lane.b32.xlu1 %v5618_v35, %s10561_s30  ;;  %v1851_v35 = vsel %vm10557_vm5, %v1848_v24, %v1850_v25  ;;  %v6540_v2 = vld [vmem:[%s10507_s1 + $0x10] ss:$0 sps:$4 sm:$0x33]   ;;  %v838_v24 = vrot.slane %v7118_v50, 2  ;;  %v840_v25 = vrot.slane %v7115_v51, 2  ;;  %v470_v31 = vrot.slane %v7228_v15, 4 }
  0x54   : > { %v5683_v40 = vpack.i.bf16 %v1851_v35, %v1849_v34  ;;  %v1668_v34 = vrot.slane %v7160_v21, 5  ;;  %v1856_v35 = vrot.slane %v7156_v19, 6 }
  0x55   : > { %v839_v36 = vsel %vm427_vm0, %v836_v41, %v838_v24  ;;  %v841_v42 = vsel %vm427_vm0, %v838_v24, %v840_v25 }
  0x56   : > { %v7206_v56 = vpack.i.bf16 %v841_v42, %v839_v36 }
  0x57   : > { %5659 = vrot.lane.b32.xlu0 %v5658_v17, %s10560_s29  ;;  %5664 = vrot.lane.b32.xlu1 %v5663_v18, %s10567_s12  ;;  %v2464_v18 = vsel %vm10557_vm5, %v6540_v2, 0  ;;  %v7220_v2 = vld [vmem:[%s6909_s14 + $0x58] sm:$0xff] }
  0x58   : > { %5392 = vmatpush3.bf16.msra.mxu0 %v2464_v18  ;;  %v649_v18 = vrot.slane %v7156_v19, 1  ;;  %v1670_v24 = vrot.slane %v7220_v2, 5 }
  0x5a   : > { %v7272_v44 = vsel %vm10556_vm4, %v1668_v34, %v1670_v24 }
  0x5b   : > { %5669 = vrot.lane.b32.xlu0 %v5633_v49, %s10559_s13  ;;  %5674 = vrot.lane.b32.xlu1 %v5673_v30, %s10558_s15  ;;  %v837_v49 = vsel %vm427_vm0, %v834_v33, %v836_v41  ;;  %v1666_v33 = vrot.slane %v7156_v19, 5 }
  0x5c   : > { %v7130_v37 = vpack.i.bf16 %v837_v49, %v835_v48  ;;  %v645_v48 = vrot.slane %v7118_v50, 1  ;;  %v7197_v49 = vsel %vm10557_vm5, %v1854_v62, %v1856_v35 }
  0x5d   : > { %v7193_v41 = vsel %vm10556_vm4, %v1666_v33, %v1668_v34 }
  0x5e   : > { %v7225_v13 = vsel %vm624_vm1, %v643_v14, %v645_v48  ;;  %v1358_v14 = vrot.slane %v7220_v2, 4 }
  0x5f   : > { %5679 = vrot.lane.b32.xlu0 %v5678_v43, %s6786_s16  ;;  %5684 = vrot.lane.b32.xlu1 %v5683_v40, %s10518_s22  ;;  %v399_v43 = vld [vmem:[%s6909_s14 + $0x60] sm:$0xff]  ;;  %s10582_s22 = smov 32   ;;  %v1156_v40 = vsel %vm1132_vm2, %v1153_v29, %v1155_v12 }
  0x60   : > { %v462_v54 = vrot.slane %v399_v43, 6  ;;  %v7261_v43 = vsel %vm624_vm1, %v647_v53, %v649_v18  ;;  %v1359_v46 = vsel %vm445_vm3, %v1356_v32, %v1358_v14 }
  0x63   : > { %5689 = vrot.lane.b32.xlu0 %v5688_v52, %s10568_s25  ;;  %5694 = vrot.lane.b32.xlu1 %v5658_v17, %s10561_s30  ;;  %v1855_v17 = vsel %vm10557_vm5, %v1852_v61, %v1854_v62  ;;  %v7190_v52 = vsel %vm10556_vm4, %v1664_v58, %v1666_v33  ;;  %v844_v58 = vrot.slane %v7160_v21, 2  ;;  %v1157_v61 = vrot.slane %v7156_v19, 3 }
  0x64   : > { %v5723_v23 = vpack.i.bf16 %v1855_v17, %v1853_v16  ;;  %v5758_v60 = vpack.i.bf16 %v7193_v41, %v7190_v52  ;;  %v1159_v62 = vrot.slane %v7160_v21, 3  ;;  %v648_v16 = vsel %vm624_vm1, %v645_v48, %v647_v53  ;;  %v7275_v52 = vld [vmem:[%s6909_s14 + $0x80] sm:$0xff] }
  0x65   : > { %v7232_v17 = vsel %vm10557_vm5, 0.0, %v462_v54  ;;  %v7246_v26 = vsel %vm1132_vm2, %v1155_v12, %v1157_v61  ;;  %v5768_v33 = vpack.i.bf16 %v648_v16, %v7225_v13 }
  0x66   : > { %10583 = vst [vmem:[#allocation10_spill] sm:$0xff] %v7232_v17  ;;  %v7249_v29 = vsel %vm1132_vm2, %v1157_v61, %v1159_v62  ;;  %v1862_v12 = vrot.slane %v7232_v17, 6  ;;  %v848_v53 = vrot.slane %v7232_v17, 2 }
  0x67   : > { %5699 = vrot.lane.b32.xlu0 %v7130_v37, %s10560_s29  ;;  %5704 = vrot.lane.b32.xlu1 %v5703_v38, %s10567_s12  ;;  %v5743_v38 = vpack.i.bf16 %v1156_v40, %v1154_v45  ;;  %v7266_v45 = vsel %vm624_vm1, %v649_v18, %v651_v20  ;;  %v5783_v40 = vpack.i.bf16 %v7249_v29, %v7246_v26  ;;  %v402_v26 = vld [vmem:[%s6909_s14 + $0x78] sm:$0xff] }
  0x6b   : > { %5709 = vrot.lane.b32.xlu0 %v5673_v30, %s10559_s13  ;;  %5714 = vrot.lane.b32.xlu1 %v7144_v4, %s10558_s15  ;;  %v1858_v30 = vrot.slane %v7160_v21, 6 }
  0x6d   : > { %v7202_v47 = vsel %vm10557_vm5, %v1856_v35, %v1858_v30  ;;  %v1360_v35 = vrot.slane %v7232_v17, 4 }
  0x6e   : > { %v5763_v3 = vpack.i.bf16 %v7202_v47, %v7197_v49  ;;  %v846_v47 = vrot.slane %v7220_v2, 2 }
  0x6f   : > { %5719 = vrot.lane.b32.xlu0 %v5718_v22, %s6786_s16  ;;  %5724 = vrot.lane.b32.xlu1 %v5723_v23, %s10582_s22  ;;  %v843_v22 = vsel %vm427_vm0, %v840_v25, %v842_v57  ;;  %v845_v23 = vsel %vm427_vm0, %v842_v57, %v844_v58  ;;  %v1860_v25 = vrot.slane %v7220_v2, 6  ;;  %v1361_v34 = vsel %vm445_vm3, %v1358_v14, %v1360_v35 }
  0x70   : > { %v7257_v42 = vpack.i.bf16 %v845_v23, %v843_v22  ;;  %v847_v14 = vsel %vm427_vm0, %v844_v58, %v846_v47 }
  0x71   : > { %v7284_v41 = vsel %vm10557_vm5, %v1858_v30, %v1860_v25  ;;  %v7302_v30 = vsel %vm10557_vm5, %v1860_v25, %v1862_v12  ;;  %v404_v25 = vld [vmem:[%s6909_s14 + $0x88] sm:$0xff] }
  0x72   : > { %v5803_v23 = vpack.i.bf16 %v7302_v30, %v7284_v41 }
  0x73   : > { %5729 = vrot.lane.b32.xlu0 %v5728_v39, %s10568_s25  ;;  %5734 = vrot.lane.b32.xlu1 %v7130_v37, %s10561_s30  ;;  %v463_v37 = vrot.slane %v400_v55, 6  ;;  %v1672_v39 = vrot.slane %v7232_v17, 5  ;;  %v489_v55 = vrot.slane %v7275_v52, 6 }
  0x75   : > { %v485_v36 = vsel %vm10557_vm5, %v463_v37, 0.0  ;;  %v7287_v48 = vsel %vm10557_vm5, %v462_v54, %v463_v37  ;;  %v1161_v54 = vrot.slane %v7220_v2, 3  ;;  %v7313_v37 = vpack.i.bf16 %v1361_v34, %v1359_v46 }
  0x76   : > { %10584 = vst [vmem:[#allocation11_spill] sm:$0xff] %v7287_v48  ;;  %v7292_v32 = vsel %vm445_vm3, %v485_v36, %v470_v31  ;;  %v1362_v57 = vrot.slane %v7287_v48, 4  ;;  %v1674_v13 = vrot.slane %v7287_v48, 5  ;;  %v1864_v18 = vrot.slane %v7287_v48, 6 }
  0x77   : > { %5739 = vrot.lane.b32.xlu0 %v7206_v56, %s10560_s29  ;;  %5744 = vrot.lane.b32.xlu1 %v5743_v38, %s10567_s12  ;;  %10585 = vst [vmem:[#allocation12_spill] sm:$0xff] %v7292_v32  ;;  %v1163_v38 = vrot.slane %v7232_v17, 3  ;;  %v10524_v61 = vrot.slane %v7292_v32, 4  ;;  %v10523_v16 = vrot.slane %v7292_v32, 5  ;;  %v7331_v29 = vsel %vm10557_vm5, 0.0, %v489_v55 }
  0x78   : > { %v1363_v46 = vsel %vm445_vm3, %v1360_v35, %v1362_v57  ;;  %v7342_v52 = vsel %vm10556_vm4, %v1672_v39, %v1674_v13  ;;  %v7353_v34 = vsel %vm10557_vm5, %v1862_v12, %v1864_v18  ;;  %v653_v35 = vrot.slane %v7220_v2, 1 }
  0x79   : > { %v7335_v36 = vsel %vm1132_vm2, %v1161_v54, %v1163_v38  ;;  %v1365_v58 = vsel %vm445_vm3, %v1362_v57, %v10524_v61  ;;  %v490_v57 = vrot.slane %v404_v25, 6  ;;  %v850_v2 = vrot.slane %v7287_v48, 2 }
  0x7a   : > { %v852_v0 = vrot.slane %v7292_v32, 2  ;;  %v7372_v49 = vpack.i.bf16 %v1365_v58, %v1363_v46  ;;  %v10590_v30 = vrot.slane %v7292_v32, 6 }
  0x7b   : > { %5749 = vrot.lane.b32.xlu0 %v7144_v4, %s10559_s13  ;;  %5754 = vrot.lane.b32.xlu1 %v7213_v59, %s10558_s15  ;;  %v7296_v4 = vsel %vm10556_vm4, %v1670_v24, %v1672_v39  ;;  %v7327_v24 = vsel %vm1132_vm2, %v1159_v62, %v1161_v54  ;;  %v7350_v62 = vsel %vm10556_vm4, %v1674_v13, %v10523_v16  ;;  %v7364_v54 = vld [vmem:[%s6909_s14 + $0x90] sm:$0xff] }
  0x7c   : > { %v5798_v22 = vpack.i.bf16 %v7296_v4, %v7272_v44  ;;  %v10525_v46 = vrot.slane %v7364_v54, 4  ;;  %v851_v21 = vsel %vm427_vm0, %v848_v53, %v850_v2 }
  0x7f   : > { %5759 = vrot.lane.b32.xlu0 %v5758_v60, %s6786_s16  ;;  %5764 = vrot.lane.b32.xlu1 %v5763_v3, %s10582_s22  ;;  %v10522_v60 = vrot.slane %v7292_v32, 6  ;;  %v849_v3 = vsel %vm427_vm0, %v846_v47, %v848_v53  ;;  %v655_v47 = vrot.slane %v7232_v17, 1 }
  0x80   : > { %v7366_v13 = vpack.i.bf16 %v849_v3, %v847_v14  ;;  %v7386_v3 = vsel %vm624_vm1, %v651_v20, %v653_v35  ;;  %v530_v14 = vsel %vm10557_vm5, %v490_v57, 0.0  ;;  %v853_v20 = vsel %vm427_vm0, %v850_v2, %v852_v0 }
  0x81   : > { %v7360_v39 = vsel %vm10557_vm5, %v1864_v18, %v10522_v60  ;;  %v7389_v25 = vsel %vm624_vm1, %v653_v35, %v655_v47  ;;  %v657_v18 = vrot.slane %v7287_v48, 1  ;;  %v491_v35 = vsel %vm10557_vm5, %v489_v55, %v490_v57 }
  0x82   : > { %v7425_v57 = vpack.i.bf16 %v853_v20, %v851_v21 }
  0x83   : > { %5769 = vrot.lane.b32.xlu0 %v5768_v33, %s10568_s25  ;;  %5774 = vrot.lane.b32.xlu1 %v7206_v56, %s10561_s30  ;;  %v471_v33 = vrot.slane %v402_v26, 4  ;;  %v553_v56 = vrot.slane %v7331_v29, 4  ;;  %v1165_v26 = vrot.slane %v7287_v48, 3  ;;  %v1167_v29 = vrot.slane %v7292_v32, 3 }
  0x84   : > { %v7434_v61 = vsel %vm624_vm1, %v655_v47, %v657_v18  ;;  %v10587_v47 = vrot.slane %v7292_v32, 4 }
  0x85   : > { %v7395_v58 = vsel %vm445_vm3, %v470_v31, %v471_v33  ;;  %v7408_v15 = vsel %vm1132_vm2, %v1163_v38, %v1165_v26  ;;  %v7411_v31 = vsel %vm1132_vm2, %v1165_v26, %v1167_v29  ;;  %v7423_v38 = vsel %vm445_vm3, %v530_v14, %v10525_v46  ;;  %v7445_v46 = vld [vmem:[%s6909_s14 + $0x98] sm:$0xff] }
  0x86   : > { %10586 = vst [vmem:[#allocation13_spill] sm:$0xff] %v7395_v58  ;;  %v1366_v53 = vrot.slane %v7395_v58, 4  ;;  %v1678_v2 = vrot.slane %v7395_v58, 5  ;;  %v1868_v60 = vrot.slane %v7395_v58, 6  ;;  %v854_v21 = vrot.slane %v7395_v58, 2 }
  0x87   : > { %5779 = vrot.lane.b32.xlu0 %v7257_v42, %s10560_s29  ;;  %5784 = vrot.lane.b32.xlu1 %v5783_v40, %s10567_s12  ;;  %v7398_v40 = vsel %vm445_vm3, %v471_v33, %v553_v56  ;;  %v10526_v33 = vrot.slane %v7292_v32, 1  ;;  %v1169_v20 = vrot.slane %v7395_v58, 3  ;;  %v10591_v7 = vrot.slane %v7423_v38, 4 }
  0x88   : > { %v1368_v55 = vrot.slane %v7398_v40, 4  ;;  %v1680_v26 = vrot.slane %v7398_v40, 5  ;;  %v1870_v16 = vrot.slane %v7398_v40, 6  ;;  %v1171_v4 = vrot.slane %v7398_v40, 3 }
  0x89   : > { %v7439_v14 = vsel %vm624_vm1, %v657_v18, %v10526_v33  ;;  %v1367_v18 = vsel %vm445_vm3, %v10587_v47, %v1366_v53  ;;  %v856_v33 = vrot.slane %v7398_v40, 2  ;;  %v855_v47 = vsel %vm427_vm0, %v852_v0, %v854_v21 }
  0x8a   : > { %v1369_v12 = vsel %vm445_vm3, %v1366_v53, %v1368_v55  ;;  %v7466_v44 = vsel %vm10556_vm4, %v1678_v2, %v1680_v26  ;;  %v7533_v53 = vld [vmem:[%s6909_s14 + $0xa0] sm:$0xff] }
  0x8b   : > { %5789 = vrot.lane.b32.xlu0 %v7213_v59, %s10559_s13  ;;  %5794 = vrot.lane.b32.xlu1 %v7313_v37, %s10558_s15  ;;  %v554_v59 = vrot.slane %v491_v35, 4  ;;  %v10588_v35 = vrot.slane %v7292_v32, 5  ;;  %v857_v0 = vsel %vm427_vm0, %v854_v21, %v856_v33 }
  0x8d   : > { %v7463_v5 = vsel %vm10556_vm4, %v10588_v35, %v1678_v2  ;;  %v7470_v41 = vsel %vm445_vm3, %v553_v56, %v554_v59  ;;  %v497_v35 = vrot.slane %v7445_v46, 4  ;;  %v7483_v2 = vpack.i.bf16 %v1369_v12, %v1367_v18 }
  0x8e   : > { %10589 = vst [vmem:[#allocation14_spill] sm:$0xff] %v7470_v41  ;;  %v7487_v56 = vsel %vm1132_vm2, %v1167_v29, %v1169_v20  ;;  %v1370_v29 = vrot.slane %v7470_v41, 4  ;;  %v1682_v46 = vrot.slane %v7470_v41, 5  ;;  %v1872_v18 = vrot.slane %v7470_v41, 6 }
  0x8f   : > { %5799 = vrot.lane.b32.xlu0 %v5798_v22, %s6786_s16  ;;  %5804 = vrot.lane.b32.xlu1 %v5803_v23, %s10582_s22  ;;  %v7475_v22 = vsel %vm10557_vm5, %v10590_v30, %v1868_v60  ;;  %v7478_v23 = vsel %vm10557_vm5, %v1868_v60, %v1870_v16  ;;  %v7492_v30 = vsel %vm445_vm3, %v554_v59, %v10591_v7  ;;  %v10594_v7 = vrot.slane %v7292_v32, 1 }
  0x90   : > { %v10592_v60 = vpack.i.bf16 %v7266_v45, %v7261_v43  ;;  %v7508_v59 = vsel %vm1132_vm2, %v1169_v20, %v1171_v4  ;;  %v661_v43 = vrot.slane %v7395_v58, 1  ;;  %v858_v20 = vrot.slane %v7470_v41, 2 }
  0x91   : > { %v10593_v12 = vpack.i.bf16 %v7335_v36, %v7327_v24  ;;  %v1173_v36 = vrot.slane %v7470_v41, 3  ;;  %v10596_v21 = vrot.slane %v7492_v30, 4  ;;  %v10599_v32 = vrot.slane %v7492_v30, 6 }
  0x92   : > { %v7538_v45 = vsel %vm624_vm1, %v10594_v7, %v661_v43  ;;  %v10597_v7 = vrot.slane %v7492_v30, 5  ;;  %v859_v17 = vsel %vm427_vm0, %v856_v33, %v858_v20 }
  0x93   : > { %5809 = vrot.lane.b32.xlu0 %v10592_v60, %s10568_s25  ;;  %5814 = vrot.lane.b32.xlu1 %v7257_v42, %s10561_s30  ;;  %v10535_v42 = vrot.slane %v7398_v40, 1  ;;  %v7515_v60 = vpack.i.bf16 %v857_v0, %v855_v47  ;;  %v1371_v47 = vsel %vm445_vm3, %v1368_v55, %v1370_v29  ;;  %v7530_v0 = vsel %vm10556_vm4, %v1680_v26, %v1682_v46 }
  0x94   : > { %v1373_v6 = vsel %vm445_vm3, %v1370_v29, %v10596_v21  ;;  %v7557_v9 = vsel %vm10556_vm4, %v1682_v46, %v10597_v7  ;;  %v7568_v58 = vsel %vm10557_vm5, %v1872_v18, %v10599_v32  ;;  %v10600_v29 = vrot.slane %v7492_v30, 2 }
  0x95   : > { %v7543_v24 = vsel %vm624_vm1, %v661_v43, %v10535_v42  ;;  %v7560_v43 = vsel %vm10557_vm5, %v1870_v16, %v1872_v18  ;;  %v10598_v42 = vrot.slane %v7364_v54, 4  ;;  %v10539_v46 = vrot.slane %v7533_v53, 2 }
  0x96   : > { %v861_v21 = vsel %vm427_vm0, %v858_v20, %v10600_v29  ;;  %v532_v54 = vsel %vm445_vm3, %v497_v35, 0.0  ;;  %v7583_v33 = vpack.i.bf16 %v1373_v6, %v1371_v47  ;;  %v10601_v18 = vrot.slane %v7492_v30, 3 }
  0x97   : > { %5819 = vrot.lane.b32.xlu0 %v7366_v13, %s10560_s29  ;;  %5824 = vrot.lane.b32.xlu1 %v10593_v12, %s10567_s12  ;;  %v498_v12 = vsel %vm445_vm3, %v10598_v42, %v497_v35  ;;  %v7586_v42 = vsel %vm1132_vm2, %v1171_v4, %v1173_v36  ;;  %v7601_v47 = vpack.i.bf16 %v861_v21, %v859_v17  ;;  %v665_v17 = vrot.slane %v7470_v41, 1 }
  0x98   : > { %v7591_v20 = vsel %vm1132_vm2, %v1173_v36, %v10601_v18  ;;  %v7609_v18 = vsel %vm427_vm0, %v532_v54, %v10539_v46  ;;  %v10603_v21 = vpack.i.bf16 %v7350_v62, %v7342_v52  ;;  %v10604_v6 = vpack.i.bf16 %v7360_v39, %v7353_v34  ;;  %v7635_v62 = vld [vmem:[%s6909_s14 + $0xa8] sm:$0xff] }
  0x99   : > { %v7547_v55 = vpop.permute.xlu0 %5539  ;;  %v7549_v26 = vpop.permute.xlu1 %5549 }
  0x9a   : > { %10595 = vst [vmem:[#allocation15_spill] sm:$0xff] %v7549_v26  ;;  %v5541_v16 = vunpack.i.l.bf16 %v7547_v55  ;;  %v5552_v35 = vunpack.i.h.bf16 %v7549_v26  ;;  %v10606_v34 = vunpack.i.l.bf16 %v7549_v26 }
  0x9b   : > { %5829 = vrot.lane.b32.xlu0 %v7313_v37, %s10559_s13  ;;  %5834 = vrot.lane.b32.xlu1 %v7372_v49, %s10558_s15  ;;  %v558_v37 = vrot.slane %v498_v12, 4 }
  0x9c   : > { %v2026_v32 = vsel %vm2025_vm7, 0.0, %v5541_v16  ;;  %v10605_v16 = vrot.slane %v7423_v38, 4 }
  0x9d   : > { %v7593_v7 = vpop.permute.xlu0 %5544  ;;  %v7595_v29 = vpop.permute.xlu1 %5554 }
  0x9e   : > { %10602 = vst [vmem:[#allocation16_spill] sm:$0xff] %v7595_v29  ;;  %v5546_v4 = vunpack.i.l.bf16 %v7593_v7  ;;  %v5557_v36 = vunpack.i.h.bf16 %v7595_v29  ;;  %v7630_v12 = vsel %vm445_vm3, %v10605_v16, %v558_v37  ;;  %v5547_v48 = vunpack.i.h.bf16 %v7593_v7 }
  0x9f   : > { %5839 = vrot.lane.b32.xlu0 %v10603_v21, %s6786_s16  ;;  %5844 = vrot.lane.b32.xlu1 %v10604_v6, %s10582_s22  ;;  %v10608_v21 = vunpack.i.l.bf16 %v7595_v29  ;;  %v10614_v7 = vrot.slane %v7492_v30, 4 }
  0xa0   : > { %v7625_v46 = vsel %vm2065_vm8, %v2026_v32, %v5546_v4  ;;  %v1374_v4 = vrot.slane %v7630_v12, 4 }
  0xa1   : > { %v2106_v39 = vsel %vm10566_vm9, %v7625_v46, %v10606_v34  ;;  %v2107_v32 = vsel %vm10566_vm9, %v7625_v46, %v5552_v35  ;;  %v7643_v6 = vpop.permute.xlu0 %5559  ;;  %v5565_v38 = vpop.permute.xlu1 %5564  ;;  %v10609_v35 = vpack.i.bf16 %v7389_v25, %v7386_v3  ;;  %v5542_v3 = vunpack.i.h.bf16 %v7547_v55 }
  0xa2   : > { %10607 = vst [vmem:[#allocation17_spill] sm:$0xff] %v7643_v6  ;;  %v2148_v16 = vsel %vm2147_vm10, %v2106_v39, %v10608_v21  ;;  %v2149_v54 = vsel %vm2147_vm10, %v2107_v32, %v5557_v36  ;;  %v5562_v52 = vunpack.i.h.bf16 %v7643_v6  ;;  %v10544_v26 = vunpack.i.l.bf16 %v7643_v6 }
  0xa3   : > { %v5567_v34 = vunpack.i.h.bf16 %v5565_v38  ;;  %v5566_v41 = vunpack.i.l.bf16 %v5565_v38  ;;  %5849 = vrot.lane.b32.xlu0 %v10609_v35, %s10568_s25  ;;  %5854 = vrot.lane.b32.xlu1 %v7366_v13, %s10561_s30  ;;  %v1686_v38 = vrot.slane %v7630_v12, 5  ;;  %v10610_v13 = vrot.slane %v7609_v18, 4 }
  0xa4   : > { %v2190_v36 = vsel %vm10565_vm11, %v2148_v16, %v10544_v26  ;;  %v2191_v32 = vsel %vm10565_vm11, %v2149_v54, %v5562_v52  ;;  %v10611_v39 = vrot.slane %v7398_v40, 1  ;;  %v10612_v54 = vrot.slane %v7492_v30, 1 }
  0xa5   : > { %v5570_v25 = vpop.permute.xlu0 %5569  ;;  %v5575_v35 = vpop.permute.xlu1 %5574  ;;  %v7670_v29 = vsel %vm445_vm3, %v558_v37, %v10610_v13  ;;  %v2233_v51 = vsel %vm10564_vm12, %v2191_v32, %v5567_v34  ;;  %v2232_v37 = vsel %vm10564_vm12, %v2190_v36, %v5566_v41  ;;  %v1375_v34 = vsel %vm445_vm3, %v10614_v7, %v1374_v4 }
  0xa6   : > { %v7675_v6 = vsel %vm624_vm1, %v10611_v39, %v665_v17  ;;  %v7680_v52 = vsel %vm624_vm1, %v665_v17, %v10612_v54  ;;  %v5572_v16 = vunpack.i.h.bf16 %v5570_v25  ;;  %v5571_v26 = vunpack.i.l.bf16 %v5570_v25 }
  0xa7   : > { %v5577_v55 = vunpack.i.h.bf16 %v5575_v35  ;;  %v5576_v21 = vunpack.i.l.bf16 %v5575_v35  ;;  %5859 = vrot.lane.b32.xlu0 %v7425_v57, %s10560_s29  ;;  %v10613_v39 = vpack.i.bf16 %v7411_v31, %v7408_v15  ;;  %v862_v17 = vrot.slane %v7630_v12, 2 }
  0xa8   : > { %v2274_v25 = vsel %vm10563_vm13, %v2232_v37, %v5571_v26  ;;  %v2275_v35 = vsel %vm10563_vm13, %v2233_v51, %v5572_v16  ;;  %v10547_v15 = vrot.slane %v7670_v29, 4  ;;  %v10548_v31 = vrot.slane %v7670_v29, 5 }
  0xa9   : > { %5864 = vrot.lane.b32.xlu1 %v10613_v39, %s10567_s12  ;;  %v2316_v36 = vsel %vm10555_vm14, %v2274_v25, %v5576_v21  ;;  %v2317_v32 = vsel %vm10555_vm14, %v2275_v35, %v5577_v55  ;;  %v5580_v13 = vpop.permute.xlu0 %5579  ;;  %v5585_v54 = vpop.permute.xlu1 %5584  ;;  %v2027_v26 = vsel %vm2025_vm7, 0.0, %v5542_v3  ;;  %v10615_v16 = vrot.slane %v7492_v30, 5 }
  0xaa   : > { %v5582_v37 = vunpack.i.h.bf16 %v5580_v13  ;;  %v5581_v51 = vunpack.i.l.bf16 %v5580_v13  ;;  %v2067_v7 = vsel %vm2065_vm8, %v2027_v26, %v5547_v48  ;;  %v5587_v21 = vunpack.i.h.bf16 %v5585_v54 }
  0xab   : > { %v7706_v39 = vsel %vm10556_vm4, %v10615_v16, %v1686_v38  ;;  %v5586_v25 = vunpack.i.l.bf16 %v5585_v54  ;;  %5869 = vrot.lane.b32.xlu0 %v7372_v49, %s10559_s13  ;;  %v2357_v55 = vpack.c.bf16 %v2317_v32, %v2316_v36  ;;  %v10616_v13 = vrot.slane %v7630_v12, 6 }
  0xac   : > { %v2109_v3 = vsel %vm10566_vm9, %v2067_v7, %v5582_v37  ;;  %v2108_v35 = vsel %vm10566_vm9, %v7625_v46, %v5581_v51  ;;  %v10617_v16 = vrot.slane %v7492_v30, 6  ;;  %v1377_v32 = vsel %vm445_vm3, %v1374_v4, %v10547_v15 }
  0xad   : > { %5874 = vrot.lane.b32.xlu1 %v7483_v2, %s10558_s15  ;;  %5394 = vmatmul.mubr.msk.bf16.vlgmr.msra.gmra.mrb[0].mxu0 %vm10562_vm15, %v2357_v55  ;;  %v5590_v49 = vpop.permute.xlu0 %5589  ;;  %v5595_v36 = vpop.permute.xlu1 %5594  ;;  %v7731_v46 = vsel %vm10556_vm4, %v1686_v38, %v10548_v31  ;;  %v10618_v37 = vrot.slane %v7492_v30, 2  ;;  %v10620_v4 = vrot.slane %v7635_v62, 2  ;;  %v10621_v15 = vrot.slane %v7533_v53, 2 }
  0xae   : > { %v7721_v48 = vsel %vm10557_vm5, %v10617_v16, %v10616_v13  ;;  %v5592_v7 = vunpack.i.h.bf16 %v5590_v49  ;;  %v5591_v55 = vunpack.i.l.bf16 %v5590_v49  ;;  %v10619_v13 = vmov 0.0  }
  0xaf   : > { %v863_v51 = vsel %vm427_vm0, %v10618_v37, %v862_v17  ;;  %5397 = vmatprep.mubr.msk.bf16.mxu0 %vm6788_vm6, %v10619_v13  ;;  %v10550_v16 = vrot.slane %v7670_v29, 2  ;;  %v505_v38 = vsel %vm427_vm0, %v10621_v15, %v10620_v4  ;;  %v2150_v31 = vsel %vm2147_vm10, %v2108_v35, %v5586_v25 }
  0xb0   : > { %v2151_v26 = vsel %vm2147_vm10, %v2109_v3, %v5587_v21  ;;  %v5597_v54 = vunpack.i.h.bf16 %v5595_v36  ;;  %v5596_v41 = vunpack.i.l.bf16 %v5595_v36  ;;  %v10622_v49 = vpack.i.bf16 %v7466_v44, %v7463_v5 }
  0xb1   : > { %v10623_v37 = vpack.i.bf16 %v7478_v23, %v7475_v22  ;;  %v2192_v53 = vsel %vm10565_vm11, %v2150_v31, %v5591_v55  ;;  %v2193_v15 = vsel %vm10565_vm11, %v2151_v26, %v5592_v7  ;;  %v10624_v25 = vrot.slane %v7630_v12, 3  ;;  %v5600_v44 = vpop.permute.xlu0 %5599  ;;  %v5605_v36 = vpop.permute.xlu1 %5604 }
  0xb2   : > { %5879 = vrot.lane.b32.xlu0 %v10622_v49, %s6786_s16  ;;  %v10625_v21 = vrot.slane %v7492_v30, 3  ;;  %v10626_v35 = vmov %v10620_v4  ;;  %v7770_v22 = vpack.i.bf16 %v1377_v32, %v1375_v34  ;;  %v10627_v23 = vrot.slane %v7670_v29, 6 }
  0xb3   : > { %5884 = vrot.lane.b32.xlu1 %v10623_v37, %s10582_s22  ;;  %v7768_v5 = vsel %vm427_vm0, %v10626_v35, 0.0  ;;  %v10628_v31 = vrot.slane %v7630_v12, 6  ;;  %v10549_v7 = vrot.slane %v7670_v29, 3  ;;  %v562_v55 = vrot.slane %v505_v38, 4 }
  0xb4   : > { %v7763_v3 = vsel %vm1132_vm2, %v10625_v21, %v10624_v25  ;;  %v5602_v4 = vunpack.i.h.bf16 %v5600_v44  ;;  %v5601_v49 = vunpack.i.l.bf16 %v5600_v44  ;;  %v5607_v62 = vunpack.i.h.bf16 %v5605_v36 }
  0xb5   : > { %v7777_v26 = vsel %vm10557_vm5, %v10628_v31, %v10627_v23  ;;  %v5606_v37 = vunpack.i.l.bf16 %v5605_v36  ;;  %v2234_v25 = vsel %vm10564_vm12, %v2192_v53, %v5596_v41  ;;  %v2235_v21 = vsel %vm10564_vm12, %v2193_v15, %v5597_v54  ;;  %v5610_v15 = vpop.permute.xlu0 %5609  ;;  %v5615_v35 = vpop.permute.xlu1 %5614 }
  0xb6   : > { %v10629_v34 = vpack.i.bf16 %v7439_v14, %v7434_v61  ;;  %v865_v32 = vsel %vm427_vm0, %v862_v17, %v10550_v16  ;;  %v10551_v38 = vrot.slane %v7768_v5, 4  ;;  %v2276_v41 = vsel %vm10563_vm13, %v2234_v25, %v5601_v49 }
  0xb7   : > { %5894 = vrot.lane.b32.xlu1 %v7425_v57, %s10561_s30  ;;  %v2277_v54 = vsel %vm10563_vm13, %v2235_v21, %v5602_v4  ;;  %v2318_v57 = vsel %vm10555_vm14, %v2276_v41, %v5606_v37  ;;  %v10630_v17 = vrot.slane %v7630_v12, 3  ;;  %v5612_v36 = vunpack.i.h.bf16 %v5610_v15  ;;  %v7815_v37 = vld [vmem:[%s6909_s14 + $0xb0] sm:$0xff] }
  0xb8   : > { %5889 = vrot.lane.b32.xlu0 %v10629_v34, %s10568_s25  ;;  %v2319_v14 = vsel %vm10555_vm14, %v2277_v54, %v5607_v62  ;;  %v5611_v23 = vunpack.i.l.bf16 %v5610_v15  ;;  %v7807_v31 = vpack.i.bf16 %v865_v32, %v863_v51  ;;  %v10631_v4 = vrot.slane %v7609_v18, 4  ;;  %v7818_v62 = vld [vmem:[%s6909_s14 + $0xb8] sm:$0xff] }
  0xb9   : > { %v7805_v44 = vsel %vm1132_vm2, %v10630_v17, %v10549_v7  ;;  %v5617_v25 = vunpack.i.h.bf16 %v5615_v35  ;;  %v5616_v21 = vunpack.i.l.bf16 %v5615_v35  ;;  %v10632_v34 = vpack.i.bf16 %v7508_v59, %v7487_v56  ;;  %v5620_v59 = vpop.permute.xlu0 %5619 }
  0xba   : > { %v7812_v49 = vsel %vm445_vm3, %v10631_v4, %v562_v55  ;;  %v2358_v51 = vpack.c.bf16 %v2319_v14, %v2318_v57  ;;  %v7829_v18 = vsel %vm445_vm3, %v562_v55, %v10551_v38  ;;  %v2029_v32 = vsel %vm2025_vm7, %v6929_v10, %v5612_v36  ;;  %v5625_v57 = vpop.permute.xlu1 %5624  ;;  %v7847_v36 = vld [vmem:[%s6909_s14 + $0xc0] sm:$0xff] }
  0xbb   : > { %5904 = vrot.lane.b32.xlu1 %v10632_v34, %s10567_s12  ;;  %v2028_v41 = vsel %vm2025_vm7, %v6923_v8, %v5611_v23  ;;  %v669_v56 = vrot.slane %v7630_v12, 1  ;;  %v5622_v10 = vunpack.i.h.bf16 %v5620_v59  ;;  %v5621_v35 = vunpack.i.l.bf16 %v5620_v59  ;;  %v7850_v23 = vld [vmem:[%s6909_s14 + $0xc8] sm:$0xff] }
  0xbc   : > { %5899 = vrot.lane.b32.xlu0 %v7515_v60, %s10560_s29  ;;  %5398 = vmatmul.mubr.msk.bf16.gmra.mrb[4].mxu0 %vm10562_vm15, %v2358_v51  ;;  %v1378_v8 = vrot.slane %v7812_v49, 4  ;;  %v1380_v17 = vrot.slane %v7829_v18, 4  ;;  %v2068_v4 = vsel %vm2065_vm8, %v2028_v41, %v5616_v21  ;;  %v2069_v34 = vsel %vm2065_vm8, %v2029_v32, %v5617_v25 }
  0xbd   : > { %5401 = vmatprep.mubr.msk.bf16.mxu0 %vm6788_vm6, %v10619_v13  ;;  %v5627_v51 = vunpack.i.h.bf16 %v5625_v57  ;;  %v5626_v54 = vunpack.i.l.bf16 %v5625_v57  ;;  %v2110_v59 = vsel %vm10566_vm9, %v2068_v4, %v5621_v35  ;;  %v2111_v61 = vsel %vm10566_vm9, %v2069_v34, %v5622_v10  ;;  %v5630_v16 = vpop.permute.xlu0 %5629 }
  0xbe   : > { %v1690_v53 = vrot.slane %v7812_v49, 5  ;;  %v1692_v7 = vrot.slane %v7829_v18, 5  ;;  %v5635_v21 = vpop.permute.xlu1 %5634  ;;  %v1880_v25 = vrot.slane %v7812_v49, 6  ;;  %v10633_v32 = vrot.slane %v7492_v30, 1 }
  0xbf   : > { %5914 = vrot.lane.b32.xlu1 %v7583_v33, %s10558_s15  ;;  %v511_v57 = vrot.slane %v7850_v23, 6  ;;  %v5632_v35 = vunpack.i.h.bf16 %v5630_v16  ;;  %v5631_v4 = vunpack.i.l.bf16 %v5630_v16  ;;  %v10634_v10 = vrot.slane %v7670_v29, 4 }
  0xc0   : > { %5909 = vrot.lane.b32.xlu0 %v7483_v2, %s10559_s13  ;;  %v7866_v41 = vsel %vm624_vm1, %v10633_v32, %v669_v56  ;;  %v1381_v15 = vsel %vm445_vm3, %v1378_v8, %v1380_v17  ;;  %v2152_v38 = vsel %vm2147_vm10, %v2110_v59, %v5626_v54  ;;  %v2153_v14 = vsel %vm2147_vm10, %v2111_v61, %v5627_v51 }
  0xc1   : > { %v1379_v34 = vsel %vm445_vm3, %v10634_v10, %v1378_v8  ;;  %v5637_v32 = vunpack.i.h.bf16 %v5635_v21  ;;  %v5636_v55 = vunpack.i.l.bf16 %v5635_v21  ;;  %v10635_v2 = vpack.i.bf16 %v7557_v9, %v7530_v0  ;;  %v5640_v9 = vpop.permute.xlu0 %5639 }
  0xc2   : > { %v10636_v16 = vpack.i.bf16 %v7568_v58, %v7560_v43  ;;  %v2194_v10 = vsel %vm10565_vm11, %v2152_v38, %v5631_v4  ;;  %v2195_v8 = vsel %vm10565_vm11, %v2153_v14, %v5632_v35  ;;  %v10637_v54 = vrot.slane %v7670_v29, 5  ;;  %v5645_v0 = vpop.permute.xlu1 %5644 }
  0xc3   : > { %v7896_v51 = vsel %vm10556_vm4, %v1690_v53, %v1692_v7  ;;  %v7898_v59 = vpack.i.bf16 %v1381_v15, %v1379_v34  ;;  %v1882_v58 = vrot.slane %v7829_v18, 6  ;;  %v10638_v43 = vrot.slane %v7670_v29, 1 }
  0xc4   : > { %5919 = vrot.lane.b32.xlu0 %v10635_v2, %s6786_s16  ;;  %5924 = vrot.lane.b32.xlu1 %v10636_v16, %s10582_s22  ;;  %v7891_v61 = vsel %vm10556_vm4, %v10637_v54, %v1690_v53  ;;  %v5642_v14 = vunpack.i.h.bf16 %v5640_v9  ;;  %v5641_v21 = vunpack.i.l.bf16 %v5640_v9  ;;  %v5647_v2 = vunpack.i.h.bf16 %v5645_v0 }
  0xc5   : > { %v7904_v38 = vsel %vm624_vm1, %v669_v56, %v10638_v43  ;;  %v5646_v35 = vunpack.i.l.bf16 %v5645_v0  ;;  %v2236_v4 = vsel %vm10564_vm12, %v2194_v10, %v5636_v55  ;;  %v2237_v53 = vsel %vm10564_vm12, %v2195_v8, %v5637_v32  ;;  %v5650_v10 = vpop.permute.xlu0 %5649 }
  0xc6   : > { %v10639_v15 = vpack.i.bf16 %v7543_v24, %v7538_v45  ;;  %v866_v34 = vrot.slane %v7812_v49, 2  ;;  %v2278_v16 = vsel %vm10563_vm13, %v2236_v4, %v5641_v21  ;;  %v2279_v54 = vsel %vm10563_vm13, %v2237_v53, %v5642_v14  ;;  %v5655_v8 = vpop.permute.xlu1 %5654 }
  0xc7   : > { %v10640_v55 = vrot.slane %v7670_v29, 6  ;;  %v868_v45 = vrot.slane %v7829_v18, 2  ;;  %v2320_v24 = vsel %vm10555_vm14, %v2278_v16, %v5646_v35  ;;  %v1181_v9 = vrot.slane %v7812_v49, 3 }
  0xc8   : > { %5929 = vrot.lane.b32.xlu0 %v10639_v15, %s10568_s25  ;;  %5934 = vrot.lane.b32.xlu1 %v7515_v60, %s10561_s30  ;;  %v2321_v60 = vsel %vm10555_vm14, %v2279_v54, %v5647_v2  ;;  %v10552_v0 = vrot.slane %v7829_v18, 3  ;;  %v5652_v43 = vunpack.i.h.bf16 %v5650_v10  ;;  %v5651_v14 = vunpack.i.l.bf16 %v5650_v10  ;;  %v6710_v10 = vld [vmem:[%s6909_s14 + $0x10] sm:$0xff] }
  0xc9   : > { %v7922_v32 = vsel %vm10557_vm5, %v10640_v55, %v1880_v25  ;;  %v7932_v21 = vsel %vm10557_vm5, %v1880_v25, %v1882_v58  ;;  %v10641_v4 = vrot.slane %v7815_v37, 4  ;;  %v10642_v35 = vrot.slane %v7768_v5, 4 }
  0xca   : > { %v5657_v2 = vunpack.i.h.bf16 %v5655_v8  ;;  %v5656_v15 = vunpack.i.l.bf16 %v5655_v8  ;;  %v10643_v16 = vpack.i.bf16 %v7591_v20, %v7586_v42  ;;  %v2359_v54 = vpack.c.bf16 %v2321_v60, %v2320_v24  ;;  %v5660_v24 = vpop.permute.xlu0 %5659  ;;  %v5665_v37 = vpop.permute.xlu1 %5664 }
  0xcb   : > { %v7939_v53 = vsel %vm445_vm3, %v10642_v35, %v10641_v4  ;;  %v10644_v25 = vrot.slane %v7818_v62, 4  ;;  %v10645_v55 = vmov %v10641_v4  ;;  %v2031_v4 = vsel %vm2025_vm7, %v6710_v10, %v5652_v43 }
  0xcc   : > { %5939 = vrot.lane.b32.xlu0 %v7601_v47, %s10560_s29  ;;  %5944 = vrot.lane.b32.xlu1 %v10643_v16, %s10567_s12  ;;  %v2030_v8 = vsel %vm2025_vm7, %v6932_v11, %v5651_v14  ;;  %v10646_v42 = vrot.slane %v7670_v29, 2  ;;  %v869_v43 = vsel %vm427_vm0, %v866_v34, %v868_v45  ;;  %v10647_v11 = vrot.slane %v7670_v29, 3 }
  0xcd   : > { %v7952_v5 = vsel %vm445_vm3, %v10645_v55, %v10644_v25  ;;  %5402 = vmatmul.mubr.msk.bf16.gmra.mrb[8].mxu0 %vm10562_vm15, %v2359_v54  ;;  %v7977_v16 = vsel %vm1132_vm2, %v1181_v9, %v10552_v0  ;;  %v5662_v54 = vunpack.i.h.bf16 %v5660_v24  ;;  %v5661_v25 = vunpack.i.l.bf16 %v5660_v24 }
  0xce   : > { %v867_v20 = vsel %vm427_vm0, %v10646_v42, %v866_v34  ;;  %v7972_v14 = vsel %vm1132_vm2, %v10647_v11, %v1181_v9  ;;  %5405 = vmatprep.mubr.msk.bf16.mxu0 %vm6788_vm6, %v10619_v13  ;;  %v1382_v55 = vrot.slane %v7939_v53, 4  ;;  %v1384_v10 = vrot.slane %v7952_v5, 4  ;;  %v5670_v60 = vpop.permute.xlu0 %5669  ;;  %v5675_v56 = vpop.permute.xlu1 %5674 }
  0xcf   : > { %v2070_v34 = vsel %vm2065_vm8, %v2030_v8, %v5656_v15  ;;  %v2071_v42 = vsel %vm2065_vm8, %v2031_v4, %v5657_v2  ;;  %v5667_v11 = vunpack.i.h.bf16 %v5665_v37  ;;  %v5666_v35 = vunpack.i.l.bf16 %v5665_v37 }
  0xd0   : > { %5949 = vrot.lane.b32.xlu0 %v7583_v33, %s10559_s13  ;;  %5954 = vrot.lane.b32.xlu1 %v7770_v22, %s10558_s15  ;;  %v2112_v9 = vsel %vm10566_vm9, %v2070_v34, %v5661_v25  ;;  %v2113_v24 = vsel %vm10566_vm9, %v2071_v42, %v5662_v54  ;;  %v7991_v0 = vpack.i.bf16 %v869_v43, %v867_v20  ;;  %v1694_v2 = vrot.slane %v7939_v53, 5 }
  0xd1   : > { %v1696_v4 = vrot.slane %v7952_v5, 5  ;;  %v1884_v33 = vrot.slane %v7939_v53, 6  ;;  %v5672_v8 = vunpack.i.h.bf16 %v5670_v60  ;;  %v5671_v37 = vunpack.i.l.bf16 %v5670_v60 }
  0xd2   : > { %v1383_v25 = vsel %vm445_vm3, %v1380_v17, %v1382_v55  ;;  %v1385_v20 = vsel %vm445_vm3, %v1382_v55, %v1384_v10  ;;  %v2154_v43 = vsel %vm2147_vm10, %v2112_v9, %v5666_v35  ;;  %v2155_v54 = vsel %vm2147_vm10, %v2113_v24, %v5667_v11  ;;  %v5680_v9 = vpop.permute.xlu0 %5679 }
  0xd3   : > { %v5677_v34 = vunpack.i.h.bf16 %v5675_v56  ;;  %v5676_v42 = vunpack.i.l.bf16 %v5675_v56  ;;  %v10648_v15 = vpack.i.bf16 %v7731_v46, %v7706_v39  ;;  %v10649_v60 = vpack.i.bf16 %v7777_v26, %v7721_v48  ;;  %v5685_v56 = vpop.permute.xlu1 %5684 }
  0xd4   : > { %v2196_v17 = vsel %vm10565_vm11, %v2154_v43, %v5671_v37  ;;  %v2197_v55 = vsel %vm10565_vm11, %v2155_v54, %v5672_v8  ;;  %v1886_v35 = vrot.slane %v7952_v5, 6  ;;  %v673_v11 = vrot.slane %v7812_v49, 1 }
  0xd5   : > { %5959 = vrot.lane.b32.xlu0 %v10648_v15, %s6786_s16  ;;  %5964 = vrot.lane.b32.xlu1 %v10649_v60, %s10582_s22  ;;  %v8018_v24 = vpack.i.bf16 %v1385_v20, %v1383_v25  ;;  %v8023_v39 = vsel %vm10556_vm4, %v1692_v7, %v1694_v2  ;;  %v8028_v48 = vsel %vm10556_vm4, %v1694_v2, %v1696_v4  ;;  %v5682_v26 = vunpack.i.h.bf16 %v5680_v9 }
  0xd6   : > { %v8033_v46 = vsel %vm10557_vm5, %v1882_v58, %v1884_v33  ;;  %v5681_v15 = vunpack.i.l.bf16 %v5680_v9  ;;  %v5687_v8 = vunpack.i.h.bf16 %v5685_v56  ;;  %v5686_v37 = vunpack.i.l.bf16 %v5685_v56 }
  0xd7   : > { %v2238_v25 = vsel %vm10564_vm12, %v2196_v17, %v5676_v42  ;;  %v2239_v20 = vsel %vm10564_vm12, %v2197_v55, %v5677_v34  ;;  %v10650_v7 = vpack.i.bf16 %v7680_v52, %v7675_v6  ;;  %v10651_v58 = vrot.slane %v7847_v36, 6  ;;  %v5690_v17 = vpop.permute.xlu0 %5689  ;;  %v5695_v36 = vpop.permute.xlu1 %5694 }
  0xd8   : > { %v2280_v34 = vsel %vm10563_vm13, %v2238_v25, %v5681_v15  ;;  %v2281_v42 = vsel %vm10563_vm13, %v2239_v20, %v5682_v26  ;;  %v8058_v6 = vsel %vm10557_vm5, %v1884_v33, %v1886_v35  ;;  %v870_v55 = vrot.slane %v7939_v53, 2 }
  0xd9   : > { %5969 = vrot.lane.b32.xlu0 %v10650_v7, %s10568_s25  ;;  %5974 = vrot.lane.b32.xlu1 %v7601_v47, %s10561_s30  ;;  %v8048_v2 = vsel %vm10557_vm5, %v10651_v58, %v511_v57  ;;  %v10652_v43 = vmov %v10651_v58  ;;  %v675_v47 = vrot.slane %v7829_v18, 1  ;;  %v2322_v52 = vsel %vm10555_vm14, %v2280_v34, %v5686_v37 }
  0xda   : > { %v535_v54 = vsel %vm10557_vm5, 0.0, %v10652_v43  ;;  %v2323_v60 = vsel %vm10555_vm14, %v2281_v42, %v5687_v8  ;;  %v10554_v9 = vrot.slane %v7952_v5, 2  ;;  %v5692_v56 = vunpack.i.h.bf16 %v5690_v17  ;;  %v6711_v43 = vld [vmem:[%s6909_s14 + $0x18] sm:$0xff] }
  0xdb   : > { %v5691_v26 = vunpack.i.l.bf16 %v5690_v17  ;;  %v570_v15 = vrot.slane %v535_v54, 4  ;;  %v10553_v25 = vrot.slane %v8048_v2, 4  ;;  %v5697_v33 = vunpack.i.h.bf16 %v5695_v36 }
  0xdc   : > { %v5696_v20 = vunpack.i.l.bf16 %v5695_v36  ;;  %v10653_v8 = vpack.i.bf16 %v7805_v44, %v7763_v3  ;;  %v2360_v37 = vpack.c.bf16 %v2323_v60, %v2322_v52  ;;  %v2033_v58 = vsel %vm2025_vm7, %v7034_v28, %v5692_v56  ;;  %v5700_v3 = vpop.permute.xlu0 %5699  ;;  %v5705_v44 = vpop.permute.xlu1 %5704 }
  0xdd   : > { %5979 = vrot.lane.b32.xlu0 %v7807_v31, %s10560_s29  ;;  %v2032_v54 = vsel %vm2025_vm7, %v6711_v43, %v5691_v26  ;;  %v10654_v42 = vrot.slane %v7670_v29, 1  ;;  %v8089_v52 = vsel %vm624_vm1, %v673_v11, %v675_v47  ;;  %v871_v28 = vsel %vm427_vm0, %v868_v45, %v870_v55 }
  0xde   : > { %5984 = vrot.lane.b32.xlu1 %v10653_v8, %s10567_s12  ;;  %5406 = vmatmul.mubr.msk.bf16.gmra.mrb[12].mxu0 %vm10562_vm15, %v2360_v37  ;;  %v873_v60 = vsel %vm427_vm0, %v870_v55, %v10554_v9  ;;  %v1185_v36 = vrot.slane %v7939_v53, 3  ;;  %v5702_v56 = vunpack.i.h.bf16 %v5700_v3  ;;  %v5701_v26 = vunpack.i.l.bf16 %v5700_v3 }
  0xdf   : > { %v8083_v17 = vsel %vm624_vm1, %v10654_v42, %v673_v11  ;;  %5409 = vmatprep.mubr.msk.bf16.mxu0 %vm6788_vm6, %v10619_v13  ;;  %v10655_v8 = vrot.slane %v7818_v62, 4  ;;  %v8108_v45 = vsel %vm445_vm3, %v570_v15, %v10553_v25  ;;  %v2072_v37 = vsel %vm2065_vm8, %v2032_v54, %v5696_v20 }
  0xe0   : > { %v2073_v55 = vsel %vm2065_vm8, %v2033_v58, %v5697_v33  ;;  %v5707_v43 = vunpack.i.h.bf16 %v5705_v44  ;;  %v5706_v42 = vunpack.i.l.bf16 %v5705_v44  ;;  %v2114_v62 = vsel %vm10566_vm9, %v2072_v37, %v5701_v26  ;;  %v5715_v25 = vpop.permute.xlu1 %5714 }
  0xe1   : > { %v8103_v11 = vsel %vm445_vm3, %v10655_v8, %v570_v15  ;;  %5989 = vrot.lane.b32.xlu0 %v7770_v22, %s10559_s13  ;;  %v2115_v3 = vsel %vm10566_vm9, %v2073_v55, %v5702_v56  ;;  %v1187_v8 = vrot.slane %v7952_v5, 3  ;;  %v5710_v15 = vpop.permute.xlu0 %5709  ;;  %v1388_v33 = vrot.slane %v8108_v45, 4 }
  0xe2   : > { %5994 = vrot.lane.b32.xlu1 %v7898_v59, %s10558_s15  ;;  %v1386_v20 = vrot.slane %v8103_v11, 4  ;;  %v1698_v58 = vrot.slane %v8103_v11, 5  ;;  %v1700_v54 = vrot.slane %v8108_v45, 5  ;;  %v5712_v22 = vunpack.i.h.bf16 %v5710_v15 }
  0xe3   : > { %v5711_v44 = vunpack.i.l.bf16 %v5710_v15  ;;  %v8125_v26 = vpack.i.bf16 %v873_v60, %v871_v28  ;;  %v2156_v56 = vsel %vm2147_vm10, %v2114_v62, %v5706_v42  ;;  %v2157_v37 = vsel %vm2147_vm10, %v2115_v3, %v5707_v43 }
  0xe4   : > { %v5717_v55 = vunpack.i.h.bf16 %v5715_v25  ;;  %v5716_v7 = vunpack.i.l.bf16 %v5715_v25  ;;  %v10656_v9 = vpack.i.bf16 %v7896_v51, %v7891_v61  ;;  %v10657_v15 = vpack.i.bf16 %v7932_v21, %v7922_v32  ;;  %v5725_v51 = vpop.permute.xlu1 %5724 }
  0xe5   : > { %v2198_v34 = vsel %vm10565_vm11, %v2156_v56, %v5711_v44  ;;  %v2199_v28 = vsel %vm10565_vm11, %v2157_v37, %v5712_v22  ;;  %v10658_v60 = vrot.slane %v7829_v18, 3  ;;  %v8147_v25 = vsel %vm1132_vm2, %v1185_v36, %v1187_v8  ;;  %v5720_v61 = vpop.permute.xlu0 %5719  ;;  %v413_v56 = vld [vmem:[%s6909_s14 + $0xd0] sm:$0xff]  ;;  %v8178_v37 = vld [vmem:[%s6909_s14 + $0xd8] sm:$0xff] }
  0xe6   : > { %5999 = vrot.lane.b32.xlu0 %v10656_v9, %s6786_s16  ;;  %6004 = vrot.lane.b32.xlu1 %v10657_v15, %s10582_s22  ;;  %v1387_v32 = vsel %vm445_vm3, %v1384_v10, %v1386_v20  ;;  %v1389_v21 = vsel %vm445_vm3, %v1386_v20, %v1388_v33  ;;  %v8158_v9 = vsel %vm10556_vm4, %v1696_v4, %v1698_v58  ;;  %v5722_v42 = vunpack.i.h.bf16 %v5720_v61 }
  0xe7   : > { %v8142_v43 = vsel %vm1132_vm2, %v10658_v60, %v1185_v36  ;;  %v8163_v36 = vsel %vm10556_vm4, %v1698_v58, %v1700_v54  ;;  %v5721_v62 = vunpack.i.l.bf16 %v5720_v61  ;;  %v5727_v3 = vunpack.i.h.bf16 %v5725_v51 }
  0xe8   : > { %v5726_v22 = vunpack.i.l.bf16 %v5725_v51  ;;  %v2240_v10 = vsel %vm10564_vm12, %v2198_v34, %v5716_v7  ;;  %v2241_v44 = vsel %vm10564_vm12, %v2199_v28, %v5717_v55  ;;  %v10659_v20 = vpack.i.bf16 %v7904_v38, %v7866_v41  ;;  %v5735_v28 = vpop.permute.xlu1 %5734 }
  0xe9   : > { %v6063_v4 = vpack.i.bf16 %v8147_v25, %v8142_v43  ;;  %v677_v58 = vrot.slane %v7939_v53, 1  ;;  %v2282_v7 = vsel %vm10563_vm13, %v2240_v10, %v5721_v62  ;;  %v2283_v34 = vsel %vm10563_vm13, %v2241_v44, %v5722_v42  ;;  %v5730_v15 = vpop.permute.xlu0 %5729 }
  0xea   : > { %6009 = vrot.lane.b32.xlu0 %v10659_v20, %s10568_s25  ;;  %6014 = vrot.lane.b32.xlu1 %v7807_v31, %s10561_s30  ;;  %v1888_v55 = vrot.slane %v8103_v11, 6  ;;  %v679_v41 = vrot.slane %v7952_v5, 1  ;;  %v2324_v38 = vsel %vm10555_vm14, %v2282_v7, %v5726_v22  ;;  %v2325_v31 = vsel %vm10555_vm14, %v2283_v34, %v5727_v3 }
  0xeb   : > { %v8186_v60 = vpack.i.bf16 %v1389_v21, %v1387_v32  ;;  %v5732_v51 = vunpack.i.h.bf16 %v5730_v15  ;;  %v5731_v20 = vunpack.i.l.bf16 %v5730_v15  ;;  %v517_v62 = vrot.slane %v413_v56, 4 }
  0xec   : > { %v518_v42 = vrot.slane %v8178_v37, 4  ;;  %v5737_v10 = vunpack.i.h.bf16 %v5735_v28  ;;  %v5736_v44 = vunpack.i.l.bf16 %v5735_v28  ;;  %v10660_v3 = vpack.i.bf16 %v7977_v16, %v7972_v14  ;;  %v5745_v16 = vpop.permute.xlu1 %5744 }
  0xed   : > { %v2361_v32 = vpack.c.bf16 %v2325_v31, %v2324_v38  ;;  %v536_v21 = vsel %vm10557_vm5, %v511_v57, 0.0  ;;  %v2035_v22 = vsel %vm2025_vm7, %v7077_v1, %v5732_v51  ;;  %v2034_v56 = vsel %vm2025_vm7, %v7031_v27, %v5731_v20  ;;  %v5740_v14 = vpop.permute.xlu0 %5739 }
  0xee   : > { %6019 = vrot.lane.b32.xlu0 %v7991_v0, %s10560_s29  ;;  %6024 = vrot.lane.b32.xlu1 %v10660_v3, %s10567_s12  ;;  %v8207_v7 = vsel %vm10557_vm5, %v1886_v35, %v1888_v55  ;;  %v1890_v34 = vrot.slane %v8108_v45, 6  ;;  %v8214_v23 = vsel %vm624_vm1, %v675_v47, %v677_v58  ;;  %v8219_v27 = vsel %vm624_vm1, %v677_v58, %v679_v41 }
  0xef   : > { %5410 = vmatmul.mubr.msk.bf16.gmra.mrb[16].mxu0 %vm10562_vm15, %v2361_v32  ;;  %v874_v1 = vrot.slane %v8103_v11, 2  ;;  %v876_v57 = vrot.slane %v8108_v45, 2  ;;  %v5742_v35 = vunpack.i.h.bf16 %v5740_v14  ;;  %v5741_v38 = vunpack.i.l.bf16 %v5740_v14 }
  0xf0   : > { %5413 = vmatprep.mubr.msk.bf16.mxu0 %vm6788_vm6, %v10619_v13  ;;  %v8228_v31 = vsel %vm445_vm3, %v517_v62, %v518_v42  ;;  %v537_v47 = vsel %vm445_vm3, %v536_v21, %v517_v62  ;;  %v2074_v15 = vsel %vm2065_vm8, %v2034_v56, %v5736_v44  ;;  %v2075_v58 = vsel %vm2065_vm8, %v2035_v22, %v5737_v10  ;;  %v5755_v32 = vpop.permute.xlu1 %5754 }
  0xf1   : > { %v5747_v28 = vunpack.i.h.bf16 %v5745_v16  ;;  %v5746_v51 = vunpack.i.l.bf16 %v5745_v16  ;;  %v2116_v20 = vsel %vm10566_vm9, %v2074_v15, %v5741_v38  ;;  %v2117_v3 = vsel %vm10566_vm9, %v2075_v58, %v5742_v35  ;;  %v5750_v44 = vpop.permute.xlu0 %5749 }
  0xf2   : > { %6029 = vrot.lane.b32.xlu0 %v7898_v59, %s10559_s13  ;;  %6034 = vrot.lane.b32.xlu1 %v8018_v24, %s10558_s15  ;;  %v8242_v62 = vsel %vm10557_vm5, %v1888_v55, %v1890_v34  ;;  %v1189_v10 = vrot.slane %v8103_v11, 3  ;;  %v1191_v21 = vrot.slane %v8108_v45, 3  ;;  %v574_v22 = vrot.slane %v537_v47, 4 }
  0xf3   : > { %v576_v59 = vrot.slane %v8228_v31, 4  ;;  %v5752_v56 = vunpack.i.h.bf16 %v5750_v44  ;;  %v5751_v14 = vunpack.i.l.bf16 %v5750_v44  ;;  %v10661_v16 = vrot.slane %v7952_v5, 2 }
  0xf4   : > { %v877_v55 = vsel %vm427_vm0, %v874_v1, %v876_v57  ;;  %v2158_v38 = vsel %vm2147_vm10, %v2116_v20, %v5746_v51  ;;  %v2159_v15 = vsel %vm2147_vm10, %v2117_v3, %v5747_v28  ;;  %v5757_v58 = vunpack.i.h.bf16 %v5755_v32  ;;  %v5765_v3 = vpop.permute.xlu1 %5764 }
  0xf5   : > { %v875_v35 = vsel %vm427_vm0, %v10661_v16, %v874_v1  ;;  %v5756_v61 = vunpack.i.l.bf16 %v5755_v32  ;;  %v10662_v47 = vpack.i.bf16 %v8028_v48, %v8023_v39  ;;  %v10663_v44 = vpack.i.bf16 %v8058_v6, %v8033_v46  ;;  %v5760_v20 = vpop.permute.xlu0 %5759 }
  0xf6   : > { %v2200_v16 = vsel %vm10565_vm11, %v2158_v38, %v5751_v14  ;;  %v2201_v1 = vsel %vm10565_vm11, %v2159_v15, %v5752_v56  ;;  %v6083_v51 = vpack.i.bf16 %v8242_v62, %v8207_v7  ;;  %v6088_v28 = vpack.i.bf16 %v8219_v27, %v8214_v23 }
  0xf7   : > { %6039 = vrot.lane.b32.xlu0 %v10662_v47, %s6786_s16  ;;  %6044 = vrot.lane.b32.xlu1 %v10663_v44, %s10582_s22  ;;  %v8269_v32 = vpack.i.bf16 %v877_v55, %v875_v35  ;;  %v8274_v39 = vsel %vm1132_vm2, %v1187_v8, %v1189_v10  ;;  %v10664_v48 = vrot.slane %v8048_v2, 4  ;;  %v8284_v6 = vsel %vm445_vm3, %v574_v22, %v576_v59 }
  0xf8   : > { %v5762_v56 = vunpack.i.h.bf16 %v5760_v20  ;;  %v5761_v14 = vunpack.i.l.bf16 %v5760_v20  ;;  %v5767_v38 = vunpack.i.h.bf16 %v5765_v3  ;;  %v5766_v35 = vunpack.i.l.bf16 %v5765_v3 }
  0xf9   : > { %v8279_v46 = vsel %vm445_vm3, %v10664_v48, %v574_v22  ;;  %v2242_v55 = vsel %vm10564_vm12, %v2200_v16, %v5756_v61  ;;  %v2243_v8 = vsel %vm10564_vm12, %v2201_v1, %v5757_v58  ;;  %v10665_v2 = vpack.i.bf16 %v8089_v52, %v8083_v17  ;;  %v5770_v52 = vpop.permute.xlu0 %5769  ;;  %v415_v1 = vld [vmem:[%s6909_s14 + $0xe0] sm:$0xff] }
  0xfa   : > { %v8297_v22 = vsel %vm1132_vm2, %v1189_v10, %v1191_v21  ;;  %v2284_v15 = vsel %vm10563_vm13, %v2242_v55, %v5761_v14  ;;  %v2285_v47 = vsel %vm10563_vm13, %v2243_v8, %v5762_v56  ;;  %v1390_v61 = vrot.slane %v8279_v46, 4  ;;  %v8319_v8 = vld [vmem:[%s6909_s14 + $0xe8] sm:$0xff] }
  0xfb   : > { %6049 = vrot.lane.b32.xlu0 %v10665_v2, %s10568_s25  ;;  %6054 = vrot.lane.b32.xlu1 %v7991_v0, %s10561_s30  ;;  %v1392_v58 = vrot.slane %v8284_v6, 4  ;;  %v2326_v44 = vsel %vm10555_vm14, %v2284_v15, %v5766_v35  ;;  %v2327_v17 = vsel %vm10555_vm14, %v2285_v47, %v5767_v38  ;;  %v5775_v0 = vpop.permute.xlu1 %5774  ;;  %v1702_v16 = vrot.slane %v8279_v46, 5 }
  0xfc   : > { %v1704_v10 = vrot.slane %v8284_v6, 5  ;;  %v5772_v20 = vunpack.i.h.bf16 %v5770_v52  ;;  %v5771_v3 = vunpack.i.l.bf16 %v5770_v52  ;;  %v6103_v48 = vpack.i.bf16 %v8297_v22, %v8274_v39 }
  0xfd   : > { %v681_v56 = vrot.slane %v8103_v11, 1  ;;  %v5777_v14 = vunpack.i.h.bf16 %v5775_v0  ;;  %v5776_v55 = vunpack.i.l.bf16 %v5775_v0  ;;  %v2362_v38 = vpack.c.bf16 %v2327_v17, %v2326_v44  ;;  %v5780_v43 = vpop.permute.xlu0 %5779 }
  0xfe   : > { %v683_v35 = vrot.slane %v8108_v45, 1  ;;  %v2037_v2 = vsel %vm2025_vm7, %v7118_v50, %v5772_v20  ;;  %v2036_v15 = vsel %vm2025_vm7, %v7074_v63, %v5771_v3  ;;  %v1391_v47 = vsel %vm445_vm3, %v1388_v33, %v1390_v61 }
  0xff   : > { %6059 = vrot.lane.b32.xlu0 %v8125_v26, %s10560_s29  ;;  %6064 = vrot.lane.b32.xlu1 %v6063_v4, %s10567_s12  ;;  %v524_v52 = vrot.slane %v415_v1, 2  ;;  %v5785_v25 = vpop.permute.xlu1 %5784  ;;  %v1393_v4 = vsel %vm445_vm3, %v1390_v61, %v1392_v58  ;;  %v8335_v50 = vsel %vm10556_vm4, %v1700_v54, %v1702_v16  ;;  %v8340_v63 = vsel %vm10556_vm4, %v1702_v16, %v1704_v10 }
 0x100   : > { %5414 = vmatmul.mubr.msk.bf16.gmra.mrb[20].mxu0 %vm10562_vm15, %v2362_v38  ;;  %v1892_v33 = vrot.slane %v8279_v46, 6  ;;  %v5782_v44 = vunpack.i.h.bf16 %v5780_v43  ;;  %v5781_v17 = vunpack.i.l.bf16 %v5780_v43  ;;  %v525_v0 = vrot.slane %v8319_v8, 2 }
 0x101   : > { %5417 = vmatprep.mubr.msk.bf16.mxu0 %vm6788_vm6, %v10619_v13  ;;  %v538_v61 = vsel %vm445_vm3, %v518_v42, 0.0  ;;  %v2076_v54 = vsel %vm2065_vm8, %v2036_v15, %v5776_v55  ;;  %v2077_v1 = vsel %vm2065_vm8, %v2037_v2, %v5777_v14  ;;  %v5787_v20 = vunpack.i.h.bf16 %v5785_v25  ;;  %v5790_v42 = vpop.permute.xlu0 %5789 }
 0x102   : > { %v5786_v16 = vunpack.i.l.bf16 %v5785_v25  ;;  %v2118_v3 = vsel %vm10566_vm9, %v2076_v54, %v5781_v17  ;;  %v2119_v38 = vsel %vm10566_vm9, %v2077_v1, %v5782_v44  ;;  %v8360_v37 = vsel %vm624_vm1, %v679_v41, %v681_v56 }
 0x103   : > { %6069 = vrot.lane.b32.xlu0 %v8018_v24, %s10559_s13  ;;  %6074 = vrot.lane.b32.xlu1 %v8186_v60, %s10558_s15  ;;  %v5795_v55 = vpop.permute.xlu1 %5794  ;;  %v8362_v14 = vpack.i.bf16 %v1393_v4, %v1391_v47  ;;  %v6118_v2 = vpack.i.bf16 %v8340_v63, %v8335_v50  ;;  %v8369_v24 = vsel %vm10557_vm5, %v1890_v34, %v1892_v33  ;;  %v5792_v43 = vunpack.i.h.bf16 %v5790_v42 }
 0x104   : > { %v8374_v15 = vsel %vm624_vm1, %v681_v56, %v683_v35  ;;  %v5791_v41 = vunpack.i.l.bf16 %v5790_v42  ;;  %v8379_v47 = vsel %vm427_vm0, %v524_v52, %v525_v0  ;;  %v539_v25 = vsel %vm427_vm0, %v538_v61, %v524_v52 }
 0x105   : > { %v2160_v4 = vsel %vm2147_vm10, %v2118_v3, %v5786_v16  ;;  %v2161_v44 = vsel %vm2147_vm10, %v2119_v38, %v5787_v20  ;;  %v5797_v34 = vunpack.i.h.bf16 %v5795_v55  ;;  %v5796_v17 = vunpack.i.l.bf16 %v5795_v55  ;;  %v5800_v20 = vpop.permute.xlu0 %5799 }
 0x106   : > { %v10666_v56 = vpack.i.bf16 %v8163_v36, %v8158_v9  ;;  %v2202_v54 = vsel %vm10565_vm11, %v2160_v4, %v5791_v41  ;;  %v2203_v52 = vsel %vm10565_vm11, %v2161_v44, %v5792_v43  ;;  %v1894_v61 = vrot.slane %v8284_v6, 6 }
 0x107   : > { %6084 = vrot.lane.b32.xlu1 %v6083_v51, %s10582_s22  ;;  %v878_v1 = vrot.slane %v8279_v46, 2  ;;  %v5805_v16 = vpop.permute.xlu1 %5804  ;;  %v6128_v3 = vpack.i.bf16 %v8374_v15, %v8360_v37  ;;  %v880_v9 = vrot.slane %v8284_v6, 2  ;;  %v578_v36 = vrot.slane %v539_v25, 4 }
 0x108   : > { %6079 = vrot.lane.b32.xlu0 %v10666_v56, %s6786_s16  ;;  %v580_v38 = vrot.slane %v8379_v47, 4  ;;  %v5802_v7 = vunpack.i.h.bf16 %v5800_v20  ;;  %v5801_v62 = vunpack.i.l.bf16 %v5800_v20  ;;  %v5807_v51 = vunpack.i.h.bf16 %v5805_v16 }
 0x109   : > { %v5806_v42 = vunpack.i.l.bf16 %v5805_v16  ;;  %v2244_v55 = vsel %vm10564_vm12, %v2202_v54, %v5796_v17  ;;  %v2245_v43 = vsel %vm10564_vm12, %v2203_v52, %v5797_v34  ;;  %v1193_v41 = vrot.slane %v8279_v46, 3 }
 0x10a   : > { %v2286_v25 = vsel %vm10563_vm13, %v2244_v55, %v5801_v62  ;;  %v2287_v4 = vsel %vm10563_vm13, %v2245_v43, %v5802_v7  ;;  %v1895_v44 = vsel %vm10557_vm5, %v1892_v33, %v1894_v61  ;;  %v879_v34 = vsel %vm427_vm0, %v876_v57, %v878_v1  ;;  %v10667_v7 = vld [vmem:[#allocation9_spill] sm:$0xff] }
 0x10b   : > { %6094 = vrot.lane.b32.xlu1 %v8125_v26, %s10561_s30  ;;  %v2328_v23 = vsel %vm10555_vm14, %v2286_v25, %v5806_v42  ;;  %v2329_v27 = vsel %vm10555_vm14, %v2287_v4, %v5807_v51  ;;  %v5815_v26 = vpop.permute.xlu1 %5814  ;;  %v881_v17 = vsel %vm427_vm0, %v878_v1, %v880_v9  ;;  %v1195_v56 = vrot.slane %v8284_v6, 3 }
 0x10c   : > { %6089 = vrot.lane.b32.xlu0 %v6088_v28, %s10568_s25  ;;  %v5810_v28 = vpop.permute.xlu0 %5809  ;;  %v8426_v33 = vsel %vm445_vm3, %v576_v59, %v578_v36  ;;  %v8431_v57 = vsel %vm445_vm3, %v578_v36, %v580_v38  ;;  %v5817_v20 = vunpack.i.h.bf16 %v5815_v26  ;;  %v5816_v16 = vunpack.i.l.bf16 %v5815_v26 }
 0x10d   : > { %v5812_v54 = vunpack.i.h.bf16 %v5810_v28  ;;  %v5811_v52 = vunpack.i.l.bf16 %v5810_v28  ;;  %v2363_v1 = vpack.c.bf16 %v2329_v27, %v2328_v23  ;;  %v6123_v31 = vpack.i.bf16 %v1895_v44, %v8369_v24 }
 0x10e   : > { %v8444_v62 = vpack.i.bf16 %v881_v17, %v879_v34  ;;  %v8449_v51 = vsel %vm1132_vm2, %v1191_v21, %v1193_v41  ;;  %v1396_v24 = vrot.slane %v8431_v57, 4  ;;  %v1706_v21 = vrot.slane %v8426_v33, 5 }
 0x10f   : > { %6104 = vrot.lane.b32.xlu1 %v6103_v48, %s10567_s12  ;;  %v2039_v59 = vsel %vm2025_vm7, %v7156_v19, %v5812_v54  ;;  %v2038_v36 = vsel %vm2025_vm7, %v10667_v7, %v5811_v52  ;;  %5418 = vmatmul.mubr.msk.bf16.gmra.mrb[24].mxu0 %vm10562_vm15, %v2363_v1  ;;  %v5825_v22 = vpop.permute.xlu1 %5824  ;;  %v8455_v48 = vsel %vm1132_vm2, %v1193_v41, %v1195_v56  ;;  %v1394_v19 = vrot.slane %v8426_v33, 4 }
 0x110   : > { %6099 = vrot.lane.b32.xlu0 %v8269_v32, %s10560_s29  ;;  %v5820_v39 = vpop.permute.xlu0 %5819  ;;  %5421 = vmatprep.mubr.msk.bf16.mxu0 %vm6788_vm6, %v10619_v13  ;;  %v1708_v43 = vrot.slane %v8431_v57, 5  ;;  %v2078_v25 = vsel %vm2065_vm8, %v2038_v36, %v5816_v16  ;;  %v2079_v4 = vsel %vm2065_vm8, %v2039_v59, %v5817_v20  ;;  %v5827_v44 = vunpack.i.h.bf16 %v5825_v22 }
 0x111   : > { %v5822_v42 = vunpack.i.h.bf16 %v5820_v39  ;;  %v5821_v55 = vunpack.i.l.bf16 %v5820_v39  ;;  %v5826_v41 = vunpack.i.l.bf16 %v5825_v22  ;;  %v6143_v27 = vpack.i.bf16 %v8455_v48, %v8449_v51 }
 0x112   : > { %v685_v28 = vrot.slane %v8279_v46, 1  ;;  %v1395_v54 = vsel %vm445_vm3, %v1392_v58, %v1394_v19  ;;  %v1896_v52 = vrot.slane %v8426_v33, 6  ;;  %v687_v20 = vrot.slane %v8284_v6, 1 }
 0x113   : > { %6114 = vrot.lane.b32.xlu1 %v8362_v14, %s10558_s15  ;;  %v2120_v34 = vsel %vm10566_vm9, %v2078_v25, %v5821_v55  ;;  %v2121_v23 = vsel %vm10566_vm9, %v2079_v4, %v5822_v42  ;;  %v5835_v17 = vpop.permute.xlu1 %5834  ;;  %v8485_v59 = vsel %vm10556_vm4, %v1704_v10, %v1706_v21  ;;  %v8490_v7 = vsel %vm10556_vm4, %v1706_v21, %v1708_v43 }
 0x114   : > { %6109 = vrot.lane.b32.xlu0 %v8186_v60, %s10559_s13  ;;  %v5830_v26 = vpop.permute.xlu0 %5829  ;;  %v1397_v60 = vsel %vm445_vm3, %v1394_v19, %v1396_v24  ;;  %v2162_v58 = vsel %vm2147_vm10, %v2120_v34, %v5826_v41  ;;  %v2163_v36 = vsel %vm2147_vm10, %v2121_v23, %v5827_v44  ;;  %v5837_v51 = vunpack.i.h.bf16 %v5835_v17  ;;  %v8531_v34 = vld [vmem:[%s6909_s14 + $0xf0] sm:$0xff] }
 0x115   : > { %v5832_v16 = vunpack.i.h.bf16 %v5830_v26  ;;  %v5831_v1 = vunpack.i.l.bf16 %v5830_v26  ;;  %v5836_v39 = vunpack.i.l.bf16 %v5835_v17  ;;  %v1898_v48 = vrot.slane %v8431_v57, 6 }
 0x116   : > { %v8505_v19 = vsel %vm624_vm1, %v683_v35, %v685_v28  ;;  %v8507_v21 = vpack.i.bf16 %v1397_v60, %v1395_v54  ;;  %v6158_v50 = vpack.i.bf16 %v8490_v7, %v8485_v59  ;;  %v8514_v63 = vsel %vm10557_vm5, %v1894_v61, %v1896_v52 }
 0x117   : > { %6124 = vrot.lane.b32.xlu1 %v6123_v31, %s10582_s22  ;;  %v2204_v10 = vsel %vm10565_vm11, %v2162_v58, %v5831_v1  ;;  %v2205_v22 = vsel %vm10565_vm11, %v2163_v36, %v5832_v16  ;;  %v5845_v55 = vpop.permute.xlu1 %5844  ;;  %v882_v61 = vrot.slane %v8426_v33, 2  ;;  %v540_v23 = vsel %vm427_vm0, %v525_v0, 0.0 }
 0x118   : > { %6119 = vrot.lane.b32.xlu0 %v6118_v2, %s6786_s16  ;;  %v5840_v42 = vpop.permute.xlu0 %5839  ;;  %v8519_v2 = vsel %vm624_vm1, %v685_v28, %v687_v20  ;;  %v5847_v25 = vunpack.i.h.bf16 %v5845_v55  ;;  %v5846_v4 = vunpack.i.l.bf16 %v5845_v55  ;;  %v2246_v44 = vsel %vm10564_vm12, %v2204_v10, %v5836_v39  ;;  %v6712_v39 = vld [vmem:[%s6909_s14 + $0x58] sm:$0xff] }
 0x119   : > { %v5842_v35 = vunpack.i.h.bf16 %v5840_v42  ;;  %v5841_v31 = vunpack.i.l.bf16 %v5840_v42  ;;  %v2247_v41 = vsel %vm10564_vm12, %v2205_v22, %v5837_v51  ;;  %v1899_v37 = vsel %vm10557_vm5, %v1896_v52, %v1898_v48  ;;  %v6713_v22 = vld [vmem:[%s6909_s14 + $0x50] sm:$0xff] }
 0x11a   : > { %v884_v15 = vrot.slane %v8431_v57, 2  ;;  %v1197_v0 = vrot.slane %v8426_v33, 3  ;;  %v1199_v54 = vrot.slane %v8431_v57, 3  ;;  %v582_v1 = vrot.slane %v540_v23, 4 }
 0x11b   : > { %6134 = vrot.lane.b32.xlu1 %v8269_v32, %s10561_s30  ;;  %v2288_v28 = vsel %vm10563_vm13, %v2246_v44, %v5841_v31  ;;  %v2289_v26 = vsel %vm10563_vm13, %v2247_v41, %v5842_v35  ;;  %v5855_v8 = vpop.permute.xlu1 %5854  ;;  %v584_v58 = vrot.slane %v8531_v34, 4  ;;  %v6163_v55 = vpack.i.bf16 %v1899_v37, %v8514_v63 }
 0x11c   : > { %6129 = vrot.lane.b32.xlu0 %v6128_v3, %s10568_s25  ;;  %v2330_v32 = vsel %vm10555_vm14, %v2288_v28, %v5846_v4  ;;  %v2331_v3 = vsel %vm10555_vm14, %v2289_v26, %v5847_v25  ;;  %v5850_v17 = vpop.permute.xlu0 %5849  ;;  %v5857_v52 = vunpack.i.h.bf16 %v5855_v8  ;;  %v5856_v36 = vunpack.i.l.bf16 %v5855_v8 }
 0x11d   : > { %v5852_v60 = vunpack.i.h.bf16 %v5850_v17  ;;  %v5851_v16 = vunpack.i.l.bf16 %v5850_v17  ;;  %v2364_v51 = vpack.c.bf16 %v2331_v3, %v2330_v32  ;;  %v883_v35 = vsel %vm427_vm0, %v880_v9, %v882_v61 }
 0x11e   : > { %v8565_v4 = vsel %vm1132_vm2, %v1195_v56, %v1197_v0  ;;  %v8570_v63 = vsel %vm1132_vm2, %v1197_v0, %v1199_v54  ;;  %v689_v9 = vrot.slane %v8426_v33, 1  ;;  %v8583_v56 = vsel %vm445_vm3, %v582_v1, %v584_v58 }
 0x11f   : > { %6144 = vrot.lane.b32.xlu1 %v6143_v27, %s10567_s12  ;;  %v2041_v10 = vsel %vm2025_vm7, %v6712_v39, %v5852_v60  ;;  %v2040_v42 = vsel %vm2025_vm7, %v6713_v22, %v5851_v16  ;;  %5422 = vmatmul.mubr.msk.bf16.gmra.mrb[28].mxu0 %vm10562_vm15, %v2364_v51  ;;  %v5865_v25 = vpop.permute.xlu1 %5864  ;;  %v885_v27 = vsel %vm427_vm0, %v882_v61, %v884_v15  ;;  %v1902_v7 = vrot.slane %v8583_v56, 6 }
 0x120   : > { %6139 = vrot.lane.b32.xlu0 %v8444_v62, %s10560_s29  ;;  %v5860_v31 = vpop.permute.xlu0 %5859  ;;  %5425 = vmatprep.mubr.msk.bf16.mxu0 %vm6788_vm6, %v10619_v13  ;;  %v8578_v61 = vsel %vm445_vm3, %v580_v38, %v582_v1  ;;  %v2080_v23 = vsel %vm2065_vm8, %v2040_v42, %v5856_v36  ;;  %v2081_v28 = vsel %vm2065_vm8, %v2041_v10, %v5857_v52  ;;  %v5867_v26 = vunpack.i.h.bf16 %v5865_v25 }
 0x121   : > { %v5862_v44 = vunpack.i.h.bf16 %v5860_v31  ;;  %v5861_v41 = vunpack.i.l.bf16 %v5860_v31  ;;  %v5866_v37 = vunpack.i.l.bf16 %v5865_v25  ;;  %v6168_v32 = vpack.i.bf16 %v8519_v2, %v8505_v19 }
 0x122   : > { %v8595_v3 = vpack.i.bf16 %v885_v27, %v883_v35  ;;  %v6183_v0 = vpack.i.bf16 %v8570_v63, %v8565_v4  ;;  %v1398_v60 = vrot.slane %v8578_v61, 4  ;;  %v1400_v52 = vrot.slane %v8583_v56, 4  ;;  %v418_v35 = vld [vmem:[%s6909_s14 + $0xf8] sm:$0xff]  ;;  %s10569_s14 = smov 96  }
 0x123   : > { %6154 = vrot.lane.b32.xlu1 %v8507_v21, %s10558_s15  ;;  %v2122_v47 = vsel %vm10566_vm9, %v2080_v23, %v5861_v41  ;;  %v2123_v38 = vsel %vm10566_vm9, %v2081_v28, %v5862_v44  ;;  %v5875_v8 = vpop.permute.xlu1 %5874  ;;  %v8605_v19 = vsel %vm624_vm1, %v687_v20, %v689_v9  ;;  %v1710_v20 = vrot.slane %v8578_v61, 5 }
 0x124   : > { %6149 = vrot.lane.b32.xlu0 %v8362_v14, %s10559_s13  ;;  %v5870_v17 = vpop.permute.xlu0 %5869  ;;  %v691_v14 = vrot.slane %v8431_v57, 1  ;;  %v2164_v2 = vsel %vm2147_vm10, %v2122_v47, %v5866_v37  ;;  %v2165_v36 = vsel %vm2147_vm10, %v2123_v38, %v5867_v26  ;;  %v5877_v51 = vunpack.i.h.bf16 %v5875_v8 }
 0x125   : > { %v5872_v16 = vunpack.i.h.bf16 %v5870_v17  ;;  %v5871_v1 = vunpack.i.l.bf16 %v5870_v17  ;;  %v5876_v39 = vunpack.i.l.bf16 %v5875_v8  ;;  %v1712_v42 = vrot.slane %v8583_v56, 5 }
 0x126   : > { %v1399_v27 = vsel %vm445_vm3, %v1396_v24, %v1398_v60  ;;  %v1900_v59 = vrot.slane %v8578_v61, 6  ;;  %v1401_v24 = vsel %vm445_vm3, %v1398_v60, %v1400_v52  ;;  %v586_v28 = vrot.slane %v418_v35, 4  ;;  %v10669_v35 = vld [vmem:[#allocation10_spill] sm:$0xff] }
 0x127   : > { %6164 = vrot.lane.b32.xlu1 %v6163_v55, %s10582_s22  ;;  %v2206_v10 = vsel %vm10565_vm11, %v2164_v2, %v5871_v1  ;;  %v2207_v22 = vsel %vm10565_vm11, %v2165_v36, %v5872_v16  ;;  %v5885_v25 = vpop.permute.xlu1 %5884  ;;  %v1711_v37 = vsel %vm10556_vm4, %v1708_v43, %v1710_v20  ;;  %v1713_v47 = vsel %vm10556_vm4, %v1710_v20, %v1712_v42 }
 0x128   : > { %6159 = vrot.lane.b32.xlu0 %v6158_v50, %s6786_s16  ;;  %v5880_v31 = vpop.permute.xlu0 %5879  ;;  %v8627_v50 = vsel %vm624_vm1, %v689_v9, %v691_v14  ;;  %v5887_v63 = vunpack.i.h.bf16 %v5885_v25  ;;  %v5886_v44 = vunpack.i.l.bf16 %v5885_v25  ;;  %v2248_v41 = vsel %vm10564_vm12, %v2206_v10, %v5876_v39 }
 0x129   : > { %v5882_v55 = vunpack.i.h.bf16 %v5880_v31  ;;  %v5881_v4 = vunpack.i.l.bf16 %v5880_v31  ;;  %v2249_v23 = vsel %vm10564_vm12, %v2207_v22, %v5877_v51  ;;  %v886_v8 = vrot.slane %v8578_v61, 2  ;;  %v10668_v22 = vld [vmem:[#allocation11_spill] sm:$0xff] }
 0x12a   : > { %v888_v60 = vrot.slane %v8583_v56, 2  ;;  %v1901_v43 = vsel %vm10557_vm5, %v1898_v48, %v1900_v59  ;;  %v1903_v2 = vsel %vm10557_vm5, %v1900_v59, %v1902_v7  ;;  %v8658_v10 = vpack.i.bf16 %v1401_v24, %v1399_v27 }
 0x12b   : > { %6174 = vrot.lane.b32.xlu1 %v8444_v62, %s10561_s30  ;;  %v2290_v9 = vsel %vm10563_vm13, %v2248_v41, %v5881_v4  ;;  %v2291_v26 = vsel %vm10563_vm13, %v2249_v23, %v5882_v55  ;;  %v5895_v17 = vpop.permute.xlu1 %5894  ;;  %v6198_v31 = vpack.i.bf16 %v1713_v47, %v1711_v37  ;;  %v1201_v25 = vrot.slane %v8578_v61, 3 }
 0x12c   : > { %6169 = vrot.lane.b32.xlu0 %v6168_v32, %s10568_s25  ;;  %v2332_v38 = vsel %vm10555_vm14, %v2290_v9, %v5886_v44  ;;  %v2333_v62 = vsel %vm10555_vm14, %v2291_v26, %v5887_v63  ;;  %v5890_v32 = vpop.permute.xlu0 %5889  ;;  %v5897_v36 = vunpack.i.h.bf16 %v5895_v17  ;;  %v5896_v51 = vunpack.i.l.bf16 %v5895_v17 }
 0x12d   : > { %v5892_v16 = vunpack.i.h.bf16 %v5890_v32  ;;  %v5891_v1 = vunpack.i.l.bf16 %v5890_v32  ;;  %v2365_v39 = vpack.c.bf16 %v2333_v62, %v2332_v38  ;;  %v6203_v4 = vpack.i.bf16 %v1903_v2, %v1901_v43 }
 0x12e   : > { %v889_v27 = vsel %vm427_vm0, %v886_v8, %v888_v60  ;;  %v1203_v63 = vrot.slane %v8583_v56, 3  ;;  %v8678_v23 = vsel %vm445_vm3, %v584_v58, %v586_v28  ;;  %v8681_v24 = vsel %vm445_vm3, %v586_v28, 0.0 }
 0x12f   : > { %6184 = vrot.lane.b32.xlu1 %v6183_v0, %s10567_s12  ;;  %v2043_v20 = vsel %vm2025_vm7, %v10668_v22, %v5892_v16  ;;  %v2042_v48 = vsel %vm2025_vm7, %v10669_v35, %v5891_v1  ;;  %5426 = vmatmul.mubr.msk.bf16.gmra.mrb[32].mxu0 %vm10562_vm15, %v2365_v39  ;;  %v5905_v55 = vpop.permute.xlu1 %5904  ;;  %v887_v0 = vsel %vm427_vm0, %v884_v15, %v886_v8  ;;  %v1402_v32 = vrot.slane %v8678_v23, 4 }
 0x130   : > { %6179 = vrot.lane.b32.xlu0 %v8595_v3, %s10560_s29  ;;  %v5900_v59 = vpop.permute.xlu0 %5899  ;;  %5429 = vmatprep.mubr.msk.bf16.mxu0 %vm6788_vm6, %v10619_v13  ;;  %v2082_v15 = vsel %vm2065_vm8, %v2042_v48, %v5896_v51  ;;  %v2083_v9 = vsel %vm2065_vm8, %v2043_v20, %v5897_v36  ;;  %v5907_v26 = vunpack.i.h.bf16 %v5905_v55  ;;  %v5906_v37 = vunpack.i.l.bf16 %v5905_v55 }
 0x131   : > { %v5902_v44 = vunpack.i.h.bf16 %v5900_v59  ;;  %v5901_v41 = vunpack.i.l.bf16 %v5900_v59  ;;  %v6208_v28 = vpack.i.bf16 %v8627_v50, %v8605_v19  ;;  %v8693_v62 = vpack.i.bf16 %v889_v27, %v887_v0 }
 0x132   : > { %v1404_v17 = vrot.slane %v8681_v24, 4  ;;  %v1202_v16 = vsel %vm1132_vm2, %v1199_v54, %v1201_v25  ;;  %v1204_v1 = vsel %vm1132_vm2, %v1201_v25, %v1203_v63  ;;  %v1714_v54 = vrot.slane %v8678_v23, 5 }
 0x133   : > { %6194 = vrot.lane.b32.xlu1 %v8658_v10, %s10558_s15  ;;  %v2124_v34 = vsel %vm10566_vm9, %v2082_v15, %v5901_v41  ;;  %v2125_v58 = vsel %vm10566_vm9, %v2083_v9, %v5902_v44  ;;  %v5915_v38 = vpop.permute.xlu1 %5914  ;;  %v1403_v20 = vsel %vm445_vm3, %v1400_v52, %v1402_v32  ;;  %v1716_v48 = vrot.slane %v8681_v24, 5 }
 0x134   : > { %6189 = vrot.lane.b32.xlu0 %v8507_v21, %s10559_s13  ;;  %v5910_v47 = vpop.permute.xlu0 %5909  ;;  %v2166_v19 = vsel %vm2147_vm10, %v2124_v34, %v5906_v37  ;;  %v2167_v50 = vsel %vm2147_vm10, %v2125_v58, %v5907_v26  ;;  %v5917_v43 = vunpack.i.h.bf16 %v5915_v38  ;;  %v5916_v2 = vunpack.i.l.bf16 %v5915_v38 }
 0x135   : > { %v5912_v8 = vunpack.i.h.bf16 %v5910_v47  ;;  %v5911_v21 = vunpack.i.l.bf16 %v5910_v47  ;;  %v1405_v35 = vsel %vm445_vm3, %v1402_v32, %v1404_v17  ;;  %v6223_v52 = vpack.i.bf16 %v1204_v1, %v1202_v16 }
 0x136   : > { %v1906_v44 = vrot.slane %v8681_v24, 6  ;;  %v1715_v9 = vsel %vm10556_vm4, %v1712_v42, %v1714_v54  ;;  %v693_v26 = vrot.slane %v8578_v61, 1  ;;  %v695_v47 = vrot.slane %v8583_v56, 1 }
 0x137   : > { %6204 = vrot.lane.b32.xlu1 %v6203_v4, %s10582_s22  ;;  %v2208_v36 = vsel %vm10565_vm11, %v2166_v19, %v5911_v21  ;;  %v2209_v51 = vsel %vm10565_vm11, %v2167_v50, %v5912_v8  ;;  %v5925_v22 = vpop.permute.xlu1 %5924  ;;  %v1717_v8 = vsel %vm10556_vm4, %v1714_v54, %v1716_v48  ;;  %v10670_v50 = vld [vmem:[#allocation13_spill] sm:$0xff] }
 0x138   : > { %6199 = vrot.lane.b32.xlu0 %v6198_v31, %s6786_s16  ;;  %v5920_v39 = vpop.permute.xlu0 %5919  ;;  %v1904_v31 = vrot.slane %v8678_v23, 6  ;;  %v5927_v55 = vunpack.i.h.bf16 %v5925_v22  ;;  %v5926_v4 = vunpack.i.l.bf16 %v5925_v22  ;;  %v2250_v0 = vsel %vm10564_vm12, %v2208_v36, %v5916_v2  ;;  %v10671_v2 = vld [vmem:[#allocation12_spill] sm:$0xff] }
 0x139   : > { %v5922_v25 = vunpack.i.h.bf16 %v5920_v39  ;;  %v5921_v59 = vunpack.i.l.bf16 %v5920_v39  ;;  %v2251_v27 = vsel %vm10564_vm12, %v2209_v51, %v5917_v43  ;;  %v6238_v54 = vpack.i.bf16 %v1717_v8, %v1715_v9 }
 0x13a   : > { %v1905_v42 = vsel %vm10557_vm5, %v1902_v7, %v1904_v31  ;;  %v1907_v19 = vsel %vm10557_vm5, %v1904_v31, %v1906_v44  ;;  %v694_v39 = vsel %vm624_vm1, %v691_v14, %v693_v26  ;;  %v696_v22 = vsel %vm624_vm1, %v693_v26, %v695_v47 }
 0x13b   : > { %6214 = vrot.lane.b32.xlu1 %v8595_v3, %s10561_s30  ;;  %v2292_v41 = vsel %vm10563_vm13, %v2250_v0, %v5921_v59  ;;  %v2293_v15 = vsel %vm10563_vm13, %v2251_v27, %v5922_v25  ;;  %v8732_v3 = vpack.i.bf16 %v1405_v35, %v1403_v20  ;;  %v890_v20 = vrot.slane %v8678_v23, 2 }
 0x13c   : > { %6209 = vrot.lane.b32.xlu0 %v6208_v28, %s10568_s25  ;;  %v2334_v37 = vsel %vm10555_vm14, %v2292_v41, %v5926_v4  ;;  %v2335_v34 = vsel %vm10555_vm14, %v2293_v15, %v5927_v55  ;;  %v5930_v58 = vpop.permute.xlu0 %5929  ;;  %v5935_v28 = vpop.permute.xlu1 %5934  ;;  %v6243_v25 = vpack.i.bf16 %v1907_v19, %v1905_v42  ;;  %v8760_v59 = vrot.slane %v8681_v24, 2 }
 0x13d   : > { %v5932_v38 = vunpack.i.h.bf16 %v5930_v58  ;;  %v5931_v32 = vunpack.i.l.bf16 %v5930_v58  ;;  %v5937_v21 = vunpack.i.h.bf16 %v5935_v28  ;;  %v5936_v16 = vunpack.i.l.bf16 %v5935_v28 }
 0x13e   : > { %v2366_v1 = vpack.c.bf16 %v2335_v34, %v2334_v37  ;;  %v1205_v41 = vrot.slane %v8678_v23, 3  ;;  %v1207_v15 = vrot.slane %v8681_v24, 3  ;;  %v6248_v37 = vpack.i.bf16 %v696_v22, %v694_v39 }
 0x13f   : > { %6224 = vrot.lane.b32.xlu1 %v6223_v52, %s10567_s12  ;;  %v2045_v43 = vsel %vm2025_vm7, %v10670_v50, %v5932_v38  ;;  %v2044_v36 = vsel %vm2025_vm7, %v10671_v2, %v5931_v32  ;;  %v893_v28 = vsel %vm427_vm0, %v890_v20, %v8760_v59  ;;  %v10672_v2 = vld [vmem:[#allocation8_spill] sm:$0xff] }
 0x140   : > { %6219 = vrot.lane.b32.xlu0 %v8693_v62, %s10560_s29  ;;  %5430 = vmatmul.mubr.msk.bf16.gmra.mrb[36].mxu0 %vm10562_vm15, %v2366_v1  ;;  %v5940_v7 = vpop.permute.xlu0 %5939  ;;  %v5945_v51 = vpop.permute.xlu1 %5944  ;;  %v2084_v55 = vsel %vm2065_vm8, %v2044_v36, %v5936_v16  ;;  %v2085_v4 = vsel %vm2065_vm8, %v2045_v43, %v5937_v21  ;;  %v1208_v1 = vsel %vm1132_vm2, %v1205_v41, %v1207_v15 }
 0x141   : > { %v5942_v35 = vunpack.i.h.bf16 %v5940_v7  ;;  %v5941_v31 = vunpack.i.l.bf16 %v5940_v7  ;;  %5433 = vmatprep.mubr.msk.bf16.mxu0 %vm6788_vm6, %v10619_v13  ;;  %v5947_v14 = vunpack.i.h.bf16 %v5945_v51  ;;  %v5946_v0 = vunpack.i.l.bf16 %v5945_v51 }
 0x142   : > { %v8797_v36 = vsel %vm445_vm3, %v1404_v17, %v10672_v2  ;;  %v8800_v7 = vrot.slane %v10619_v13, 5  ;;  %v8808_v17 = vrot.slane %v10619_v13, 6 }
 0x143   : > { %6234 = vrot.lane.b32.xlu1 %v8732_v3, %s10558_s15  ;;  %v2126_v27 = vsel %vm10566_vm9, %v2084_v55, %v5941_v31  ;;  %v2127_v52 = vsel %vm10566_vm9, %v2085_v4, %v5942_v35 }
 0x144   : > { %6229 = vrot.lane.b32.xlu0 %v8658_v10, %s10559_s13  ;;  %v5950_v9 = vpop.permute.xlu0 %5949  ;;  %v5955_v26 = vpop.permute.xlu1 %5954  ;;  %v891_v10 = vsel %vm427_vm0, %v888_v60, %v890_v20  ;;  %v2168_v38 = vsel %vm2147_vm10, %v2126_v27, %v5946_v0  ;;  %v2169_v32 = vsel %vm2147_vm10, %v2127_v52, %v5947_v14  ;;  %v1206_v60 = vsel %vm1132_vm2, %v1203_v63, %v1205_v41 }
 0x145   : > { %v5952_v34 = vunpack.i.h.bf16 %v5950_v9  ;;  %v5951_v58 = vunpack.i.l.bf16 %v5950_v9  ;;  %v5957_v8 = vunpack.i.h.bf16 %v5955_v26  ;;  %v5956_v42 = vunpack.i.l.bf16 %v5955_v26 }
 0x146   : > { %v8791_v43 = vpack.i.bf16 %v893_v28, %v891_v10  ;;  %v6263_v35 = vpack.i.bf16 %v1208_v1, %v1206_v60  ;;  %v6273_v27 = vpack.i.bf16 %v10672_v2, %v8797_v36  ;;  %v697_v52 = vrot.slane %v8678_v23, 1  ;;  %v10673_v28 = vld [vmem:[#allocation14_spill] sm:$0xff] }
 0x147   : > { %6244 = vrot.lane.b32.xlu1 %v6243_v25, %s10582_s22  ;;  %v2210_v21 = vsel %vm10565_vm11, %v2168_v38, %v5951_v58  ;;  %v2211_v16 = vsel %vm10565_vm11, %v2169_v32, %v5952_v34  ;;  %v1719_v9 = vsel %vm10556_vm4, %v1716_v48, %v8800_v7  ;;  %v699_v26 = vrot.slane %v8681_v24, 1 }
 0x148   : > { %6239 = vrot.lane.b32.xlu0 %v6238_v54, %s6786_s16  ;;  %v5960_v19 = vpop.permute.xlu0 %5959  ;;  %v5965_v50 = vpop.permute.xlu1 %5964  ;;  %v2252_v22 = vsel %vm10564_vm12, %v2210_v21, %v5956_v42  ;;  %v2253_v20 = vsel %vm10564_vm12, %v2211_v16, %v5957_v8  ;;  %v1909_v10 = vsel %vm10557_vm5, %v1906_v44, %v8808_v17  ;;  %v6278_v42 = vpack.i.bf16 %v8800_v7, %v1719_v9 }
 0x149   : > { %v5962_v51 = vunpack.i.h.bf16 %v5960_v19  ;;  %v5961_v54 = vunpack.i.l.bf16 %v5960_v19  ;;  %v5967_v63 = vunpack.i.h.bf16 %v5965_v50  ;;  %v5966_v39 = vunpack.i.l.bf16 %v5965_v50 }
 0x14a   : > { %v698_v21 = vsel %vm624_vm1, %v695_v47, %v697_v52  ;;  %v6283_v44 = vpack.i.bf16 %v8808_v17, %v1909_v10  ;;  %v700_v1 = vsel %vm624_vm1, %v697_v52, %v699_v26 }
 0x14b   : > { %6254 = vrot.lane.b32.xlu1 %v8693_v62, %s10561_s30  ;;  %v2294_v31 = vsel %vm10563_vm13, %v2252_v22, %v5961_v54  ;;  %v2295_v25 = vsel %vm10563_vm13, %v2253_v20, %v5962_v51 }
 0x14c   : > { %6249 = vrot.lane.b32.xlu0 %v6248_v37, %s10568_s25  ;;  %v2336_v55 = vsel %vm10555_vm14, %v2294_v31, %v5966_v39  ;;  %v2337_v4 = vsel %vm10555_vm14, %v2295_v25, %v5967_v63  ;;  %v5970_v14 = vpop.permute.xlu0 %5969  ;;  %v5975_v0 = vpop.permute.xlu1 %5974 }
 0x14d   : > { %v5972_v62 = vunpack.i.h.bf16 %v5970_v14  ;;  %v5971_v41 = vunpack.i.l.bf16 %v5970_v14  ;;  %v5977_v37 = vunpack.i.h.bf16 %v5975_v0  ;;  %v5976_v34 = vunpack.i.l.bf16 %v5975_v0 }
 0x14e   : > { %v2367_v58 = vpack.c.bf16 %v2337_v4, %v2336_v55 }
 0x14f   : > { %6264 = vrot.lane.b32.xlu1 %v6263_v35, %s10567_s12  ;;  %v2047_v38 = vsel %vm2025_vm7, %v10673_v28, %v5972_v62  ;;  %v2046_v48 = vsel %vm2025_vm7, %v7398_v40, %v5971_v41  ;;  %v6288_v35 = vpack.i.bf16 %v700_v1, %v698_v21  ;;  %v10674_v28 = vld [vmem:[#allocation6_spill] sm:$0xff] }
 0x150   : > { %6259 = vrot.lane.b32.xlu0 %v8791_v43, %s10560_s29  ;;  %5434 = vmatmul.mubr.msk.bf16.gmra.mrb[40].mxu0 %vm10562_vm15, %v2367_v58  ;;  %v5980_v32 = vpop.permute.xlu0 %5979  ;;  %v5985_v8 = vpop.permute.xlu1 %5984  ;;  %v2086_v40 = vsel %vm2065_vm8, %v2046_v48, %v5976_v34  ;;  %v2087_v19 = vsel %vm2065_vm8, %v2047_v38, %v5977_v37  ;;  %v1011_v38 = vsel %vm427_vm0, %v8760_v59, %v10674_v28  ;;  %v10675_v48 = vld [vmem:[#allocation7_spill] sm:$0xff] }
 0x151   : > { %v5982_v16 = vunpack.i.h.bf16 %v5980_v32  ;;  %v5981_v60 = vunpack.i.l.bf16 %v5980_v32  ;;  %5437 = vmatprep.mubr.msk.bf16.mxu0 %vm6788_vm6, %v10619_v13  ;;  %v5987_v50 = vunpack.i.h.bf16 %v5985_v8  ;;  %v5986_v51 = vunpack.i.l.bf16 %v5985_v8 }
 0x152   : > { %v1209_v32 = vsel %vm1132_vm2, %v1207_v15, %v10675_v48 }
 0x153   : > { %6274 = vrot.lane.b32.xlu1 %v6273_v27, %s10558_s15  ;;  %v2128_v47 = vsel %vm10566_vm9, %v2086_v40, %v5981_v60  ;;  %v2129_v54 = vsel %vm10566_vm9, %v2087_v19, %v5982_v16  ;;  %s6790_s15 = smov 48  }
 0x154   : > { %6269 = vrot.lane.b32.xlu0 %v8732_v3, %s10559_s13  ;;  %v5990_v63 = vpop.permute.xlu0 %5989  ;;  %v5995_v39 = vpop.permute.xlu1 %5994  ;;  %v2170_v31 = vsel %vm2147_vm10, %v2128_v47, %v5986_v51  ;;  %v2171_v25 = vsel %vm2147_vm10, %v2129_v54, %v5987_v50 }
 0x155   : > { %v5992_v22 = vunpack.i.h.bf16 %v5990_v63  ;;  %v5991_v20 = vunpack.i.l.bf16 %v5990_v63  ;;  %v5997_v55 = vunpack.i.h.bf16 %v5995_v39  ;;  %v5996_v4 = vunpack.i.l.bf16 %v5995_v39 }
 0x157   : > { %6284 = vrot.lane.b32.xlu1 %v6283_v44, %s10582_s22  ;;  %v2212_v3 = vsel %vm10565_vm11, %v2170_v31, %v5991_v20  ;;  %v2213_v14 = vsel %vm10565_vm11, %v2171_v25, %v5992_v22 }
 0x158   : > { %6279 = vrot.lane.b32.xlu0 %v6278_v42, %s6786_s16  ;;  %v6000_v0 = vpop.permute.xlu0 %5999  ;;  %v6005_v27 = vpop.permute.xlu1 %6004  ;;  %v2254_v37 = vsel %vm10564_vm12, %v2212_v3, %v5996_v4  ;;  %v2255_v34 = vsel %vm10564_vm12, %v2213_v14, %v5997_v55  ;;  %s10571_s16 = smov 64  }
 0x159   : > { %v6002_v52 = vunpack.i.h.bf16 %v6000_v0  ;;  %v6001_v62 = vunpack.i.l.bf16 %v6000_v0  ;;  %v6007_v41 = vunpack.i.h.bf16 %v6005_v27  ;;  %v6006_v9 = vunpack.i.l.bf16 %v6005_v27 }
 0x15b   : > { %6294 = vrot.lane.b32.xlu1 %v8791_v43, %s10561_s30  ;;  %v2296_v58 = vsel %vm10563_vm13, %v2254_v37, %v6001_v62  ;;  %v2297_v10 = vsel %vm10563_vm13, %v2255_v34, %v6002_v52  ;;  %s10732_s30 = smov 4  }
 0x15c   : > { %6289 = vrot.lane.b32.xlu0 %v6288_v35, %s10568_s25  ;;  %v2338_v8 = vsel %vm10555_vm14, %v2296_v58, %v6006_v9  ;;  %v2339_v42 = vsel %vm10555_vm14, %v2297_v10, %v6007_v41  ;;  %v6010_v21 = vpop.permute.xlu0 %6009  ;;  %v6015_v16 = vpop.permute.xlu1 %6014  ;;  %s10737_s25 = smov 24  }
 0x15d   : > { %v6012_v43 = vunpack.i.h.bf16 %v6010_v21  ;;  %v6011_v60 = vunpack.i.l.bf16 %v6010_v21  ;;  %v6017_v44 = vunpack.i.h.bf16 %v6015_v16  ;;  %v6016_v1 = vunpack.i.l.bf16 %v6015_v16 }
 0x15e   : > { %v2368_v40 = vpack.c.bf16 %v2339_v42, %v2338_v8 }
 0x15f   : > { %1286 = vrot.lane.b32.xlu1 %v1209_v32, %s10567_s12  ;;  %v2049_v19 = vsel %vm2025_vm7, %v7630_v12, %v6012_v43  ;;  %v2048_v15 = vsel %vm2025_vm7, %v7492_v30, %v6011_v60 }
 0x160   : > { %1088 = vrot.lane.b32.xlu0 %v1011_v38, %s10560_s29  ;;  %5438 = vmatmul.mubr.msk.bf16.gmra.mrb[44].mxu0 %vm10562_vm15, %v2368_v40  ;;  %v6020_v50 = vpop.permute.xlu0 %6019  ;;  %v6025_v51 = vpop.permute.xlu1 %6024  ;;  %v2088_v63 = vsel %vm2065_vm8, %v2048_v15, %v6016_v1  ;;  %v2089_v39 = vsel %vm2065_vm8, %v2049_v19, %v6017_v44 }
 0x161   : > { %v6022_v47 = vunpack.i.h.bf16 %v6020_v50  ;;  %v6021_v54 = vunpack.i.l.bf16 %v6020_v50  ;;  %5441 = vmatprep.mubr.msk.bf16.mxu0 %vm6788_vm6, %v10619_v13  ;;  %v6027_v22 = vunpack.i.h.bf16 %v6025_v51  ;;  %v6026_v20 = vunpack.i.l.bf16 %v6025_v51 }
 0x163   : > { %v2130_v30 = vsel %vm10566_vm9, %v2088_v63, %v6021_v54  ;;  %v2131_v12 = vsel %vm10566_vm9, %v2089_v39, %v6022_v47 }
 0x164   : > { %1483 = vrot.lane.b32.xlu0 %v8797_v36, %s10559_s13  ;;  %v6030_v35 = vpop.permute.xlu0 %6029  ;;  %v6035_v31 = vpop.permute.xlu1 %6034  ;;  %v2172_v4 = vsel %vm2147_vm10, %v2130_v30, %v6026_v20  ;;  %v2173_v3 = vsel %vm2147_vm10, %v2131_v12, %v6027_v22  ;;  %s6792_s13 = smov 80  }
 0x165   : > { %v6032_v25 = vunpack.i.h.bf16 %v6030_v35  ;;  %v6031_v55 = vunpack.i.l.bf16 %v6030_v35  ;;  %v6037_v14 = vunpack.i.h.bf16 %v6035_v31  ;;  %v6036_v0 = vunpack.i.l.bf16 %v6035_v31 }
 0x167   : > { %v2214_v27 = vsel %vm10565_vm11, %v2172_v4, %v6031_v55  ;;  %v2215_v52 = vsel %vm10565_vm11, %v2173_v3, %v6032_v25 }
 0x168   : > { %v2256_v58 = vsel %vm10564_vm12, %v2214_v27, %v6036_v0  ;;  %v2257_v10 = vsel %vm10564_vm12, %v2215_v52, %v6037_v14 }
 0x169   : > { %v6040_v62 = vpop.permute.xlu0 %6039  ;;  %v6045_v36 = vpop.permute.xlu1 %6044 }
 0x16a   : > { %v6042_v41 = vunpack.i.h.bf16 %v6040_v62  ;;  %v6041_v9 = vunpack.i.l.bf16 %v6040_v62  ;;  %v6047_v37 = vunpack.i.h.bf16 %v6045_v36  ;;  %v6046_v34 = vunpack.i.l.bf16 %v6045_v36 }
 0x16c   : > { %v2298_v38 = vsel %vm10563_vm13, %v2256_v58, %v6041_v9  ;;  %v2299_v32 = vsel %vm10563_vm13, %v2257_v10, %v6042_v41 }
 0x16d   : > { %v2340_v8 = vsel %vm10555_vm14, %v2298_v38, %v6046_v34  ;;  %v2341_v42 = vsel %vm10555_vm14, %v2299_v32, %v6047_v37  ;;  %v6050_v21 = vpop.permute.xlu0 %6049  ;;  %v6055_v16 = vpop.permute.xlu1 %6054 }
 0x16e   : > { %v6052_v43 = vunpack.i.h.bf16 %v6050_v21  ;;  %v6051_v60 = vunpack.i.l.bf16 %v6050_v21  ;;  %v6057_v44 = vunpack.i.h.bf16 %v6055_v16  ;;  %v6056_v1 = vunpack.i.l.bf16 %v6055_v16 }
 0x16f   : > { %v2369_v40 = vpack.c.bf16 %v2341_v42, %v2340_v8 }
 0x170   : > { %v2051_v19 = vsel %vm2025_vm7, %v7812_v49, %v6052_v43  ;;  %v2050_v15 = vsel %vm2025_vm7, %v7670_v29, %v6051_v60 }
 0x171   : > { %5442 = vmatmul.mubr.msk.bf16.gmra.mrb[48].mxu0 %vm10562_vm15, %v2369_v40  ;;  %v6060_v50 = vpop.permute.xlu0 %6059  ;;  %v6065_v51 = vpop.permute.xlu1 %6064  ;;  %v2090_v63 = vsel %vm2065_vm8, %v2050_v15, %v6056_v1  ;;  %v2091_v39 = vsel %vm2065_vm8, %v2051_v19, %v6057_v44 }
 0x172   : > { %v6062_v47 = vunpack.i.h.bf16 %v6060_v50  ;;  %v6061_v54 = vunpack.i.l.bf16 %v6060_v50  ;;  %5445 = vmatprep.mubr.msk.bf16.mxu0 %vm6788_vm6, %v10619_v13  ;;  %v6067_v22 = vunpack.i.h.bf16 %v6065_v51  ;;  %v6066_v20 = vunpack.i.l.bf16 %v6065_v51 }
 0x174   : > { %v2132_v49 = vsel %vm10566_vm9, %v2090_v63, %v6061_v54  ;;  %v2133_v30 = vsel %vm10566_vm9, %v2091_v39, %v6062_v47 }
 0x175   : > { %v6070_v29 = vpop.permute.xlu0 %6069  ;;  %v6075_v12 = vpop.permute.xlu1 %6074  ;;  %v2174_v25 = vsel %vm2147_vm10, %v2132_v49, %v6066_v20  ;;  %v2175_v55 = vsel %vm2147_vm10, %v2133_v30, %v6067_v22 }
 0x176   : > { %v6072_v35 = vunpack.i.h.bf16 %v6070_v29  ;;  %v6071_v31 = vunpack.i.l.bf16 %v6070_v29  ;;  %v6077_v4 = vunpack.i.h.bf16 %v6075_v12  ;;  %v6076_v3 = vunpack.i.l.bf16 %v6075_v12 }
 0x178   : > { %v2216_v14 = vsel %vm10565_vm11, %v2174_v25, %v6071_v31  ;;  %v2217_v0 = vsel %vm10565_vm11, %v2175_v55, %v6072_v35 }
 0x179   : > { %v6085_v52 = vpop.permute.xlu1 %6084  ;;  %v2258_v37 = vsel %vm10564_vm12, %v2216_v14, %v6076_v3  ;;  %v2259_v34 = vsel %vm10564_vm12, %v2217_v0, %v6077_v4 }
 0x17a   : > { %v6080_v27 = vpop.permute.xlu0 %6079  ;;  %v6087_v41 = vunpack.i.h.bf16 %v6085_v52  ;;  %v6086_v9 = vunpack.i.l.bf16 %v6085_v52 }
 0x17b   : > { %v6082_v62 = vunpack.i.h.bf16 %v6080_v27  ;;  %v6081_v36 = vunpack.i.l.bf16 %v6080_v27 }
 0x17d   : > { %v2300_v58 = vsel %vm10563_vm13, %v2258_v37, %v6081_v36  ;;  %v2301_v10 = vsel %vm10563_vm13, %v2259_v34, %v6082_v62  ;;  %v6095_v42 = vpop.permute.xlu1 %6094 }
 0x17e   : > { %v2342_v38 = vsel %vm10555_vm14, %v2300_v58, %v6086_v9  ;;  %v2343_v32 = vsel %vm10555_vm14, %v2301_v10, %v6087_v41  ;;  %v6090_v8 = vpop.permute.xlu0 %6089  ;;  %v6097_v43 = vunpack.i.h.bf16 %v6095_v42  ;;  %v6096_v60 = vunpack.i.l.bf16 %v6095_v42 }
 0x17f   : > { %v6092_v21 = vunpack.i.h.bf16 %v6090_v8  ;;  %v6091_v16 = vunpack.i.l.bf16 %v6090_v8  ;;  %v2370_v44 = vpack.c.bf16 %v2343_v32, %v2342_v38 }
 0x180   : > { %v2500_v4 = vpop.f32.mrb[0].mxu0 }
 0x181   : > { %v2053_v1 = vsel %vm2025_vm7, %v7939_v53, %v6092_v21  ;;  %v2052_v40 = vsel %vm2025_vm7, %v7829_v18, %v6091_v16  ;;  %5446 = vmatmul.mubr.msk.bf16.gmra.mrb[52].mxu0 %vm10562_vm15, %v2370_v44  ;;  %v6105_v15 = vpop.permute.xlu1 %6104  ;;  %v5395_v3 = vpop.f32.mrb[1].mxu0 }
 0x182   : > { %v6100_v19 = vpop.permute.xlu0 %6099  ;;  %5449 = vmatprep.mubr.msk.bf16.mxu0 %vm6788_vm6, %v10619_v13  ;;  %v2092_v47 = vsel %vm2065_vm8, %v2052_v40, %v6096_v60  ;;  %v2093_v54 = vsel %vm2065_vm8, %v2053_v1, %v6097_v43  ;;  %v6107_v63 = vunpack.i.h.bf16 %v6105_v15  ;;  %v6106_v39 = vunpack.i.l.bf16 %v6105_v15  ;;  %v2502_v0 = vpop.f32.mrb[2].mxu0 }
 0x183   : > { %v6102_v50 = vunpack.i.h.bf16 %v6100_v19  ;;  %v6101_v51 = vunpack.i.l.bf16 %v6100_v19  ;;  %v5396_v9 = vpop.f32.mrb[3].mxu0 }
 0x185   : > { %v2134_v53 = vsel %vm10566_vm9, %v2092_v47, %v6101_v51  ;;  %v2135_v22 = vsel %vm10566_vm9, %v2093_v54, %v6102_v50  ;;  %v6115_v20 = vpop.permute.xlu1 %6114  ;;  %v8950_v47 = vld [vmem:[%s10508_s2] ss:$0 sm:$0xff] }
 0x186   : > { %v6110_v18 = vpop.permute.xlu0 %6109  ;;  %v2176_v29 = vsel %vm2147_vm10, %v2134_v53, %v6106_v39  ;;  %v2177_v12 = vsel %vm2147_vm10, %v2135_v22, %v6107_v63  ;;  %v6117_v35 = vunpack.i.h.bf16 %v6115_v20  ;;  %v6116_v31 = vunpack.i.l.bf16 %v6115_v20 }
 0x187   : > { %v6112_v49 = vunpack.i.h.bf16 %v6110_v18  ;;  %v6111_v30 = vunpack.i.l.bf16 %v6110_v18 }
 0x189   : > { %v2218_v25 = vsel %vm10565_vm11, %v2176_v29, %v6111_v30  ;;  %v2219_v55 = vsel %vm10565_vm11, %v2177_v12, %v6112_v49  ;;  %v6125_v62 = vpop.permute.xlu1 %6124 }
 0x18a   : > { %v6120_v14 = vpop.permute.xlu0 %6119  ;;  %v2260_v36 = vsel %vm10564_vm12, %v2218_v25, %v6116_v31  ;;  %v2261_v41 = vsel %vm10564_vm12, %v2219_v55, %v6117_v35  ;;  %v6127_v37 = vunpack.i.h.bf16 %v6125_v62  ;;  %v6126_v34 = vunpack.i.l.bf16 %v6125_v62 }
 0x18b   : > { %v6122_v27 = vunpack.i.h.bf16 %v6120_v14  ;;  %v6121_v52 = vunpack.i.l.bf16 %v6120_v14 }
 0x18d   : > { %v2302_v58 = vsel %vm10563_vm13, %v2260_v36, %v6121_v52  ;;  %v2303_v10 = vsel %vm10563_vm13, %v2261_v41, %v6122_v27  ;;  %v6135_v43 = vpop.permute.xlu1 %6134 }
 0x18e   : > { %v2344_v38 = vsel %vm10555_vm14, %v2302_v58, %v6126_v34  ;;  %v2345_v32 = vsel %vm10555_vm14, %v2303_v10, %v6127_v37  ;;  %v6130_v8 = vpop.permute.xlu0 %6129  ;;  %v6137_v60 = vunpack.i.h.bf16 %v6135_v43  ;;  %v6136_v44 = vunpack.i.l.bf16 %v6135_v43 }
 0x18f   : > { %v2371_v42 = vpack.c.bf16 %v2345_v32, %v2344_v38  ;;  %v6132_v21 = vunpack.i.h.bf16 %v6130_v8  ;;  %v6131_v16 = vunpack.i.l.bf16 %v6130_v8  ;;  %v2506_v22 = vpop.f32.mrb[4].mxu0 }
 0x190   : > { %v2507_v18 = vadd.f32 %v8950_v47, %v2506_v22  ;;  %v5399_v20 = vpop.f32.mrb[5].mxu0 }
 0x191   : > { %v2055_v1 = vsel %vm2025_vm7, %v8103_v11, %v6132_v21  ;;  %v2054_v40 = vsel %vm2025_vm7, %v7952_v5, %v6131_v16  ;;  %5450 = vmatmul.mubr.msk.bf16.gmra.mrb[56].mxu0 %vm10562_vm15, %v2371_v42  ;;  %v6145_v51 = vpop.permute.xlu1 %6144  ;;  %v2509_v12 = vpop.f32.mrb[6].mxu0 }
 0x192   : > { %v6140_v19 = vpop.permute.xlu0 %6139  ;;  %5453 = vmatprep.mubr.msk.bf16.mxu0 %vm6788_vm6, %v10619_v13  ;;  %v2094_v54 = vsel %vm2065_vm8, %v2054_v40, %v6136_v44  ;;  %v2095_v11 = vsel %vm2065_vm8, %v2055_v1, %v6137_v60  ;;  %v6147_v63 = vunpack.i.h.bf16 %v6145_v51  ;;  %v6146_v5 = vunpack.i.l.bf16 %v6145_v51  ;;  %v5400_v0 = vpop.f32.mrb[7].mxu0 }
 0x193   : > { %v6142_v15 = vunpack.i.h.bf16 %v6140_v19  ;;  %v6141_v50 = vunpack.i.l.bf16 %v6140_v19  ;;  %v2663_v55 = vmax.f32 %v2507_v18, 0.0  ;;  %v8960_v4 = vadd.f32 %v8950_v47, %v2509_v12 }
 0x195   : > { %v2136_v39 = vsel %vm10566_vm9, %v2094_v54, %v6141_v50  ;;  %v2137_v53 = vsel %vm10566_vm9, %v2095_v11, %v6142_v15  ;;  %v6155_v25 = vpop.permute.xlu1 %6154  ;;  %v2664_v62 = vmax.f32 %v8960_v4, 0.0  ;;  %v2739_v41 = vrot.slane %v2663_v55, 1 }
 0x196   : > { %v6150_v49 = vpop.permute.xlu0 %6149  ;;  %v2178_v30 = vsel %vm2147_vm10, %v2136_v39, %v6146_v5  ;;  %v2179_v29 = vsel %vm2147_vm10, %v2137_v53, %v6147_v63  ;;  %v6157_v3 = vunpack.i.h.bf16 %v6155_v25  ;;  %v6156_v14 = vunpack.i.l.bf16 %v6155_v25 }
 0x197   : > { %v6152_v35 = vunpack.i.h.bf16 %v6150_v49  ;;  %v6151_v31 = vunpack.i.l.bf16 %v6150_v49  ;;  %v2740_v10 = vrot.slane %v2664_v62, 1 }
 0x199   : > { %v2220_v27 = vsel %vm10565_vm11, %v2178_v30, %v6151_v31  ;;  %v2221_v52 = vsel %vm10565_vm11, %v2179_v29, %v6152_v35  ;;  %v6165_v58 = vpop.permute.xlu1 %6164  ;;  %v2741_v16 = vsel %vm624_vm1, %v2739_v41, %v2740_v10 }
 0x19a   : > { %v6160_v36 = vpop.permute.xlu0 %6159  ;;  %v2262_v9 = vsel %vm10564_vm12, %v2220_v27, %v6156_v14  ;;  %v2263_v38 = vsel %vm10564_vm12, %v2221_v52, %v6157_v3  ;;  %v6167_v32 = vunpack.i.h.bf16 %v6165_v58  ;;  %v6166_v8 = vunpack.i.l.bf16 %v6165_v58 }
 0x19b   : > { %v6162_v37 = vunpack.i.h.bf16 %v6160_v36  ;;  %v6161_v34 = vunpack.i.l.bf16 %v6160_v36  ;;  %v8974_v1 = vmax.f32 %v2663_v55, %v2741_v16 }
 0x19d   : > { %v2304_v42 = vsel %vm10563_vm13, %v2262_v9, %v6161_v34  ;;  %v2305_v21 = vsel %vm10563_vm13, %v2263_v38, %v6162_v37  ;;  %v6175_v50 = vpop.permute.xlu1 %6174 }
 0x19e   : > { %v2346_v43 = vsel %vm10555_vm14, %v2304_v42, %v6166_v8  ;;  %v2347_v60 = vsel %vm10555_vm14, %v2305_v21, %v6167_v32  ;;  %v6170_v44 = vpop.permute.xlu0 %6169  ;;  %v6177_v51 = vunpack.i.h.bf16 %v6175_v50  ;;  %v6176_v54 = vunpack.i.l.bf16 %v6175_v50 }
 0x19f   : > { %v2372_v40 = vpack.c.bf16 %v2347_v60, %v2346_v43  ;;  %v6172_v19 = vunpack.i.h.bf16 %v6170_v44  ;;  %v6171_v15 = vunpack.i.l.bf16 %v6170_v44 }
 0x1a1   : > { %v2057_v11 = vsel %vm2025_vm7, %v8279_v46, %v6172_v19  ;;  %v2056_v63 = vsel %vm2025_vm7, %v8108_v45, %v6171_v15  ;;  %5454 = vmatmul.mubr.msk.bf16.gmra.mrb[60].mxu0 %vm10562_vm15, %v2372_v40  ;;  %v6185_v22 = vpop.permute.xlu1 %6184  ;;  %v2514_v45 = vpop.f32.mrb[8].mxu0 }
 0x1a2   : > { %v6180_v5 = vpop.permute.xlu0 %6179  ;;  %5457 = vmatprep.mubr.msk.bf16.mxu0 %vm6788_vm6, %v10619_v13  ;;  %v2096_v18 = vsel %vm2065_vm8, %v2056_v63, %v6176_v54  ;;  %v2097_v20 = vsel %vm2065_vm8, %v2057_v11, %v6177_v51  ;;  %v6187_v49 = vunpack.i.h.bf16 %v6185_v22  ;;  %v6186_v30 = vunpack.i.l.bf16 %v6185_v22  ;;  %v5403_v35 = vpop.f32.mrb[9].mxu0 }
 0x1a3   : > { %v6182_v39 = vunpack.i.h.bf16 %v6180_v5  ;;  %v6181_v53 = vunpack.i.l.bf16 %v6180_v5  ;;  %v2515_v12 = vadd.f32 %v8950_v47, %v2514_v45  ;;  %v2517_v0 = vpop.f32.mrb[10].mxu0 }
 0x1a4   : > { %v8991_v36 = vadd.f32 %v8950_v47, %v2517_v0  ;;  %v5404_v37 = vpop.f32.mrb[11].mxu0 }
 0x1a5   : > { %v2138_v46 = vsel %vm10566_vm9, %v2096_v18, %v6181_v53  ;;  %v2139_v29 = vsel %vm10566_vm9, %v2097_v20, %v6182_v39  ;;  %v6195_v27 = vpop.permute.xlu1 %6194  ;;  %v2665_v52 = vmax.f32 %v2515_v12, 0.0 }
 0x1a6   : > { %v6190_v31 = vpop.permute.xlu0 %6189  ;;  %v2180_v25 = vsel %vm2147_vm10, %v2138_v46, %v6186_v30  ;;  %v2181_v55 = vsel %vm2147_vm10, %v2139_v29, %v6187_v49  ;;  %v6197_v41 = vunpack.i.h.bf16 %v6195_v27  ;;  %v6196_v9 = vunpack.i.l.bf16 %v6195_v27 }
 0x1a7   : > { %v6192_v3 = vunpack.i.h.bf16 %v6190_v31  ;;  %v6191_v14 = vunpack.i.l.bf16 %v6190_v31  ;;  %v2742_v38 = vrot.slane %v2665_v52, 1  ;;  %v2666_v32 = vmax.f32 %v8991_v36, 0.0 }
 0x1a9   : > { %v2222_v34 = vsel %vm10565_vm11, %v2180_v25, %v6191_v14  ;;  %v2223_v58 = vsel %vm10565_vm11, %v2181_v55, %v6192_v3  ;;  %v6205_v60 = vpop.permute.xlu1 %6204  ;;  %v2743_v44 = vsel %vm624_vm1, %v2740_v10, %v2742_v38  ;;  %v2744_v40 = vrot.slane %v2666_v32, 1 }
 0x1aa   : > { %v6200_v8 = vpop.permute.xlu0 %6199  ;;  %v2264_v42 = vsel %vm10564_vm12, %v2222_v34, %v6196_v9  ;;  %v2265_v21 = vsel %vm10564_vm12, %v2223_v58, %v6197_v41  ;;  %v6207_v19 = vunpack.i.h.bf16 %v6205_v60  ;;  %v6206_v15 = vunpack.i.l.bf16 %v6205_v60 }
 0x1ab   : > { %v6202_v16 = vunpack.i.h.bf16 %v6200_v8  ;;  %v6201_v43 = vunpack.i.l.bf16 %v6200_v8  ;;  %v9003_v50 = vmax.f32 %v2664_v62, %v2743_v44  ;;  %v2745_v11 = vsel %vm624_vm1, %v2742_v38, %v2744_v40 }
 0x1ac   : > { %v9010_v39 = vmax.f32 %v2665_v52, %v2745_v11 }
 0x1ad   : > { %v2306_v51 = vsel %vm10563_vm13, %v2264_v42, %v6201_v43  ;;  %v2307_v54 = vsel %vm10563_vm13, %v2265_v21, %v6202_v16  ;;  %v6215_v20 = vpop.permute.xlu1 %6214 }
 0x1ae   : > { %v2348_v63 = vsel %vm10555_vm14, %v2306_v51, %v6206_v15  ;;  %v2349_v5 = vsel %vm10555_vm14, %v2307_v54, %v6207_v19  ;;  %v6210_v10 = vpop.permute.xlu0 %6209  ;;  %v6217_v4 = vunpack.i.h.bf16 %v6215_v20  ;;  %v6216_v62 = vunpack.i.l.bf16 %v6215_v20 }
 0x1af   : > { %v2373_v53 = vpack.c.bf16 %v2349_v5, %v2348_v63  ;;  %v6212_v22 = vunpack.i.h.bf16 %v6210_v10  ;;  %v6211_v18 = vunpack.i.l.bf16 %v6210_v10 }
 0x1b1   : > { %v2059_v49 = vsel %vm2025_vm7, %v8426_v33, %v6212_v22  ;;  %v2058_v30 = vsel %vm2025_vm7, %v8284_v6, %v6211_v18  ;;  %5458 = vmatmul.mubr.msk.bf16.gmra.mrb[64].mxu0 %vm10562_vm15, %v2373_v53  ;;  %v6225_v12 = vpop.permute.xlu1 %6224  ;;  %v2522_v6 = vpop.f32.mrb[12].mxu0 }
 0x1b2   : > { %v6220_v46 = vpop.permute.xlu0 %6219  ;;  %5461 = vmatprep.mubr.msk.bf16.mxu0 %vm6788_vm6, %v10619_v13  ;;  %v2098_v35 = vsel %vm2065_vm8, %v2058_v30, %v6216_v62  ;;  %v2099_v31 = vsel %vm2065_vm8, %v2059_v49, %v6217_v4  ;;  %v6227_v25 = vunpack.i.h.bf16 %v6225_v12  ;;  %v6226_v55 = vunpack.i.l.bf16 %v6225_v12  ;;  %v5407_v0 = vpop.f32.mrb[13].mxu0 }
 0x1b3   : > { %v6222_v29 = vunpack.i.h.bf16 %v6220_v46  ;;  %v6221_v45 = vunpack.i.l.bf16 %v6220_v46  ;;  %v2523_v14 = vadd.f32 %v8950_v47, %v2522_v6  ;;  %v2525_v34 = vpop.f32.mrb[14].mxu0  ;;  %v2920_v49 = vrot.slane %v9010_v39, 2 }
 0x1b4   : > { %v9027_v8 = vadd.f32 %v8950_v47, %v2525_v34  ;;  %v5408_v16 = vpop.f32.mrb[15].mxu0 }
 0x1b5   : > { %v2140_v33 = vsel %vm10566_vm9, %v2098_v35, %v6221_v45  ;;  %v2141_v3 = vsel %vm10566_vm9, %v2099_v31, %v6222_v29  ;;  %v6235_v58 = vpop.permute.xlu1 %6234  ;;  %v2667_v38 = vmax.f32 %v2523_v14, 0.0 }
 0x1b6   : > { %v6230_v27 = vpop.permute.xlu0 %6229  ;;  %v2182_v52 = vsel %vm2147_vm10, %v2140_v33, %v6226_v55  ;;  %v2183_v41 = vsel %vm2147_vm10, %v2141_v3, %v6227_v25  ;;  %v6237_v42 = vunpack.i.h.bf16 %v6235_v58  ;;  %v6236_v21 = vunpack.i.l.bf16 %v6235_v58 }
 0x1b7   : > { %v6232_v9 = vunpack.i.h.bf16 %v6230_v27  ;;  %v6231_v37 = vunpack.i.l.bf16 %v6230_v27  ;;  %v2746_v44 = vrot.slane %v2667_v38, 1  ;;  %v2668_v19 = vmax.f32 %v9027_v8, 0.0 }
 0x1b9   : > { %v2224_v43 = vsel %vm10565_vm11, %v2182_v52, %v6231_v37  ;;  %v2225_v60 = vsel %vm10565_vm11, %v2183_v41, %v6232_v9  ;;  %v6245_v5 = vpop.permute.xlu1 %6244  ;;  %v2747_v10 = vsel %vm624_vm1, %v2744_v40, %v2746_v44  ;;  %v9037_v53 = vrot.slane %v2668_v19, 1 }
 0x1ba   : > { %v6240_v15 = vpop.permute.xlu0 %6239  ;;  %v2266_v51 = vsel %vm10564_vm12, %v2224_v43, %v6236_v21  ;;  %v2267_v54 = vsel %vm10564_vm12, %v2225_v60, %v6237_v42  ;;  %v6247_v22 = vunpack.i.h.bf16 %v6245_v5  ;;  %v6246_v18 = vunpack.i.l.bf16 %v6245_v5 }
 0x1bb   : > { %v6242_v11 = vunpack.i.h.bf16 %v6240_v15  ;;  %v6241_v63 = vunpack.i.l.bf16 %v6240_v15  ;;  %v2854_v20 = vmax.f32 %v2666_v32, %v2747_v10  ;;  %v2749_v30 = vsel %vm624_vm1, %v2746_v44, %v9037_v53 }
 0x1bc   : > { %v9048_v12 = vmax.f32 %v2667_v38, %v2749_v30 }
 0x1bd   : > { %v2308_v4 = vsel %vm10563_vm13, %v2266_v51, %v6241_v63  ;;  %v2309_v62 = vsel %vm10563_vm13, %v2267_v54, %v6242_v11  ;;  %v2921_v45 = vrot.slane %v2854_v20, 2  ;;  %v6255_v32 = vpop.permute.xlu1 %6254 }
 0x1be   : > { %v2350_v40 = vsel %vm10555_vm14, %v2308_v4, %v6246_v18  ;;  %v2351_v46 = vsel %vm10555_vm14, %v2309_v62, %v6247_v22  ;;  %v6250_v29 = vpop.permute.xlu0 %6249  ;;  %v6257_v25 = vunpack.i.h.bf16 %v6255_v32  ;;  %v6256_v55 = vunpack.i.l.bf16 %v6255_v32 }
 0x1bf   : > { %v2374_v35 = vpack.c.bf16 %v2351_v46, %v2350_v40  ;;  %v6252_v36 = vunpack.i.h.bf16 %v6250_v29  ;;  %v6251_v31 = vunpack.i.l.bf16 %v6250_v29  ;;  %v2922_v33 = vsel %vm427_vm0, %v2920_v49, %v2921_v45 }
 0x1c0   : > { %v2923_v3 = vrot.slane %v9048_v12, 2  ;;  %v3000_v14 = vmax.f32 %v8974_v1, %v2922_v33  ;;  %vm3058_vm14 = vcmask 1040384  }
 0x1c1   : > { %v2061_v6 = vsel %vm2025_vm7, %v8578_v61, %v6252_v36  ;;  %5462 = vmatmul.mubr.msk.bf16.gmra.mrb[68].mxu0 %vm10562_vm15, %v2374_v35  ;;  %v2060_v0 = vsel %vm2025_vm7, %v8431_v57, %v6251_v31  ;;  %v6265_v34 = vpop.permute.xlu1 %6264 }
 0x1c2   : > { %v2101_v27 = vsel %vm2065_vm8, %v2061_v6, %v6257_v25  ;;  %v6260_v52 = vpop.permute.xlu0 %6259  ;;  %5465 = vmatprep.mubr.msk.bf16.mxu0 %vm6788_vm6, %v10619_v13  ;;  %v2924_v41 = vsel %vm427_vm0, %v2921_v45, %v2923_v3  ;;  %v2100_v61 = vsel %vm2065_vm8, %v2060_v0, %v6256_v55  ;;  %v3025_v1 = vrot.slane %v3000_v14, 3  ;;  %v2530_v60 = vpop.f32.mrb[16].mxu0 }
 0x1c3   : > { %v6262_v9 = vunpack.i.h.bf16 %v6260_v52  ;;  %v6261_v37 = vunpack.i.l.bf16 %v6260_v52  ;;  %v3027_v58 = vrot.slane %v3000_v14, 4  ;;  %v3029_v38 = vrot.slane %v3000_v14, 5  ;;  %v5411_v11 = vpop.f32.mrb[17].mxu0 }
 0x1c4   : > { %v3001_v57 = vmax.f32 %v9003_v50, %v2924_v41  ;;  %v6267_v16 = vunpack.i.h.bf16 %v6265_v34  ;;  %v6266_v43 = vunpack.i.l.bf16 %v6265_v34  ;;  %v2531_v22 = vadd.f32 %v8950_v47, %v2530_v60  ;;  %v2533_v18 = vpop.f32.mrb[18].mxu0 }
 0x1c5   : > { %v2142_v42 = vsel %vm10566_vm9, %v2100_v61, %v6261_v37  ;;  %v2143_v21 = vsel %vm10566_vm9, %v2101_v27, %v6262_v9  ;;  %v3059_v44 = vsel %vm3058_vm14, %v3025_v1, %v3027_v58  ;;  %v6275_v20 = vpop.permute.xlu1 %6274  ;;  %v9075_v30 = vadd.f32 %v8950_v47, %v2533_v18  ;;  %v5412_v40 = vpop.f32.mrb[19].mxu0 }
 0x1c6   : > { %v3032_v15 = vrot.slane %v3001_v57, 6  ;;  %v3034_v51 = vrot.slane %v3001_v57, 7  ;;  %v3036_v54 = vrot.slane %v3001_v57, 1  ;;  %v6270_v63 = vpop.permute.xlu0 %6269  ;;  %v3060_v5 = vsel %vm10557_vm5, %v3059_v44, %v3029_v38 }
 0x1c7   : > { %v2184_v10 = vsel %vm2147_vm10, %v2142_v42, %v6266_v43  ;;  %v2185_v50 = vsel %vm2147_vm10, %v2143_v21, %v6267_v16  ;;  %v6272_v62 = vunpack.i.h.bf16 %v6270_v63  ;;  %v6271_v49 = vunpack.i.l.bf16 %v6270_v63 }
 0x1c8   : > { %v3061_v4 = vsel %vm10556_vm4, %v3060_v5, %v3032_v15  ;;  %v2669_v29 = vmax.f32 %v2531_v22, 0.0  ;;  %v6277_v45 = vunpack.i.h.bf16 %v6275_v20  ;;  %v6276_v35 = vunpack.i.l.bf16 %v6275_v20  ;;  %v10678_v22 = vld [vmem:[#allocation15_spill] sm:$0xff] }
 0x1c9   : > { %v3062_v46 = vsel %vm445_vm3, %v3061_v4, %v3034_v51  ;;  %v2226_v32 = vsel %vm10565_vm11, %v2184_v10, %v6271_v49  ;;  %v2227_v31 = vsel %vm10565_vm11, %v2185_v50, %v6272_v62  ;;  %v2670_v25 = vmax.f32 %v9075_v30, 0.0  ;;  %v6285_v27 = vpop.permute.xlu1 %6284 }
 0x1ca   : > { %v3063_v36 = vsel %vm1132_vm2, %v3062_v46, %v3001_v57  ;;  %v6280_v55 = vpop.permute.xlu0 %6279  ;;  %v2750_v33 = vrot.slane %v2669_v29, 1  ;;  %v2268_v14 = vsel %vm10564_vm12, %v2226_v32, %v6276_v35  ;;  %v2269_v0 = vsel %vm10564_vm12, %v2227_v31, %v6277_v45 }
 0x1cb   : > { %v3064_v6 = vsel %vm427_vm0, %v3063_v36, %v3036_v54  ;;  %v2752_v52 = vrot.slane %v2670_v25, 1  ;;  %v9087_v41 = vunpack.i.h.bf16 %v6280_v55  ;;  %v6281_v61 = vunpack.i.l.bf16 %v6280_v55 }
 0x1cc   : > { %v9089_v9 = vunpack.i.h.bf16 %v6285_v27  ;;  %v2751_v37 = vsel %vm624_vm1, %v9037_v53, %v2750_v33  ;;  %v6286_v34 = vunpack.i.l.bf16 %v6285_v27  ;;  %vm10676_vm4 = vcmask 261120  }
 0x1cd   : > { %v9095_v1 = vmax.f32 %v2668_v19, %v2751_v37  ;;  %v2753_v58 = vsel %vm624_vm1, %v2750_v33, %v2752_v52  ;;  %v2310_v38 = vsel %vm10563_vm13, %v2268_v14, %v6281_v61  ;;  %v2311_v57 = vsel %vm10563_vm13, %v2269_v0, %v9087_v41  ;;  %vm10677_vm5 = vmmov %vm10676_vm4  ;;  %v6295_v60 = vpop.permute.xlu1 %6294 }
 0x1ce   : > { %v6290_v42 = vpop.permute.xlu0 %6289  ;;  %v9101_v21 = vmax.f32 %v2669_v29, %v2753_v58  ;;  %v2352_v16 = vsel %vm10676_vm4, %v2310_v38, %v6286_v34  ;;  %v2353_v53 = vsel %vm10677_vm5, %v2311_v57, %v9089_v9  ;;  %v6297_v15 = vunpack.i.h.bf16 %v6295_v60  ;;  %vm10684_vm5 = vmmov %vm10676_vm4 }
 0x1cf   : > { %v6292_v43 = vunpack.i.h.bf16 %v6290_v42  ;;  %v2925_v8 = vrot.slane %v9095_v1, 2  ;;  %v2375_v19 = vpack.c.bf16 %v2353_v53, %v2352_v16  ;;  %v6291_v44 = vunpack.i.l.bf16 %v6290_v42 }
 0x1d0   : > { %v6296_v54 = vunpack.i.l.bf16 %v6295_v60  ;;  %v10679_v18 = vunpack.i.l.bf16 %v10678_v22 }
 0x1d1   : > { %v2063_v51 = vsel %vm2025_vm7, %v8678_v23, %v6292_v43  ;;  %v2926_v11 = vsel %vm427_vm0, %v2923_v3, %v2925_v8  ;;  %5466 = vmatmul.mubr.msk.bf16.gmra.mrb[72].mxu0 %vm10562_vm15, %v2375_v19  ;;  %v2062_v10 = vsel %vm2025_vm7, %v8583_v56, %v6291_v44  ;;  %v1287_v4 = vpop.permute.xlu1 %1286  ;;  %v10680_v3 = vld [vmem:[#allocation16_spill] sm:$0xff]  ;;  %v10682_v56 = vld [vmem:[#allocation17_spill] sm:$0xff] }
 0x1d2   : > { %v2103_v63 = vsel %vm2065_vm8, %v2063_v51, %v6297_v15  ;;  %v1089_v5 = vpop.permute.xlu0 %1088  ;;  %v3002_v50 = vmax.f32 %v9010_v39, %v2926_v11  ;;  %v2102_v23 = vsel %vm2065_vm8, %v2062_v10, %v6296_v54  ;;  %5469 = vmatprep.mubr.msk.bf16.mxu0 %vm6788_vm6, %v10619_v13  ;;  %v10681_v62 = vunpack.i.l.bf16 %v10680_v3 }
 0x1d3   : > { %v2145_v20 = vsel %vm10566_vm9, %v2103_v63, %v10679_v18  ;;  %v2144_v40 = vsel %vm10566_vm9, %v2102_v23, %v1089_v5  ;;  %v10683_v29 = vunpack.i.l.bf16 %v10682_v56  ;;  %v2538_v35 = vpop.f32.mrb[20].mxu0  ;;  %v2927_v63 = vrot.slane %v9101_v21, 2 }
 0x1d4   : > { %v2187_v49 = vsel %vm2147_vm10, %v2145_v20, %v10681_v62  ;;  %v3039_v46 = vrot.slane %v3002_v50, 2  ;;  %v2186_v36 = vsel %vm2147_vm10, %v2144_v40, %v1287_v4  ;;  %v2539_v32 = vadd.f32 %v8950_v47, %v2538_v35  ;;  %v5415_v31 = vpop.f32.mrb[21].mxu0  ;;  %v10685_v50 = vld [vmem:[#allocation5_spill] sm:$0xff] }
 0x1d5   : > { %v2229_v39 = vsel %vm10565_vm11, %v2187_v49, %v10683_v29  ;;  %v2541_v27 = vpop.f32.mrb[22].mxu0  ;;  %v6541_v35 = vld [vmem:[%s10509_s3] sm:$0xff]   ;;  %vm10707_vm9 = vcmask 1041408  }
 0x1d6   : > { %v1484_v55 = vpop.permute.xlu0 %1483  ;;  %v2271_v33 = vsel %vm10564_vm12, %v2229_v39, %v6277_v45  ;;  %v3065_v14 = vsel %vm624_vm1, %v3064_v6, %v3039_v46  ;;  %v2671_v34 = vmax.f32 %v2539_v32, 0.0  ;;  %v9139_v38 = vadd.f32 %v8950_v47, %v2541_v27  ;;  %v5416_v57 = vpop.f32.mrb[23].mxu0 }
 0x1d7   : > { %v2228_v0 = vsel %vm10565_vm11, %v2186_v36, %v1484_v55  ;;  %v2313_v61 = vsel %vm10563_vm13, %v2271_v33, %v9087_v41  ;;  %v3237_v37 = vrot.slane %v3065_v14, 2  ;;  %v6791_v14 = vmov 0  }
 0x1d8   : > { %v2270_v58 = vsel %vm10564_vm12, %v2228_v0, %v6277_v45  ;;  %v2355_v6 = vsel %vm10676_vm4, %v2313_v61, %v9089_v9  ;;  %v2754_v43 = vrot.slane %v2671_v34, 1  ;;  %v2672_v60 = vmax.f32 %v9139_v38, 0.0  ;;  %3885 = vmatprep.subr.bf16.mxu1 %v6791_v14  ;;  %v6545_v38 = vld [vmem:[%s10509_s3 + $0x20] sm:$0xff]  }
 0x1d9   : > { %v2312_v42 = vsel %vm10563_vm13, %v2270_v58, %v9087_v41  ;;  %v9146_v16 = vsel %vm427_vm0, 0.0, %v3237_v37  ;;  %v9149_v53 = vsel %vm427_vm0, %v3237_v37, 0.0  ;;  %3886 = vmatpush1.bf16.msra.mxu1 %v6541_v35  ;;  %vm10687_vm4 = vcmask 1042432  }
 0x1da   : > { %v2354_v45 = vsel %vm10684_vm5, %v2312_v42, %v9089_v9  ;;  %v3338_v8 = vrot.slane %v9146_v16, 2  ;;  %v3277_v19 = vrot.slane %v9146_v16, 1  ;;  %v3439_v44 = vrot.slane %v9146_v16, 3  ;;  %3887 = vmatprep.subr.bf16.mxu1 %v6791_v14 }
 0x1db   : > { %v2755_v15 = vsel %vm624_vm1, %v2752_v52, %v2754_v43  ;;  %v9160_v51 = vrot.slane %v2672_v60, 1  ;;  %v2376_v54 = vpack.c.bf16 %v2355_v6, %v2354_v45  ;;  %v3441_v11 = vrot.slane %v9149_v53, 3 }
 0x1dc   : > { %v2858_v5 = vmax.f32 %v2670_v25, %v2755_v15  ;;  %v3339_v10 = vsel %vm427_vm0, %v10674_v28, %v3338_v8  ;;  %v3278_v52 = vsel %vm624_vm1, %v10685_v50, %v3277_v19  ;;  %v3440_v30 = vsel %vm1132_vm2, %v10675_v48, %v3439_v44 }
 0x1dd   : > { %v2757_v22 = vsel %vm624_vm1, %v2754_v43, %v9160_v51  ;;  %5470 = vmatmul.mubr.msk.bf16.gmra.mrb[76].mxu0 %vm10562_vm15, %v2376_v54  ;;  %v6303_v18 = vpack.i.bf16 %v3339_v10, %v10674_v28  ;;  %v6298_v20 = vpack.i.bf16 %v3278_v52, %v10685_v50  ;;  %v3442_v4 = vsel %vm1132_vm2, %v3439_v44, %v3441_v11 }
 0x1de   : > { %v2928_v25 = vrot.slane %v2858_v5, 2  ;;  %v2859_v23 = vmax.f32 %v2671_v34, %v2757_v22  ;;  %v3340_v3 = vrot.slane %v9149_v53, 2  ;;  %5473 = vmatprep.mubr.msk.bf16.mxu0 %vm6788_vm6, %v10619_v13  ;;  %v3501_v62 = vrot.slane %v9146_v16, 4 }
 0x1df   : > { %6304 = vrot.lane.b32.xlu0 %v6303_v18, %s10582_s22  ;;  %6299 = vrot.lane.b32.xlu1 %v6298_v20, %s10567_s12  ;;  %v3503_v49 = vrot.slane %v9149_v53, 4  ;;  %v6313_v39 = vpack.i.bf16 %v3442_v4, %v3440_v30  ;;  %vm10686_vm6 = vcmask 1041408   ;;  %v6544_v18 = vld [vmem:[%s10509_s3 + $0x18] sm:$0xff]   ;;  %vm3748_vm15 = vcmask 654336  }
 0x1e0   : > { %v2929_v40 = vsel %vm427_vm0, %v2927_v63, %v2928_v25  ;;  %v2930_v46 = vrot.slane %v2859_v23, 2  ;;  %v9193_v56 = vsel %vm427_vm0, %v3338_v8, %v3340_v3  ;;  %v3502_v32 = vsel %vm445_vm3, %v10672_v2, %v3501_v62  ;;  %v6543_v63 = vld [vmem:[%s10509_s3 + $0x10] sm:$0xff]   ;;  %vm10688_vm5 = vmmov %vm10686_vm6 }
 0x1e1   : > { %v3003_v29 = vmax.f32 %v9048_v12, %v2929_v40  ;;  %v6308_v13 = vpack.i.bf16 %v9193_v56, %v3339_v10  ;;  %v9206_v31 = vsel %vm445_vm3, %v3501_v62, %v3503_v49  ;;  %v3660_v62 = vrot.slane %v9146_v16, 6 }
 0x1e2   : > { %v2931_v36 = vsel %vm427_vm0, %v2928_v25, %v2930_v46  ;;  %v2546_v33 = vpop.f32.mrb[24].mxu0  ;;  %v6318_v34 = vpack.i.bf16 %v9206_v31, %v3502_v32  ;;  %v3661_v40 = vrot.slane %v9149_v53, 6  ;;  %v3603_v32 = vrot.slane %v9149_v53, 5 }
 0x1e3   : > { %v3042_v55 = vrot.slane %v3003_v29, 7  ;;  %v3004_v12 = vmax.f32 %v9095_v1, %v2931_v36  ;;  %6314 = vrot.lane.b32.xlu0 %v6313_v39, %s10571_s16  ;;  %6309 = vrot.lane.b32.xlu1 %v6308_v13, %s6790_s15  ;;  %v5419_v37 = vpop.f32.mrb[25].mxu0  ;;  %v6542_v1 = vld [vmem:[%s10509_s3 + $0x8] sm:$0xff]   ;;  %v2547_v58 = vadd.f32 %v8950_v47, %v2546_v33  ;;  %v3602_v36 = vrot.slane %v9146_v16, 5 }
 0x1e4   : > { %v2549_v57 = vpop.f32.mrb[26].mxu0  ;;  %3888 = vmatpush1.bf16.msra.mxu1 %v6542_v1  ;;  %v3279_v37 = vrot.slane %v9149_v53, 1  ;;  %vm3762_vm13 = vcmask 785408   ;;  %vm10700_vm12 = vcmask 1042432  }
 0x1e5   : > { %v3045_v0 = vrot.slane %v3004_v12, 1  ;;  %v3047_v27 = vrot.slane %v3004_v12, 2  ;;  %v3066_v61 = vsel %vm3058_vm14, %v3042_v55, %v3004_v12  ;;  %v3049_v42 = vrot.slane %v3004_v12, 3  ;;  %v5420_v45 = vpop.f32.mrb[27].mxu0  ;;  %3889 = vmatprep.subr.bf16.mxu1 %v6791_v14  ;;  %vm10701_vm11 = vmmov %vm10700_vm12 }
 0x1e6   : > { %v2550_v43 = vadd.f32 %v8950_v47, %v2549_v57  ;;  %v2673_v44 = vmax.f32 %v2547_v58, 0.0 }
 0x1e7   : > { %v3067_v6 = vsel %vm10686_vm6, %v3066_v61, %v3045_v0  ;;  %6319 = vrot.lane.b32.xlu1 %v6318_v34, %s6792_s13  ;;  %v3662_v61 = vsel %vm10688_vm5, %v3660_v62, %v3661_v40  ;;  %vm10689_vm6 = vmmov %vm10687_vm4  ;;  %v6549_v62 = vld [vmem:[%s10509_s3 + $0x40] sm:$0xff]  }
 0x1e8   : > { %v3068_v8 = vsel %vm10687_vm4, %v3067_v6, %v3047_v27  ;;  %v2674_v15 = vmax.f32 %v2550_v43, 0.0  ;;  %v2758_v5 = vrot.slane %v2673_v44, 1  ;;  %3890 = vmatpush1.bf16.msra.mxu1 %v6543_v63  ;;  %v3604_v6 = vsel %vm10689_vm6, %v3602_v36, %v3603_v32  ;;  %vm10690_vm4 = vmmov %vm10688_vm5 }
 0x1e9   : > { %v3069_v54 = vsel %vm445_vm3, %v3068_v8, %v3049_v42  ;;  %3891 = vmatprep.subr.bf16.mxu1 %v6791_v14  ;;  %v6547_v42 = vld [vmem:[%s10509_s3 + $0x30] sm:$0xff]   ;;  %vm10691_vm5 = vmmov %vm10689_vm6 }
 0x1ea   : > { %v2760_v10 = vrot.slane %v2674_v15, 1  ;;  %v2759_v50 = vsel %vm624_vm1, %v9160_v51, %v2758_v5  ;;  %vm10692_vm6 = vmmov %vm10690_vm4 }
 0x1eb   : > { %v9232_v52 = vmax.f32 %v2672_v60, %v2759_v50 }
 0x1ec   : > { %v2761_v22 = vsel %vm624_vm1, %v2758_v5, %v2760_v10  ;;  %3892 = vmatpush1.bf16.msra.mxu1 %v6544_v18 }
 0x1ed   : > { %v9238_v20 = vmax.f32 %v2673_v44, %v2761_v22  ;;  %v2932_v30 = vrot.slane %v9232_v52, 2  ;;  %3893 = vmatprep.subr.bf16.mxu1 %v6791_v14 }
 0x1ef   : > { %v2933_v25 = vsel %vm427_vm0, %v2930_v46, %v2932_v30  ;;  %v6546_v46 = vld [vmem:[%s10509_s3 + $0x28] sm:$0xff]  }
 0x1f0   : > { %v3005_v60 = vmax.f32 %v9101_v21, %v2933_v25  ;;  %3894 = vmatpush1.bf16.msra.mxu1 %v6545_v38  ;;  %v6548_v38 = vld [vmem:[%s10509_s3 + $0x38] sm:$0xff]  }
 0x1f1   : > { %3895 = vmatprep.subr.bf16.mxu1 %v6791_v14 }
 0x1f2   : > { %v3052_v51 = vrot.slane %v3005_v60, 4  ;;  %v3054_v23 = vrot.slane %v3005_v60, 5  ;;  %v2554_v4 = vpop.f32.mrb[28].mxu0  ;;  %v3056_v13 = vrot.slane %v3005_v60, 6 }
 0x1f3   : > { %v2555_v29 = vadd.f32 %v8950_v47, %v2554_v4  ;;  %v5423_v39 = vpop.f32.mrb[29].mxu0 }
 0x1f4   : > { %v2557_v35 = vpop.f32.mrb[30].mxu0  ;;  %v3070_v21 = vsel %vm1132_vm2, %v3069_v54, %v3052_v51  ;;  %3896 = vmatpush1.bf16.msra.mxu1 %v6546_v46 }
 0x1f5   : > { %v2675_v55 = vmax.f32 %v2555_v29, 0.0  ;;  %v9259_v12 = vadd.f32 %v8950_v47, %v2557_v35  ;;  %v5424_v33 = vpop.f32.mrb[31].mxu0  ;;  %v3071_v0 = vsel %vm427_vm0, %v3070_v21, %v3054_v23  ;;  %3897 = vmatprep.subr.bf16.mxu1 %v6791_v14  ;;  %v3280_v23 = vsel %vm624_vm1, %v3277_v19, %v3279_v37 }
 0x1f6   : > { %v9263_v27 = vsel %vm624_vm1, %v3071_v0, %v3056_v13 }
 0x1f7   : > { %v2762_v34 = vrot.slane %v2675_v55, 1  ;;  %v2676_v1 = vmax.f32 %v9259_v12, 0.0  ;;  %v3663_v58 = vrot.slane %v9263_v27, 6  ;;  %v3605_v57 = vrot.slane %v9263_v27, 5 }
 0x1f8   : > { %v3505_v43 = vrot.slane %v9263_v27, 4  ;;  %v3342_v45 = vrot.slane %v9263_v27, 2  ;;  %v3281_v8 = vrot.slane %v9263_v27, 1  ;;  %3898 = vmatpush1.bf16.msra.mxu1 %v6547_v42 }
 0x1f9   : > { %v2763_v44 = vsel %vm624_vm1, %v2760_v10, %v2762_v34  ;;  %v2764_v54 = vrot.slane %v2676_v1, 1  ;;  %v3664_v63 = vsel %vm10690_vm4, %v3661_v40, %v3663_v58  ;;  %v3606_v5 = vsel %vm10691_vm5, %v3603_v32, %v3605_v57  ;;  %3899 = vmatprep.subr.bf16.mxu1 %v6791_v14  ;;  %vm10693_vm4 = vmmov %vm10691_vm5 }
 0x1fa   : > { %v9285_v50 = vmax.f32 %v2674_v15, %v2763_v44  ;;  %v3791_v22 = vpack.c.bf16 %v3664_v63, %v3662_v61  ;;  %v6328_v18 = vpack.i.bf16 %v3606_v5, %v3604_v6  ;;  %v9292_v30 = vsel %vm445_vm3, %v3503_v49, %v3505_v43  ;;  %vm10694_vm5 = vmmov %vm10692_vm6 }
 0x1fb   : > { %v2765_v10 = vsel %vm624_vm1, %v2762_v34, %v2764_v54  ;;  %v6323_v25 = vpack.i.bf16 %v9292_v30, %v9206_v31  ;;  %v9302_v15 = vsel %vm427_vm0, %v3340_v3, %v3342_v45  ;;  %v3282_v49 = vsel %vm624_vm1, %v3279_v37, %v3281_v8 }
 0x1fc   : > { %v2863_v60 = vmax.f32 %v2675_v55, %v2765_v10  ;;  %5219 = vmatprep.mubr.msk.bf16.mxu1 %vm2147_vm10, %v3791_v22  ;;  %6329 = vrot.lane.b32.xlu1 %v6328_v18, %s6793_s24  ;;  %v2934_v3 = vrot.slane %v9285_v50, 2  ;;  %v6338_v51 = vpack.i.bf16 %v9302_v15, %v9193_v56  ;;  %v6333_v4 = vpack.i.bf16 %v3282_v49, %v3280_v23 }
 0x1fd   : > { %6324 = vrot.lane.b32.xlu0 %v6323_v25, %s10569_s14  ;;  %3900 = vmatpush1.bf16.msra.mxu1 %v6548_v38 }
 0x1fe   : > { %v2935_v31 = vrot.slane %v2863_v60, 2  ;;  %3901 = vmatprep.subr.bf16.mxu1 %v6791_v14 }
 0x200   : > { %v2936_v40 = vsel %vm427_vm0, %v2934_v3, %v2935_v31  ;;  %6339 = vrot.lane.b32.xlu1 %v6338_v51, %s10582_s22 }
 0x201   : > { %v3006_v29 = vmax.f32 %v9232_v52, %v2936_v40  ;;  %6334 = vrot.lane.b32.xlu0 %v6333_v4, %s10567_s12  ;;  %3902 = vmatpush1.bf16.msra.mxu1 %v6549_v62 }
 0x202   : > { %v2562_v56 = vpop.f32.mrb[32].mxu0 }
 0x203   : > { %v2563_v39 = vadd.f32 %v8950_v47, %v2562_v56  ;;  %v5427_v19 = vpop.f32.mrb[33].mxu0  ;;  %v3074_v52 = vrot.slane %v3006_v29, 3  ;;  %v3076_v33 = vrot.slane %v3006_v29, 4  ;;  %v3078_v34 = vrot.slane %v3006_v29, 5 }
 0x204   : > { %v2565_v46 = vpop.f32.mrb[34].mxu0 }
 0x205   : > { %v2677_v13 = vmax.f32 %v2563_v39, 0.0  ;;  %v2566_v35 = vadd.f32 %v8950_v47, %v2565_v46  ;;  %v5428_v21 = vpop.f32.mrb[35].mxu0  ;;  %v3107_v44 = vsel %vm3058_vm14, %v3074_v52, %v3076_v33 }
 0x206   : > { %v3108_v18 = vsel %vm10692_vm6, %v3107_v44, %v3078_v34  ;;  %vm10695_vm6 = vmmov %vm10694_vm5 }
 0x207   : > { %v2766_v36 = vrot.slane %v2677_v13, 1  ;;  %v2678_v32 = vmax.f32 %v2566_v35, 0.0 }
 0x209   : > { %v2767_v55 = vsel %vm624_vm1, %v2764_v54, %v2766_v36  ;;  %v2768_v12 = vrot.slane %v2678_v32, 1 }
 0x20a   : > { %v9331_v14 = vmax.f32 %v2676_v1, %v2767_v55 }
 0x20b   : > { %v2769_v0 = vsel %vm624_vm1, %v2766_v36, %v2768_v12 }
 0x20c   : > { %v2937_v61 = vrot.slane %v9331_v14, 2  ;;  %v9335_v37 = vmax.f32 %v2677_v13, %v2769_v0  ;;  %v3443_v13 = vrot.slane %v9263_v27, 3 }
 0x20e   : > { %v2938_v42 = vsel %vm427_vm0, %v2935_v31, %v2937_v61  ;;  %v2939_v6 = vrot.slane %v9335_v37, 2 }
 0x20f   : > { %v3007_v54 = vmax.f32 %v9238_v20, %v2938_v42 }
 0x210   : > { %v2940_v1 = vsel %vm427_vm0, %v2937_v61, %v2939_v6 }
 0x211   : > { %v3081_v63 = vrot.slane %v3007_v54, 6  ;;  %v3083_v5 = vrot.slane %v3007_v54, 7  ;;  %v3008_v22 = vmax.f32 %v9285_v50, %v2940_v1  ;;  %v3085_v49 = vrot.slane %v3007_v54, 1 }
 0x213   : > { %v2570_v10 = vpop.f32.mrb[36].mxu0  ;;  %v3109_v25 = vsel %vm10693_vm4, %v3108_v18, %v3081_v63  ;;  %v3088_v51 = vrot.slane %v3008_v22, 2 }
 0x214   : > { %v2571_v38 = vadd.f32 %v8950_v47, %v2570_v10  ;;  %v5431_v60 = vpop.f32.mrb[37].mxu0  ;;  %v3110_v3 = vsel %vm445_vm3, %v3109_v25, %v3083_v5 }
 0x215   : > { %v2573_v31 = vpop.f32.mrb[38].mxu0  ;;  %v3111_v20 = vsel %vm1132_vm2, %v3110_v3, %v3007_v54 }
 0x216   : > { %v2679_v23 = vmax.f32 %v2571_v38, 0.0  ;;  %v2574_v4 = vadd.f32 %v8950_v47, %v2573_v31  ;;  %v5432_v62 = vpop.f32.mrb[39].mxu0  ;;  %v3112_v50 = vsel %vm427_vm0, %v3111_v20, %v3085_v49 }
 0x217   : > { %v9351_v40 = vsel %vm624_vm1, %v3112_v50, %v3088_v51 }
 0x218   : > { %v2770_v29 = vrot.slane %v2679_v23, 1  ;;  %v2680_v56 = vmax.f32 %v2574_v4, 0.0  ;;  %v3240_v39 = vrot.slane %v9351_v40, 6 }
 0x21a   : > { %v2771_v19 = vsel %vm624_vm1, %v2768_v12, %v2770_v29  ;;  %v2772_v46 = vrot.slane %v2680_v56, 1  ;;  %v9359_v35 = vsel %vm10694_vm5, 0.0, %v3240_v39  ;;  %v3444_v12 = vsel %vm1132_vm2, %v3441_v11, %v3443_v13 }
 0x21b   : > { %v2866_v21 = vmax.f32 %v2678_v32, %v2771_v19  ;;  %v3445_v55 = vrot.slane %v9359_v35, 3  ;;  %v3344_v52 = vrot.slane %v9359_v35, 2  ;;  %v3507_v33 = vrot.slane %v9359_v35, 4 }
 0x21c   : > { %v2773_v36 = vsel %vm624_vm1, %v2770_v29, %v2772_v46 }
 0x21d   : > { %v2867_v0 = vmax.f32 %v2679_v23, %v2773_v36  ;;  %v3446_v61 = vsel %vm1132_vm2, %v3443_v13, %v3445_v55  ;;  %v9376_v32 = vsel %vm427_vm0, %v3342_v45, %v3344_v52  ;;  %v2941_v34 = vrot.slane %v2866_v21, 2  ;;  %v9409_v36 = vld [vmem:[%s10508_s2] ss:$0 sm:$0xff] }
 0x21e   : > { %v6348_v6 = vpack.i.bf16 %v3446_v61, %v3444_v12  ;;  %v6343_v44 = vpack.i.bf16 %v9376_v32, %v9302_v15  ;;  %v9385_v11 = vsel %vm445_vm3, %v3505_v43, %v3507_v33 }
 0x21f   : > { %v2942_v42 = vrot.slane %v2867_v0, 2  ;;  %v6353_v63 = vpack.i.bf16 %v9385_v11, %v9292_v30 }
 0x220   : > { %6349 = vrot.lane.b32.xlu1 %v6348_v6, %s10571_s16  ;;  %6344 = vrot.lane.b32.xlu0 %v6343_v44, %s6790_s15 }
 0x221   : > { %v2943_v54 = vsel %vm427_vm0, %v2941_v34, %v2942_v42 }
 0x222   : > { %v3009_v45 = vmax.f32 %v9331_v14, %v2943_v54 }
 0x223   : > { %v2578_v1 = vpop.f32.mrb[40].mxu0 }
 0x224   : > { %v2579_v15 = vadd.f32 %v8950_v47, %v2578_v1  ;;  %v5435_v5 = vpop.f32.mrb[41].mxu0  ;;  %6354 = vrot.lane.b32.xlu0 %v6353_v63, %s6792_s13  ;;  %v3091_v23 = vrot.slane %v3009_v45, 7 }
 0x225   : > { %v2581_v22 = vpop.f32.mrb[42].mxu0 }
 0x226   : > { %v2681_v43 = vmax.f32 %v2579_v15, 0.0  ;;  %v2582_v18 = vadd.f32 %v8950_v47, %v2581_v22  ;;  %v5436_v10 = vpop.f32.mrb[43].mxu0 }
 0x228   : > { %v2774_v25 = vrot.slane %v2681_v43, 1  ;;  %v2682_v38 = vmax.f32 %v2582_v18, 0.0 }
 0x22a   : > { %v2775_v60 = vsel %vm624_vm1, %v2772_v46, %v2774_v25  ;;  %v2776_v49 = vrot.slane %v2682_v38, 1 }
 0x22b   : > { %v2868_v14 = vmax.f32 %v2680_v56, %v2775_v60 }
 0x22c   : > { %v2777_v3 = vsel %vm624_vm1, %v2774_v25, %v2776_v49  ;;  %v3257_v25 = vsel %vm10694_vm5, %v3240_v39, 0.0 }
 0x22d   : > { %v2944_v31 = vrot.slane %v2868_v14, 2  ;;  %v9398_v30 = vmax.f32 %v2681_v43, %v2777_v3  ;;  %v3607_v14 = vrot.slane %v9359_v35, 5 }
 0x22f   : > { %v2945_v20 = vsel %vm427_vm0, %v2942_v42, %v2944_v31  ;;  %v2946_v51 = vrot.slane %v9398_v30, 2 }
 0x230   : > { %v3010_v4 = vmax.f32 %v9335_v37, %v2945_v20 }
 0x231   : > { %v2947_v47 = vsel %vm427_vm0, %v2944_v31, %v2946_v51 }
 0x232   : > { %v3094_v62 = vrot.slane %v3010_v4, 1  ;;  %v3096_v50 = vrot.slane %v3010_v4, 2  ;;  %v3114_v29 = vsel %vm3058_vm14, %v3091_v23, %v3010_v4  ;;  %v3011_v19 = vmax.f32 %v2866_v21, %v2947_v47 }
 0x233   : > { %v2586_v56 = vpop.f32.mrb[44].mxu0  ;;  %v3098_v46 = vrot.slane %v3010_v4, 3  ;;  %v3283_v47 = vrot.slane %v9359_v35, 1 }
 0x234   : > { %v3115_v13 = vsel %vm10695_vm6, %v3114_v29, %v3094_v62  ;;  %v2587_v0 = vadd.f32 %v9409_v36, %v2586_v56  ;;  %v5439_v12 = vpop.f32.mrb[45].mxu0  ;;  %v3101_v61 = vrot.slane %v3011_v19, 4  ;;  %v3103_v6 = vrot.slane %v3011_v19, 5  ;;  %vm10696_vm6 = vmmov %vm10693_vm4 }
 0x235   : > { %v3116_v37 = vsel %vm10693_vm4, %v3115_v13, %v3096_v50  ;;  %v2589_v34 = vpop.f32.mrb[46].mxu0  ;;  %v3105_v45 = vrot.slane %v3011_v19, 6 }
 0x236   : > { %v3117_v42 = vsel %vm445_vm3, %v3116_v37, %v3098_v46  ;;  %v2683_v21 = vmax.f32 %v2587_v0, 0.0  ;;  %v2590_v44 = vadd.f32 %v9409_v36, %v2589_v34  ;;  %v5440_v54 = vpop.f32.mrb[47].mxu0 }
 0x237   : > { %v3118_v1 = vsel %vm1132_vm2, %v3117_v42, %v3101_v61 }
 0x238   : > { %v3119_v63 = vsel %vm427_vm0, %v3118_v1, %v3103_v6  ;;  %v2778_v15 = vrot.slane %v2683_v21, 1  ;;  %v2684_v5 = vmax.f32 %v2590_v44, 0.0 }
 0x239   : > { %v9418_v22 = vsel %vm624_vm1, %v3119_v63, %v3105_v45 }
 0x23a   : > { %v3243_v43 = vrot.slane %v9418_v22, 4  ;;  %v2779_v18 = vsel %vm624_vm1, %v2776_v49, %v2778_v15  ;;  %v2780_v10 = vrot.slane %v2684_v5, 1 }
 0x23b   : > { %v2870_v60 = vmax.f32 %v2682_v38, %v2779_v18  ;;  %v3608_v38 = vsel %vm10696_vm6, %v3605_v57, %v3607_v14  ;;  %vm10697_vm6 = vmmov %vm10693_vm4 }
 0x23c   : > { %v2781_v3 = vsel %vm624_vm1, %v2778_v15, %v2780_v10  ;;  %v9430_v31 = vsel %vm445_vm3, %v3257_v25, %v3243_v43 }
 0x23d   : > { %v9432_v20 = vmax.f32 %v2683_v21, %v2781_v3  ;;  %v3609_v51 = vrot.slane %v9430_v31, 5  ;;  %v3509_v49 = vrot.slane %v9430_v31, 4  ;;  %v3346_v40 = vrot.slane %v9430_v31, 2 }
 0x23e   : > { %v3285_v39 = vrot.slane %v9430_v31, 1 }
 0x23f   : > { %v3610_v23 = vsel %vm10693_vm4, %v3607_v14, %v3609_v51  ;;  %v9449_v4 = vsel %vm445_vm3, %v3507_v33, %v3509_v49  ;;  %v9459_v57 = vsel %vm427_vm0, %v3344_v52, %v3346_v40  ;;  %vm3720_vm4 = vcmask 392192  }
 0x240   : > { %v6363_v62 = vpack.i.bf16 %v3610_v23, %v3608_v38  ;;  %v6358_v50 = vpack.i.bf16 %v9449_v4, %v9385_v11  ;;  %v3286_v29 = vsel %vm624_vm1, %v3283_v47, %v3285_v39  ;;  %v3284_v11 = vsel %vm624_vm1, %v3281_v8, %v3283_v47 }
 0x241   : > { %v6373_v52 = vpack.i.bf16 %v9459_v57, %v9376_v32  ;;  %v6368_v46 = vpack.i.bf16 %v3286_v29, %v3284_v11  ;;  %v2948_v32 = vrot.slane %v9432_v20, 2 }
 0x242   : > { %6364 = vrot.lane.b32.xlu0 %v6363_v62, %s6793_s24  ;;  %6359 = vrot.lane.b32.xlu1 %v6358_v50, %s10569_s14 }
 0x244   : > { %v2594_v33 = vpop.f32.mrb[48].mxu0 }
 0x245   : > { %v2595_v19 = vadd.f32 %v9409_v36, %v2594_v33  ;;  %v5443_v56 = vpop.f32.mrb[49].mxu0 }
 0x246   : > { %v2597_v13 = vpop.f32.mrb[50].mxu0  ;;  %6374 = vrot.lane.b32.xlu0 %v6373_v52, %s10582_s22  ;;  %6369 = vrot.lane.b32.xlu1 %v6368_v46, %s10567_s12 }
 0x247   : > { %v2685_v0 = vmax.f32 %v2595_v19, 0.0  ;;  %v2598_v12 = vadd.f32 %v9409_v36, %v2597_v13  ;;  %v5444_v37 = vpop.f32.mrb[51].mxu0 }
 0x249   : > { %v2782_v61 = vrot.slane %v2685_v0, 1  ;;  %v2686_v34 = vmax.f32 %v2598_v12, 0.0 }
 0x24b   : > { %v2783_v8 = vsel %vm624_vm1, %v2780_v10, %v2782_v61  ;;  %v2784_v42 = vrot.slane %v2686_v34, 1 }
 0x24c   : > { %v2872_v6 = vmax.f32 %v2684_v5, %v2783_v8 }
 0x24d   : > { %v2785_v21 = vsel %vm624_vm1, %v2782_v61, %v2784_v42 }
 0x24e   : > { %v2949_v44 = vrot.slane %v2872_v6, 2  ;;  %v9478_v54 = vmax.f32 %v2685_v0, %v2785_v21 }
 0x250   : > { %v2950_v45 = vsel %vm427_vm0, %v2948_v32, %v2949_v44  ;;  %v2951_v1 = vrot.slane %v9478_v54, 2 }
 0x251   : > { %v3012_v63 = vmax.f32 %v9398_v30, %v2950_v45  ;;  %v6300_v52 = vpop.permute.xlu1 %6299  ;;  %v6305_v61 = vpop.permute.xlu0 %6304 }
 0x252   : > { %v2952_v15 = vsel %vm427_vm0, %v2949_v44, %v2951_v1  ;;  %v6301_v8 = vunpack.i.l.bf16 %v6300_v52  ;;  %v6302_v45 = vunpack.i.h.bf16 %v6300_v52 }
 0x253   : > { %v3122_v18 = vrot.slane %v3012_v63, 3  ;;  %v3124_v25 = vrot.slane %v3012_v63, 4  ;;  %v3126_v10 = vrot.slane %v3012_v63, 5  ;;  %v3013_v14 = vmax.f32 %v2870_v60, %v2952_v15 }
 0x254   : > { %v2602_v5 = vpop.f32.mrb[52].mxu0  ;;  %v6306_v15 = vunpack.i.l.bf16 %v6305_v61 }
 0x255   : > { %v3155_v3 = vsel %vm3058_vm14, %v3122_v18, %v3124_v25  ;;  %v3129_v38 = vrot.slane %v3013_v14, 6  ;;  %v3131_v23 = vrot.slane %v3013_v14, 7  ;;  %v5447_v62 = vpop.f32.mrb[53].mxu0  ;;  %v3133_v33 = vrot.slane %v3013_v14, 1  ;;  %v6310_v63 = vpop.permute.xlu1 %6309 }
 0x256   : > { %v3156_v47 = vsel %vm10694_vm5, %v3155_v3, %v3126_v10  ;;  %v2605_v29 = vpop.f32.mrb[54].mxu0  ;;  %v2603_v11 = vadd.f32 %v9409_v36, %v2602_v5  ;;  %v3694_v25 = vsel %vm2147_vm10, 0.0, %v6301_v8  ;;  %v6307_v10 = vunpack.i.h.bf16 %v6305_v61 }
 0x257   : > { %v3157_v50 = vsel %vm10697_vm6, %v3156_v47, %v3129_v38  ;;  %v9490_v19 = vadd.f32 %v9409_v36, %v2605_v29  ;;  %v5448_v60 = vpop.f32.mrb[55].mxu0  ;;  %v6311_v5 = vunpack.i.l.bf16 %v6310_v63  ;;  %vm3734_vm5 = vcmask 523264  }
 0x258   : > { %v3158_v30 = vsel %vm445_vm3, %v3157_v50, %v3131_v23  ;;  %v2687_v46 = vmax.f32 %v2603_v11, 0.0  ;;  %v6312_v38 = vunpack.i.h.bf16 %v6310_v63  ;;  %vm10698_vm6 = vcmask 261120  }
 0x259   : > { %v3159_v56 = vsel %vm1132_vm2, %v3158_v30, %v3013_v14  ;;  %v2688_v0 = vmax.f32 %v9490_v19, 0.0  ;;  %v6315_v14 = vpop.permute.xlu0 %6314  ;;  %v3707_v50 = vsel %vm10698_vm6, %v3694_v25, %v6306_v15  ;;  %v3665_v30 = vrot.slane %v9359_v35, 6  ;;  %v6320_v60 = vpop.permute.xlu1 %6319 }
 0x25a   : > { %v3160_v13 = vsel %vm427_vm0, %v3159_v56, %v3133_v33  ;;  %v2786_v12 = vrot.slane %v2687_v46, 1  ;;  %v3447_v33 = vrot.slane %v9430_v31, 3  ;;  %v6316_v11 = vunpack.i.l.bf16 %v6315_v14 }
 0x25b   : > { %v2788_v37 = vrot.slane %v2688_v0, 1  ;;  %v6317_v61 = vunpack.i.h.bf16 %v6315_v14  ;;  %v3721_v8 = vsel %vm3720_vm4, %v3707_v50, %v6311_v5  ;;  %v6321_v25 = vunpack.i.l.bf16 %v6320_v60 }
 0x25c   : > { %v2787_v6 = vsel %vm624_vm1, %v2784_v42, %v2786_v12  ;;  %v3448_v22 = vsel %vm1132_vm2, %v3445_v55, %v3447_v33 }
 0x25d   : > { %v2789_v21 = vsel %vm624_vm1, %v2786_v12, %v2788_v37  ;;  %v9497_v32 = vmax.f32 %v2686_v34, %v2787_v6  ;;  %v3695_v34 = vsel %vm2147_vm10, 0.0, %v6302_v45 }
 0x25e   : > { %v9499_v44 = vmax.f32 %v2687_v46, %v2789_v21  ;;  %v3259_v46 = vsel %vm445_vm3, %v3243_v43, 0.0  ;;  %v3708_v12 = vsel %vm10698_vm6, %v3695_v34, %v6307_v10  ;;  %vm10699_vm6 = vcmask 1041408  }
 0x25f   : > { %v2953_v18 = vrot.slane %v9497_v32, 2  ;;  %v3722_v6 = vsel %vm3720_vm4, %v3708_v12, %v6312_v38  ;;  %v3735_v10 = vsel %vm3734_vm5, %v3721_v8, %v6316_v11 }
 0x260   : > { %v3736_v55 = vsel %vm3734_vm5, %v3722_v6, %v6317_v61  ;;  %v3749_v12 = vsel %vm3748_vm15, %v3735_v10, %v6321_v25 }
 0x261   : > { %v2954_v3 = vsel %vm427_vm0, %v2951_v1, %v2953_v18  ;;  %v3667_v1 = vrot.slane %v9430_v31, 6  ;;  %v6322_v18 = vunpack.i.h.bf16 %v6320_v60 }
 0x262   : > { %v3014_v23 = vmax.f32 %v9432_v20, %v2954_v3 }
 0x263   : > { %v9530_v43 = vsel %vm10699_vm6, %v3665_v30, %v3667_v1  ;;  %v3750_v6 = vsel %vm3748_vm15, %v3736_v55, %v6322_v18  ;;  %vm3776_vm6 = vcmask 916480  }
 0x264   : > { %v2610_v42 = vpop.f32.mrb[56].mxu0  ;;  %v3136_v19 = vrot.slane %v3014_v23, 2 }
 0x265   : > { %v2611_v47 = vadd.f32 %v9409_v36, %v2610_v42  ;;  %v5451_v62 = vpop.f32.mrb[57].mxu0 }
 0x266   : > { %v2613_v29 = vpop.f32.mrb[58].mxu0  ;;  %v3161_v21 = vsel %vm624_vm1, %v3160_v13, %v3136_v19 }
 0x267   : > { %v2689_v56 = vmax.f32 %v2611_v47, 0.0  ;;  %v9512_v52 = vadd.f32 %v9409_v36, %v2613_v29  ;;  %v5452_v20 = vpop.f32.mrb[59].mxu0  ;;  %v3246_v15 = vrot.slane %v3161_v21, 2  ;;  %v2955_v47 = vrot.slane %v9499_v44, 2 }
 0x269   : > { %v2790_v45 = vrot.slane %v2689_v56, 1  ;;  %v2690_v63 = vmax.f32 %v9512_v52, 0.0  ;;  %v9539_v5 = vsel %vm427_vm0, %v3246_v15, 0.0  ;;  %v9543_v42 = vsel %vm427_vm0, %v3259_v46, %v3246_v15 }
 0x26a   : > { %v3449_v38 = vrot.slane %v9543_v42, 3  ;;  %v3511_v23 = vrot.slane %v9543_v42, 4  ;;  %v3513_v29 = vrot.slane %v9539_v5, 4  ;;  %v3611_v60 = vrot.slane %v9543_v42, 5 }
 0x26b   : > { %v2791_v13 = vsel %vm624_vm1, %v2788_v37, %v2790_v45  ;;  %v9536_v14 = vrot.slane %v2690_v63, 1  ;;  %v3348_v37 = vrot.slane %v9543_v42, 2 }
 0x26c   : > { %v2876_v3 = vmax.f32 %v2688_v0, %v2791_v13  ;;  %v3450_v0 = vsel %vm1132_vm2, %v3447_v33, %v3449_v38  ;;  %v3512_v19 = vsel %vm445_vm3, %v3509_v49, %v3511_v23  ;;  %v9577_v8 = vsel %vm445_vm3, %v3511_v23, %v3513_v29 }
 0x26d   : > { %v2793_v34 = vsel %vm624_vm1, %v2790_v45, %v9536_v14  ;;  %v9562_v11 = vsel %vm427_vm0, %v3346_v40, %v3348_v37  ;;  %v6383_v46 = vpack.i.bf16 %v3450_v0, %v3448_v22  ;;  %v3613_v49 = vrot.slane %v9539_v5, 5 }
 0x26e   : > { %v2956_v62 = vrot.slane %v2876_v3, 2  ;;  %v9551_v50 = vmax.f32 %v2689_v56, %v2793_v34  ;;  %v6378_v33 = vpack.i.bf16 %v9562_v11, %v9459_v57  ;;  %v6330_v40 = vpop.permute.xlu1 %6329  ;;  %v6393_v18 = vpack.i.bf16 %v9577_v8, %v3512_v19 }
 0x26f   : > { %6384 = vrot.lane.b32.xlu0 %v6383_v46, %s10571_s16  ;;  %v6325_v57 = vpop.permute.xlu0 %6324  ;;  %v6332_v10 = vunpack.i.h.bf16 %v6330_v40  ;;  %v6331_v13 = vunpack.i.l.bf16 %v6330_v40  ;;  %v3612_v3 = vsel %vm10700_vm12, %v3609_v51, %v3611_v60  ;;  %v3289_v51 = vrot.slane %v9539_v5, 1 }
 0x270   : > { %v2957_v56 = vsel %vm427_vm0, %v2955_v47, %v2956_v62  ;;  %v2958_v20 = vrot.slane %v9551_v50, 2  ;;  %6379 = vrot.lane.b32.xlu1 %v6378_v33, %s6790_s15  ;;  %v6327_v22 = vunpack.i.h.bf16 %v6325_v57  ;;  %v6326_v25 = vunpack.i.l.bf16 %v6325_v57 }
 0x271   : > { %v3015_v61 = vmax.f32 %v9478_v54, %v2957_v56  ;;  %v6388_v54 = vpack.i.bf16 %v3512_v19, %v9449_v4  ;;  %v3287_v19 = vrot.slane %v9543_v42, 1  ;;  %vm10702_vm12 = vcmask 1041408  }
 0x272   : > { %v2959_v21 = vsel %vm427_vm0, %v2956_v62, %v2958_v20  ;;  %v3764_v62 = vsel %vm3762_vm13, %v3750_v6, %v6327_v22  ;;  %v3763_v0 = vsel %vm3762_vm13, %v3749_v12, %v6326_v25 }
 0x273   : > { %v3139_v45 = vrot.slane %v3015_v61, 7  ;;  %v3016_v15 = vmax.f32 %v9497_v32, %v2959_v21  ;;  %v3614_v32 = vsel %vm10701_vm11, %v3611_v60, %v3613_v49  ;;  %6394 = vrot.lane.b32.xlu0 %v6393_v18, %s10569_s14  ;;  %v3350_v60 = vrot.slane %v9539_v5, 2 }
 0x274   : > { %v2618_v55 = vpop.f32.mrb[60].mxu0  ;;  %6389 = vrot.lane.b32.xlu1 %v6388_v54, %s6792_s13  ;;  %v3777_v12 = vsel %vm3776_vm6, %v3763_v0, %v6331_v13  ;;  %v3778_v21 = vsel %vm3776_vm6, %v3764_v62, %v6332_v10  ;;  %v6398_v57 = vpack.i.bf16 %v3614_v32, %v3612_v3  ;;  %v3288_v25 = vsel %vm624_vm1, %v3285_v39, %v3287_v19 }
 0x275   : > { %v3142_v34 = vrot.slane %v3016_v15, 1  ;;  %v3144_v23 = vrot.slane %v3016_v15, 2  ;;  %v3162_v47 = vsel %vm3058_vm14, %v3139_v45, %v3016_v15  ;;  %v5455_v4 = vpop.f32.mrb[61].mxu0  ;;  %v3146_v46 = vrot.slane %v3016_v15, 3 }
 0x276   : > { %v2621_v56 = vpop.f32.mrb[62].mxu0  ;;  %v2619_v61 = vadd.f32 %v9409_v36, %v2618_v55  ;;  %v3666_v15 = vsel %vm10702_vm12, %v3663_v58, %v3665_v30  ;;  %v3790_v22 = vpack.c.bf16 %v3778_v21, %v3777_v12  ;;  %v3290_v10 = vsel %vm624_vm1, %v3287_v19, %v3289_v51 }
 0x277   : > { %v3163_v33 = vsel %vm10702_vm12, %v3162_v47, %v3142_v34  ;;  %v5456_v40 = vpop.f32.mrb[63].mxu0  ;;  %v2622_v13 = vadd.f32 %v9409_v36, %v2621_v56  ;;  %v6403_v55 = vpack.i.bf16 %v3290_v10, %v3288_v25  ;;  %v3793_v3 = vpack.c.bf16 %v9530_v43, %v3666_v15 }
 0x278   : > { %v3164_v6 = vsel %vm10701_vm11, %v3163_v33, %v3144_v23  ;;  %v2691_v45 = vmax.f32 %v2619_v61, 0.0  ;;  %6399 = vrot.lane.b32.xlu1 %v6398_v57, %s6793_s24  ;;  %v3351_v58 = vsel %vm427_vm0, %v3348_v37, %v3350_v60  ;;  %3918 = vmatmul.mubr.bf16.vlgmr.msra.gmra.mrb[0].mxu1 %v3790_v22  ;;  %vm10703_vm11 = vmmov %vm10702_vm12  ;;  %vm10704_vm12 = vcmask 1042432  }
 0x279   : > { %v3165_v54 = vsel %vm445_vm3, %v3164_v6, %v3146_v46  ;;  %v2692_v30 = vmax.f32 %v2622_v13, 0.0  ;;  %v6408_v34 = vpack.i.bf16 %v3351_v58, %v9562_v11  ;;  %6404 = vrot.lane.b32.xlu0 %v6403_v55, %s10567_s12  ;;  %5220 = vmatprep.mubr.msk.bf16.mxu1 %vm2147_vm10, %v3793_v3 }
 0x27a   : > { %v2794_v18 = vrot.slane %v2691_v45, 1 }
 0x27b   : > { %v2796_v47 = vrot.slane %v2692_v30, 1 }
 0x27c   : > { %v2795_v39 = vsel %vm624_vm1, %v9536_v14, %v2794_v18  ;;  %6409 = vrot.lane.b32.xlu1 %v6408_v34, %s10582_s22 }
 0x27d   : > { %v2878_v23 = vmax.f32 %v2690_v63, %v2795_v39  ;;  %v2797_v37 = vsel %vm624_vm1, %v2794_v18, %v2796_v47 }
 0x27e   : > { %v9635_v4 = vmax.f32 %v2691_v45, %v2797_v37 }
 0x27f   : > { %v2960_v43 = vrot.slane %v2878_v23, 2 }
 0x281   : > { %v2961_v11 = vsel %vm427_vm0, %v2958_v20, %v2960_v43  ;;  %v3451_v20 = vrot.slane %v9539_v5, 3 }
 0x282   : > { %v3017_v14 = vmax.f32 %v9499_v44, %v2961_v11 }
 0x283   : > { %v3452_v25 = vsel %vm1132_vm2, %v3449_v38, %v3451_v20 }
 0x284   : > { %v2626_v32 = vpop.f32.mrb[64].mxu0  ;;  %v3149_v62 = vrot.slane %v3017_v14, 4  ;;  %v3151_v0 = vrot.slane %v3017_v14, 5  ;;  %v3153_v56 = vrot.slane %v3017_v14, 6 }
 0x285   : > { %v2627_v52 = vadd.f32 %v9409_v36, %v2626_v32  ;;  %v5459_v63 = vpop.f32.mrb[65].mxu0 }
 0x286   : > { %v2629_v19 = vpop.f32.mrb[66].mxu0  ;;  %v3166_v46 = vsel %vm1132_vm2, %v3165_v54, %v3149_v62 }
 0x287   : > { %v2693_v33 = vmax.f32 %v2627_v52, 0.0  ;;  %v2630_v61 = vadd.f32 %v9409_v36, %v2629_v19  ;;  %v5460_v40 = vpop.f32.mrb[67].mxu0  ;;  %v3167_v50 = vsel %vm427_vm0, %v3166_v46, %v3151_v0 }
 0x288   : > { %v9647_v44 = vsel %vm624_vm1, %v3167_v50, %v3153_v56  ;;  %v6335_v40 = vpop.permute.xlu0 %6334 }
 0x289   : > { %v2798_v6 = vrot.slane %v2693_v33, 1  ;;  %v2694_v12 = vmax.f32 %v2630_v61, 0.0  ;;  %v3453_v21 = vrot.slane %v9647_v44, 3  ;;  %v3352_v57 = vrot.slane %v9647_v44, 2 }
 0x28a   : > { %v3515_v45 = vrot.slane %v9647_v44, 4 }
 0x28b   : > { %v2799_v54 = vsel %vm624_vm1, %v2796_v47, %v2798_v6  ;;  %v2800_v15 = vrot.slane %v2694_v12, 1  ;;  %v3454_v10 = vsel %vm1132_vm2, %v3451_v20, %v3453_v21  ;;  %v9662_v13 = vsel %vm427_vm0, %v3350_v60, %v3352_v57 }
 0x28c   : > { %v2880_v22 = vmax.f32 %v2692_v30, %v2799_v54  ;;  %v6418_v55 = vpack.i.bf16 %v3454_v10, %v3452_v25  ;;  %v6413_v3 = vpack.i.bf16 %v9662_v13, %v3351_v58  ;;  %v9671_v38 = vsel %vm445_vm3, %v3513_v29, %v3515_v45 }
 0x28d   : > { %v2801_v18 = vsel %vm624_vm1, %v2798_v6, %v2800_v15  ;;  %v6423_v39 = vpack.i.bf16 %v9671_v38, %v9577_v8  ;;  %v6337_v25 = vunpack.i.h.bf16 %v6335_v40 }
 0x28e   : > { %v2881_v34 = vmax.f32 %v2693_v33, %v2801_v18  ;;  %6419 = vrot.lane.b32.xlu1 %v6418_v55, %s10571_s16  ;;  %6414 = vrot.lane.b32.xlu0 %v6413_v3, %s6790_s15  ;;  %v2962_v30 = vrot.slane %v2880_v22, 2  ;;  %v6336_v3 = vunpack.i.l.bf16 %v6335_v40 }
 0x290   : > { %v2963_v60 = vrot.slane %v2881_v34, 2 }
 0x292   : > { %v2964_v47 = vsel %vm427_vm0, %v2962_v30, %v2963_v60  ;;  %6424 = vrot.lane.b32.xlu0 %v6423_v39, %s6792_s13 }
 0x293   : > { %v3018_v58 = vmax.f32 %v2878_v23, %v2964_v47 }
 0x294   : > { %v2634_v43 = vpop.f32.mrb[68].mxu0 }
 0x295   : > { %v2635_v37 = vadd.f32 %v9409_v36, %v2634_v43  ;;  %v5463_v11 = vpop.f32.mrb[69].mxu0  ;;  %v3170_v56 = vrot.slane %v3018_v58, 3  ;;  %v3172_v23 = vrot.slane %v3018_v58, 4  ;;  %v3174_v50 = vrot.slane %v3018_v58, 5 }
 0x296   : > { %v2637_v14 = vpop.f32.mrb[70].mxu0 }
 0x297   : > { %v2695_v29 = vmax.f32 %v2635_v37, 0.0  ;;  %v2638_v32 = vadd.f32 %v9409_v36, %v2637_v14  ;;  %v5464_v62 = vpop.f32.mrb[71].mxu0  ;;  %v3203_v6 = vsel %vm3058_vm14, %v3170_v56, %v3172_v23 }
 0x298   : > { %v3204_v34 = vsel %vm10703_vm11, %v3203_v6, %v3174_v50  ;;  %vm10705_vm11 = vcmask 261120   ;;  %v3615_v6 = vrot.slane %v9647_v44, 5 }
 0x299   : > { %v2802_v0 = vrot.slane %v2695_v29, 1  ;;  %v2696_v52 = vmax.f32 %v2638_v32, 0.0 }
 0x29b   : > { %v2803_v63 = vsel %vm624_vm1, %v2800_v15, %v2802_v0  ;;  %v2804_v8 = vrot.slane %v2696_v52, 1  ;;  %v6340_v15 = vpop.permute.xlu1 %6339 }
 0x29c   : > { %v9682_v19 = vmax.f32 %v2694_v12, %v2803_v63  ;;  %v6341_v11 = vunpack.i.l.bf16 %v6340_v15 }
 0x29d   : > { %v2805_v33 = vsel %vm624_vm1, %v2802_v0, %v2804_v8 }
 0x29e   : > { %v2965_v46 = vrot.slane %v9682_v19, 2  ;;  %v9686_v61 = vmax.f32 %v2695_v29, %v2805_v33  ;;  %v3697_v29 = vsel %vm2147_vm10, %v9149_v53, %v6337_v25  ;;  %v6345_v33 = vpop.permute.xlu0 %6344  ;;  %v3291_v25 = vrot.slane %v9647_v44, 1 }
 0x2a0   : > { %v2966_v20 = vsel %vm427_vm0, %v2963_v60, %v2965_v46  ;;  %v2967_v12 = vrot.slane %v9686_v61, 2  ;;  %v6342_v60 = vunpack.i.h.bf16 %v6340_v15 }
 0x2a1   : > { %v3019_v54 = vmax.f32 %v9635_v4, %v2966_v20 }
 0x2a2   : > { %v2968_v55 = vsel %vm427_vm0, %v2965_v46, %v2967_v12 }
 0x2a3   : > { %v3177_v10 = vrot.slane %v3019_v54, 6  ;;  %v3179_v18 = vrot.slane %v3019_v54, 7  ;;  %v3020_v30 = vmax.f32 %v2880_v22, %v2968_v55  ;;  %v3181_v58 = vrot.slane %v3019_v54, 1 }
 0x2a4   : > { %v2642_v47 = vpop.f32.mrb[72].mxu0  ;;  %v3696_v22 = vsel %vm2147_vm10, %v9146_v16, %v6336_v3 }
 0x2a5   : > { %v3205_v39 = vsel %vm10704_vm12, %v3204_v34, %v3177_v10  ;;  %v2643_v4 = vadd.f32 %v9409_v36, %v2642_v47  ;;  %v5467_v37 = vpop.f32.mrb[73].mxu0  ;;  %v3184_v32 = vrot.slane %v3020_v30, 2  ;;  %v3709_v20 = vsel %vm10705_vm11, %v3696_v22, %v6341_v11  ;;  %vm10706_vm12 = vmmov %vm10705_vm11  ;;  %v6350_v34 = vpop.permute.xlu1 %6349 }
 0x2a6   : > { %v3206_v43 = vsel %vm445_vm3, %v3205_v39, %v3179_v18  ;;  %v2645_v62 = vpop.f32.mrb[74].mxu0  ;;  %v3710_v16 = vsel %vm10706_vm12, %v3697_v29, %v6342_v60  ;;  %v6347_v30 = vunpack.i.h.bf16 %v6345_v33  ;;  %v6346_v39 = vunpack.i.l.bf16 %v6345_v33 }
 0x2a7   : > { %v3207_v14 = vsel %vm1132_vm2, %v3206_v43, %v3019_v54  ;;  %v2697_v63 = vmax.f32 %v2643_v4, 0.0  ;;  %v9704_v56 = vadd.f32 %v9409_v36, %v2645_v62  ;;  %v5468_v23 = vpop.f32.mrb[75].mxu0  ;;  %v6355_v4 = vpop.permute.xlu0 %6354  ;;  %v3292_v29 = vsel %vm624_vm1, %v3289_v51, %v3291_v25 }
 0x2a8   : > { %v3208_v0 = vsel %vm427_vm0, %v3207_v14, %v3181_v58  ;;  %v6352_v14 = vunpack.i.h.bf16 %v6350_v34  ;;  %v6351_v22 = vunpack.i.l.bf16 %v6350_v34  ;;  %v6357_v51 = vunpack.i.h.bf16 %v6355_v4 }
 0x2a9   : > { %v9707_v46 = vsel %vm624_vm1, %v3208_v0, %v3184_v32  ;;  %v2806_v40 = vrot.slane %v2697_v63, 1  ;;  %v2698_v50 = vmax.f32 %v9704_v56, 0.0  ;;  %v3724_v0 = vsel %vm3720_vm4, %v3710_v16, %v6347_v30 }
 0x2aa   : > { %v3249_v53 = vrot.slane %v9707_v46, 6  ;;  %v6356_v33 = vunpack.i.l.bf16 %v6355_v4  ;;  %vm10710_vm12 = vcmask 1041408  }
 0x2ab   : > { %v2807_v12 = vsel %vm624_vm1, %v2804_v8, %v2806_v40  ;;  %v2808_v15 = vrot.slane %v2698_v50, 1 }
 0x2ac   : > { %v9717_v54 = vsel %vm10707_vm9, 0.0, %v3249_v53  ;;  %v9723_v10 = vmax.f32 %v2696_v52, %v2807_v12  ;;  %vm10708_vm9 = vcmask 1042432  }
 0x2ad   : > { %v3617_v18 = vrot.slane %v9717_v54, 5  ;;  %v3517_v55 = vrot.slane %v9717_v54, 4  ;;  %v3354_v3 = vrot.slane %v9717_v54, 2  ;;  %v2809_v47 = vsel %vm624_vm1, %v2806_v40, %v2808_v15  ;;  %vm10709_vm11 = vmmov %vm10708_vm9 }
 0x2ae   : > { %v3293_v8 = vrot.slane %v9717_v54, 1  ;;  %v2885_v60 = vmax.f32 %v2697_v63, %v2809_v47  ;;  %v3616_v58 = vsel %vm10708_vm9, %v3613_v49, %v3615_v6  ;;  %v3723_v63 = vsel %vm3720_vm4, %v3709_v20, %v6346_v39  ;;  %vm10711_vm9 = vmmov %vm10710_vm12 }
 0x2af   : > { %v3618_v52 = vsel %vm10709_vm11, %v3615_v6, %v3617_v18  ;;  %v9741_v43 = vsel %vm445_vm3, %v3515_v45, %v3517_v55  ;;  %v9750_v49 = vsel %vm427_vm0, %v3352_v57, %v3354_v3  ;;  %v2969_v45 = vrot.slane %v9723_v10, 2  ;;  %vm10712_vm11 = vmmov %vm10711_vm9 }
 0x2b0   : > { %v6433_v37 = vpack.i.bf16 %v3618_v52, %v3616_v58  ;;  %v6428_v11 = vpack.i.bf16 %v9741_v43, %v9671_v38  ;;  %v2970_v32 = vrot.slane %v2885_v60, 2  ;;  %v2650_v62 = vpop.f32.mrb[76].mxu0  ;;  %v3294_v38 = vsel %vm624_vm1, %v3291_v25, %v3293_v8 }
 0x2b1   : > { %v2651_v57 = vadd.f32 %v9409_v36, %v2650_v62  ;;  %v5471_v23 = vpop.f32.mrb[77].mxu0  ;;  %v6443_v12 = vpack.i.bf16 %v9750_v49, %v9662_v13  ;;  %v6438_v30 = vpack.i.bf16 %v3294_v38, %v3292_v29  ;;  %v3669_v39 = vrot.slane %v9543_v42, 6 }
 0x2b2   : > { %6434 = vrot.lane.b32.xlu0 %v6433_v37, %s6793_s24  ;;  %6429 = vrot.lane.b32.xlu1 %v6428_v11, %s10569_s14  ;;  %v2971_v40 = vsel %vm427_vm0, %v2969_v45, %v2970_v32  ;;  %v2653_v6 = vpop.f32.mrb[78].mxu0  ;;  %v3671_v47 = vrot.slane %v9539_v5, 6  ;;  %v3737_v60 = vsel %vm3734_vm5, %v3723_v63, %v6351_v22  ;;  %v3738_v58 = vsel %vm3734_vm5, %v3724_v0, %v6352_v14 }
 0x2b3   : > { %v3021_v25 = vmax.f32 %v9682_v19, %v2971_v40  ;;  %v2699_v16 = vmax.f32 %v2651_v57, 0.0  ;;  %v2654_v20 = vadd.f32 %v9409_v36, %v2653_v6  ;;  %v5472_v34 = vpop.f32.mrb[79].mxu0  ;;  %v3751_v45 = vsel %vm3748_vm15, %v3737_v60, %v6356_v33 }
 0x2b4   : > { %v6365_v37 = vpop.permute.xlu0 %6364  ;;  %v6360_v11 = vpop.permute.xlu1 %6359  ;;  %v3752_v62 = vsel %vm3748_vm15, %v3738_v58, %v6357_v51  ;;  %v3670_v57 = vsel %vm10710_vm12, %v3667_v1, %v3669_v39  ;;  %vm10713_vm12 = vcmask 1042432  }
 0x2b5   : > { %v2810_v52 = vrot.slane %v2699_v16, 1  ;;  %v2700_v4 = vmax.f32 %v2654_v20, 0.0  ;;  %v6367_v13 = vunpack.i.h.bf16 %v6365_v37  ;;  %v6366_v36 = vunpack.i.l.bf16 %v6365_v37 }
 0x2b6   : > { %6444 = vrot.lane.b32.xlu0 %v6443_v12, %s10582_s22  ;;  %6439 = vrot.lane.b32.xlu1 %v6438_v30, %s10567_s12  ;;  %v6362_v19 = vunpack.i.h.bf16 %v6360_v11  ;;  %v6361_v29 = vunpack.i.l.bf16 %v6360_v11  ;;  %v3187_v34 = vrot.slane %v3021_v25, 7 }
 0x2b7   : > { %v2811_v38 = vsel %vm624_vm1, %v2808_v15, %v2810_v52  ;;  %v2812_v22 = vrot.slane %v2700_v4, 1  ;;  %v3672_v15 = vsel %vm10711_vm9, %v3669_v39, %v3671_v47 }
 0x2b8   : > { %v2886_v14 = vmax.f32 %v2698_v50, %v2811_v38  ;;  %v3766_v0 = vsel %vm3762_vm13, %v3752_v62, %v6362_v19  ;;  %v3765_v63 = vsel %vm3762_vm13, %v3751_v45, %v6361_v29  ;;  %v3795_v20 = vpack.c.bf16 %v3672_v15, %v3670_v57 }
 0x2b9   : > { %v2813_v23 = vsel %vm624_vm1, %v2810_v52, %v2812_v22  ;;  %v3779_v33 = vsel %vm3776_vm6, %v3765_v63, %v6366_v36  ;;  %v3780_v51 = vsel %vm3776_vm6, %v3766_v0, %v6367_v13  ;;  %v3455_v45 = vrot.slane %v9717_v54, 3 }
 0x2ba   : > { %v2972_v56 = vrot.slane %v2886_v14, 2  ;;  %v2887_v50 = vmax.f32 %v2699_v16, %v2813_v23  ;;  %v3792_v40 = vpack.c.bf16 %v3780_v51, %v3779_v33 }
 0x2bb   : > { %v3456_v57 = vsel %vm1132_vm2, %v3453_v21, %v3455_v45 }
 0x2bc   : > { %v2973_v6 = vsel %vm427_vm0, %v2970_v32, %v2972_v56  ;;  %v2974_v12 = vrot.slane %v2887_v50, 2  ;;  %3925 = vmatmul.mubr.bf16.gmra.mrb[4].mxu1 %v3792_v40 }
 0x2bd   : > { %v3022_v1 = vmax.f32 %v9686_v61, %v2973_v6  ;;  %5221 = vmatprep.mubr.msk.bf16.mxu1 %vm2147_vm10, %v3795_v20 }
 0x2be   : > { %v2975_v30 = vsel %vm427_vm0, %v2972_v56, %v2974_v12 }
 0x2bf   : > { %v3190_v60 = vrot.slane %v3022_v1, 1  ;;  %v3192_v58 = vrot.slane %v3022_v1, 2  ;;  %v3210_v52 = vsel %vm3058_vm14, %v3187_v34, %v3022_v1  ;;  %v3023_v39 = vmax.f32 %v9723_v10, %v2975_v30 }
 0x2c0   : > { %v3194_v16 = vrot.slane %v3022_v1, 3  ;;  %v3263_v10 = vsel %vm10711_vm9, %v3249_v53, 0.0 }
 0x2c1   : > { %v3211_v4 = vsel %vm10712_vm11, %v3210_v52, %v3190_v60  ;;  %v3197_v32 = vrot.slane %v3023_v39, 4  ;;  %v3199_v25 = vrot.slane %v3023_v39, 5  ;;  %v3201_v11 = vrot.slane %v3023_v39, 6  ;;  %vm10714_vm11 = vmmov %vm10713_vm12  ;;  %v6370_v52 = vpop.permute.xlu1 %6369 }
 0x2c2   : > { %v3212_v37 = vsel %vm10713_vm12, %v3211_v4, %v3192_v58  ;;  %vm10715_vm12 = vmmov %vm10714_vm11 }
 0x2c3   : > { %v3213_v61 = vsel %vm445_vm3, %v3212_v37, %v3194_v16  ;;  %v6372_v37 = vunpack.i.h.bf16 %v6370_v52  ;;  %vm10716_vm9 = vmmov %vm10714_vm11 }
 0x2c4   : > { %v3214_v13 = vsel %vm1132_vm2, %v3213_v61, %v3197_v32  ;;  %v6375_v32 = vpop.permute.xlu0 %6374 }
 0x2c5   : > { %v3215_v36 = vsel %vm427_vm0, %v3214_v13, %v3199_v25  ;;  %v6371_v25 = vunpack.i.l.bf16 %v6370_v52 }
 0x2c6   : > { %v3216_v19 = vsel %vm624_vm1, %v3215_v36, %v3201_v11  ;;  %v6377_v36 = vunpack.i.h.bf16 %v6375_v32 }
 0x2c7   : > { %v3252_v29 = vrot.slane %v3216_v19, 4  ;;  %v6376_v19 = vunpack.i.l.bf16 %v6375_v32 }
 0x2c9   : > { %v9808_v62 = vsel %vm445_vm3, %v3252_v29, 0.0  ;;  %v9811_v38 = vsel %vm445_vm3, %v3263_v10, %v3252_v29  ;;  %v3699_v29 = vsel %vm2147_vm10, %v9359_v35, %v6372_v37  ;;  %v3698_v10 = vsel %vm2147_vm10, %v9263_v27, %v6371_v25 }
 0x2ca   : > { %v3358_v22 = vrot.slane %v9808_v62, 2  ;;  %v3297_v14 = vrot.slane %v9808_v62, 1  ;;  %v3457_v0 = vrot.slane %v9811_v38, 3  ;;  %v3356_v63 = vrot.slane %v9811_v38, 2 }
 0x2cb   : > { %v3519_v46 = vrot.slane %v9811_v38, 4  ;;  %v3521_v53 = vrot.slane %v9808_v62, 4  ;;  %v3619_v56 = vrot.slane %v9811_v38, 5  ;;  %v3621_v6 = vrot.slane %v9808_v62, 5 }
 0x2cc   : > { %3384 = vrot.lane.b32.xlu0 %v3358_v22, %s10582_s22  ;;  %3323 = vrot.lane.b32.xlu1 %v3297_v14, %s10567_s12  ;;  %v3458_v23 = vsel %vm1132_vm2, %v3455_v45, %v3457_v0  ;;  %v3357_v33 = vsel %vm427_vm0, %v3354_v3, %v3356_v63  ;;  %v3295_v21 = vrot.slane %v9811_v38, 1  ;;  %v3399_v60 = vsel %vm427_vm0, %v3358_v22, %v10674_v28 }
 0x2cd   : > { %v6453_v51 = vpack.i.bf16 %v3458_v23, %v3456_v57  ;;  %v6448_v15 = vpack.i.bf16 %v3357_v33, %v9750_v49  ;;  %v3520_v50 = vsel %vm445_vm3, %v3517_v55, %v3519_v46  ;;  %v3522_v40 = vsel %vm445_vm3, %v3519_v46, %v3521_v53 }
 0x2ce   : > { %v6463_v3 = vpack.i.bf16 %v3522_v40, %v3520_v50  ;;  %v6458_v12 = vpack.i.bf16 %v3520_v50, %v9741_v43  ;;  %v3620_v49 = vsel %vm10714_vm11, %v3617_v18, %v3619_v56  ;;  %v3622_v20 = vsel %vm10715_vm12, %v3619_v56, %v3621_v6 }
 0x2cf   : > { %v3296_v55 = vsel %vm624_vm1, %v3293_v8, %v3295_v21  ;;  %v3298_v34 = vsel %vm624_vm1, %v3295_v21, %v3297_v14  ;;  %v6468_v1 = vpack.i.bf16 %v3622_v20, %v3620_v49  ;;  %v3359_v43 = vsel %vm427_vm0, %v3356_v63, %v3358_v22 }
 0x2d0   : > { %6454 = vrot.lane.b32.xlu0 %v6453_v51, %s10571_s16  ;;  %6449 = vrot.lane.b32.xlu1 %v6448_v15, %s6790_s15  ;;  %v6473_v30 = vpack.i.bf16 %v3298_v34, %v3296_v55  ;;  %v3459_v18 = vrot.slane %v9808_v62, 3  ;;  %v6478_v8 = vpack.i.bf16 %v3359_v43, %v3357_v33  ;;  %v6483_v58 = vpack.i.bf16 %v3399_v60, %v3359_v43 }
 0x2d1   : > { %v3523_v4 = vsel %vm445_vm3, %v3521_v53, %v10672_v2  ;;  %v3623_v13 = vsel %vm10716_vm9, %v3621_v6, %v8800_v7  ;;  %vm10717_vm11 = vcmask 261120   ;;  %v3675_v50 = vrot.slane %v9717_v54, 6 }
 0x2d2   : > { %v3460_v39 = vsel %vm1132_vm2, %v3457_v0, %v3459_v18  ;;  %v3461_v16 = vsel %vm1132_vm2, %v3459_v18, %v10675_v48  ;;  %v6493_v11 = vpack.i.bf16 %v3523_v4, %v3522_v40  ;;  %v6498_v45 = vpack.i.bf16 %v10672_v2, %v3523_v4  ;;  %vm10718_vm12 = vmmov %vm10717_vm11 }
 0x2d3   : > { %v6488_v61 = vpack.i.bf16 %v3461_v16, %v3460_v39  ;;  %v6503_v22 = vpack.i.bf16 %v8800_v7, %v3623_v13  ;;  %v3711_v23 = vsel %vm10717_vm11, %v3698_v10, %v6376_v19  ;;  %v3712_v35 = vsel %vm10718_vm12, %v3699_v29, %v6377_v36 }
 0x2d4   : > { %6464 = vrot.lane.b32.xlu0 %v6463_v3, %s10569_s14  ;;  %6459 = vrot.lane.b32.xlu1 %v6458_v12, %s6792_s13  ;;  %v3673_v55 = vrot.slane %v9647_v44, 6  ;;  %vm10719_vm9 = vcmask 1041408  }
 0x2d5   : > { %vm10720_vm11 = vmmov %vm10719_vm9 }
 0x2d6   : > { %v3676_v60 = vsel %vm10719_vm9, %v3673_v55, %v3675_v50  ;;  %v3674_v52 = vsel %vm10720_vm11, %v3671_v47, %v3673_v55  ;;  %vm10721_vm9 = vmmov %vm10718_vm12 }
 0x2d7   : > { %v3797_v39 = vpack.c.bf16 %v3676_v60, %v3674_v52 }
 0x2d8   : > { %6469 = vrot.lane.b32.xlu1 %v6468_v1, %s6793_s24  ;;  %6474 = vrot.lane.b32.xlu0 %v6473_v30, %s10567_s12  ;;  %s10734_s12 = smov 12  }
 0x2dc   : > { %6479 = vrot.lane.b32.xlu1 %v6478_v8, %s10582_s22  ;;  %6484 = vrot.lane.b32.xlu0 %v6483_v58, %s6790_s15 }
 0x2e0   : > { %6489 = vrot.lane.b32.xlu1 %v6488_v61, %s10571_s16  ;;  %6494 = vrot.lane.b32.xlu0 %v6493_v11, %s6792_s13 }
 0x2e1   : > { %v6385_v14 = vpop.permute.xlu0 %6384 }
 0x2e2   : > { %v6380_v0 = vpop.permute.xlu1 %6379  ;;  %v6387_v53 = vunpack.i.h.bf16 %v6385_v14  ;;  %v6386_v57 = vunpack.i.l.bf16 %v6385_v14 }
 0x2e3   : > { %v6382_v63 = vunpack.i.h.bf16 %v6380_v0  ;;  %v6381_v46 = vunpack.i.l.bf16 %v6380_v0 }
 0x2e4   : > { %6499 = vrot.lane.b32.xlu1 %v6498_v45, %s10569_s14  ;;  %6504 = vrot.lane.b32.xlu0 %v6503_v22, %s6793_s24 }
 0x2e5   : > { %v3726_v27 = vsel %vm3720_vm4, %v3712_v35, %v6382_v63  ;;  %v3725_v33 = vsel %vm3720_vm4, %v3711_v23, %v6381_v46  ;;  %v6395_v51 = vpop.permute.xlu0 %6394 }
 0x2e6   : > { %v6390_v7 = vpop.permute.xlu1 %6389  ;;  %v6397_v40 = vunpack.i.h.bf16 %v6395_v51  ;;  %v6396_v6 = vunpack.i.l.bf16 %v6395_v51  ;;  %v3739_v21 = vsel %vm3734_vm5, %v3725_v33, %v6386_v57  ;;  %v3740_v3 = vsel %vm3734_vm5, %v3726_v27, %v6387_v53 }
 0x2e7   : > { %v6392_v15 = vunpack.i.h.bf16 %v6390_v7  ;;  %v6391_v56 = vunpack.i.l.bf16 %v6390_v7  ;;  %v3679_v33 = vrot.slane %v9808_v62, 6 }
 0x2e8   : > { %3424 = vrot.lane.b32.xlu1 %v10674_v28, %s6790_s15  ;;  %3486 = vrot.lane.b32.xlu0 %v10675_v48, %s10571_s16  ;;  %s10729_s16 = smov 96   ;;  %s378_s15 = sand.u32 1, %s6769_s18  }
 0x2e9   : > { %v3753_v12 = vsel %vm3748_vm15, %v3739_v21, %v6391_v56  ;;  %v3754_v49 = vsel %vm3748_vm15, %v3740_v3, %v6392_v15 }
 0x2ea   : > { %v6400_v20 = vpop.permute.xlu1 %6399  ;;  %v3767_v30 = vsel %vm3762_vm13, %v3753_v12, %v6396_v6  ;;  %v3768_v43 = vsel %vm3762_vm13, %v3754_v49, %v6397_v40 }
 0x2eb   : > { %v6402_v34 = vunpack.i.h.bf16 %v6400_v20  ;;  %v6401_v1 = vunpack.i.l.bf16 %v6400_v20  ;;  %v6405_v16 = vpop.permute.xlu0 %6404 }
 0x2ec   : > { %3548 = vrot.lane.b32.xlu1 %v10672_v2, %s6792_s13  ;;  %3587 = vrot.lane.b32.xlu0 %v10672_v2, %s10569_s14  ;;  %v6407_v37 = vunpack.i.h.bf16 %v6405_v16  ;;  %v6406_v25 = vunpack.i.l.bf16 %v6405_v16  ;;  %s10733_s13 = smov 8  }
 0x2ed   : > { %v3781_v18 = vsel %vm3776_vm6, %v3767_v30, %v6401_v1  ;;  %v3782_v8 = vsel %vm3776_vm6, %v3768_v43, %v6402_v34 }
 0x2ee   : > { %v3794_v58 = vpack.c.bf16 %v3782_v8, %v3781_v18  ;;  %v6410_v4 = vpop.permute.xlu1 %6409  ;;  %v3701_v29 = vsel %vm2147_vm10, %v9543_v42, %v6407_v37  ;;  %v3700_v47 = vsel %vm2147_vm10, %v9430_v31, %v6406_v25  ;;  %v3677_v31 = vrot.slane %v9811_v38, 6 }
 0x2ef   : > { %v6412_v61 = vunpack.i.h.bf16 %v6410_v4  ;;  %v6411_v11 = vunpack.i.l.bf16 %v6410_v4 }
 0x2f0   : > { %3933 = vmatmul.mubr.bf16.gmra.mrb[8].mxu1 %v3794_v58  ;;  %v3678_v20 = vsel %vm10720_vm11, %v3675_v50, %v3677_v31 }
 0x2f1   : > { %5222 = vmatprep.mubr.msk.bf16.mxu1 %vm2147_vm10, %v3797_v39  ;;  %v3713_v45 = vsel %vm10718_vm12, %v3700_v47, %v6411_v11  ;;  %v3714_v22 = vsel %vm10721_vm9, %v3701_v29, %v6412_v61  ;;  %vm10722_vm12 = vmmov %vm10720_vm11 }
 0x2f2   : > { %v3680_v55 = vsel %vm10722_vm12, %v3677_v31, %v3679_v33  ;;  %vm10723_vm11 = vmmov %vm10721_vm9 }
 0x2f3   : > { %v3799_v1 = vpack.c.bf16 %v3680_v55, %v3678_v20 }
 0x300   : > { %v6415_v32 = vpop.permute.xlu0 %6414  ;;  %v6420_v13 = vpop.permute.xlu1 %6419 }
 0x301   : > { %v6417_v36 = vunpack.i.h.bf16 %v6415_v32  ;;  %v6416_v19 = vunpack.i.l.bf16 %v6415_v32  ;;  %v6422_v14 = vunpack.i.h.bf16 %v6420_v13  ;;  %v6421_v0 = vunpack.i.l.bf16 %v6420_v13 }
 0x303   : > { %v3728_v63 = vsel %vm3720_vm4, %v3714_v22, %v6417_v36  ;;  %v3727_v46 = vsel %vm3720_vm4, %v3713_v45, %v6416_v19 }
 0x304   : > { %v6425_v10 = vpop.permute.xlu0 %6424  ;;  %v3741_v23 = vsel %vm3734_vm5, %v3727_v46, %v6421_v0  ;;  %v3742_v42 = vsel %vm3734_vm5, %v3728_v63, %v6422_v14 }
 0x305   : > { %v6427_v53 = vunpack.i.h.bf16 %v6425_v10  ;;  %v6426_v57 = vunpack.i.l.bf16 %v6425_v10 }
 0x307   : > { %v3755_v40 = vsel %vm3748_vm15, %v3741_v23, %v6426_v57  ;;  %v3756_v6 = vsel %vm3748_vm15, %v3742_v42, %v6427_v53 }
 0x324   : > { %v6435_v35 = vpop.permute.xlu0 %6434  ;;  %v6430_v27 = vpop.permute.xlu1 %6429 }
 0x325   : > { %v6437_v51 = vunpack.i.h.bf16 %v6435_v35  ;;  %v6436_v7 = vunpack.i.l.bf16 %v6435_v35  ;;  %v6432_v15 = vunpack.i.h.bf16 %v6430_v27  ;;  %v6431_v56 = vunpack.i.l.bf16 %v6430_v27 }
 0x326   : > { %v3681_v35 = vsel %vm10722_vm12, %v3679_v33, %v8808_v17  ;;  %vm10725_vm12 = vmmov %vm10721_vm9 }
 0x327   : > { %v3770_v21 = vsel %vm3762_vm13, %v3756_v6, %v6432_v15  ;;  %v3769_v3 = vsel %vm3762_vm13, %v3755_v40, %v6431_v56  ;;  %v3801_v55 = vpack.c.bf16 %v8808_v17, %v3681_v35 }
 0x328   : > { %v3783_v12 = vsel %vm3776_vm6, %v3769_v3, %v6436_v7  ;;  %v3784_v49 = vsel %vm3776_vm6, %v3770_v21, %v6437_v51  ;;  %v6445_v30 = vpop.permute.xlu0 %6444  ;;  %v6440_v43 = vpop.permute.xlu1 %6439 }
 0x329   : > { %v3796_v34 = vpack.c.bf16 %v3784_v49, %v3783_v12  ;;  %v6442_v60 = vunpack.i.h.bf16 %v6440_v43  ;;  %v6441_v18 = vunpack.i.l.bf16 %v6440_v43  ;;  %v6447_v52 = vunpack.i.h.bf16 %v6445_v30 }
 0x32a   : > { %v6446_v39 = vunpack.i.l.bf16 %v6445_v30 }
 0x32b   : > { %3941 = vmatmul.mubr.bf16.gmra.mrb[12].mxu1 %v3796_v34  ;;  %v3703_v50 = vsel %vm2147_vm10, %v9647_v44, %v6442_v60  ;;  %v3702_v16 = vsel %vm2147_vm10, %v9539_v5, %v6441_v18 }
 0x32c   : > { %5223 = vmatprep.mubr.msk.bf16.mxu1 %vm2147_vm10, %v3799_v1  ;;  %v3715_v13 = vsel %vm10721_vm9, %v3702_v16, %v6446_v39  ;;  %v3716_v36 = vsel %vm10723_vm11, %v3703_v50, %v6447_v52  ;;  %vm10724_vm11 = vmmov %vm10721_vm9 }
 0x33e   : > { %v9922_v8 = vpop.permute.xlu0 %3384  ;;  %v9924_v58 = vpop.permute.xlu1 %3323 }
 0x342   : > { %v6455_v4 = vpop.permute.xlu0 %6454  ;;  %v6450_v32 = vpop.permute.xlu1 %6449 }
 0x343   : > { %v6452_v37 = vunpack.i.h.bf16 %v6450_v32  ;;  %v6451_v25 = vunpack.i.l.bf16 %v6450_v32  ;;  %v6457_v61 = vunpack.i.h.bf16 %v6455_v4  ;;  %v6456_v11 = vunpack.i.l.bf16 %v6455_v4 }
 0x345   : > { %v3730_v19 = vsel %vm3720_vm4, %v3716_v36, %v6452_v37  ;;  %v3729_v29 = vsel %vm3720_vm4, %v3715_v13, %v6451_v25  ;;  %v3706_v13 = vsel %vm2147_vm10, %v9808_v62, %v9924_v58  ;;  %v3803_v58 = vpack.c.bf16 %v8808_v17, %v8808_v17  ;;  %v9978_v17 = vld [vmem:[%s10510_s4] ss:$0 sm:$0xff] }
 0x346   : > { %v6465_v47 = vpop.permute.xlu0 %6464  ;;  %v6460_v10 = vpop.permute.xlu1 %6459  ;;  %v3743_v14 = vsel %vm3734_vm5, %v3729_v29, %v6456_v11  ;;  %v3744_v0 = vsel %vm3734_vm5, %v3730_v19, %v6457_v61 }
 0x347   : > { %v6462_v44 = vunpack.i.h.bf16 %v6460_v10  ;;  %v6461_v45 = vunpack.i.l.bf16 %v6460_v10  ;;  %v6467_v22 = vunpack.i.h.bf16 %v6465_v47  ;;  %v6466_v5 = vunpack.i.l.bf16 %v6465_v47 }
 0x349   : > { %v3757_v63 = vsel %vm3748_vm15, %v3743_v14, %v6461_v45  ;;  %v3758_v46 = vsel %vm3748_vm15, %v3744_v0, %v6462_v44  ;;  %v3719_v14 = vsel %vm10725_vm12, %v3706_v13, %v9922_v8 }
 0x34a   : > { %v6470_v53 = vpop.permute.xlu1 %6469  ;;  %v6475_v57 = vpop.permute.xlu0 %6474  ;;  %v3771_v51 = vsel %vm3762_vm13, %v3757_v63, %v6466_v5  ;;  %v3772_v7 = vsel %vm3762_vm13, %v3758_v46, %v6467_v22 }
 0x34b   : > { %v6472_v23 = vunpack.i.h.bf16 %v6470_v53  ;;  %v6471_v42 = vunpack.i.l.bf16 %v6470_v53  ;;  %v6477_v27 = vunpack.i.h.bf16 %v6475_v57  ;;  %v6476_v31 = vunpack.i.l.bf16 %v6475_v57  ;;  %v3919_v40 = vpop.f32.mrb[0].mxu1 }
 0x34c   : > { %v3920_v3 = vpop.f32.mrb[1].mxu1 }
 0x34d   : > { %v3785_v15 = vsel %vm3776_vm6, %v3771_v51, %v6471_v42  ;;  %v3786_v56 = vsel %vm3776_vm6, %v3772_v7, %v6472_v23  ;;  %v3705_v33 = vsel %vm2147_vm10, %v9811_v38, %v6477_v27  ;;  %v3704_v34 = vsel %vm2147_vm10, %v9717_v54, %v6476_v31  ;;  %v3921_v1 = vpop.f32.mrb[2].mxu1 }
 0x34e   : > { %v6480_v6 = vpop.permute.xlu1 %6479  ;;  %v3798_v21 = vpack.c.bf16 %v3786_v56, %v3785_v15  ;;  %v6485_v20 = vpop.permute.xlu0 %6484  ;;  %v3922_v7 = vadd.f32 %v9978_v17, %v3921_v1 }
 0x34f   : > { %v6482_v12 = vunpack.i.h.bf16 %v6480_v6  ;;  %v6481_v49 = vunpack.i.l.bf16 %v6480_v6  ;;  %v6487_v30 = vunpack.i.h.bf16 %v6485_v20  ;;  %v6486_v43 = vunpack.i.l.bf16 %v6485_v20  ;;  %v3923_v60 = vpop.f32.mrb[3].mxu1 }
 0x350   : > { %3949 = vmatmul.mubr.bf16.gmra.mrb[16].mxu1 %v3798_v21  ;;  %v3972_v56 = vmax.f32 %v3922_v7, 0.0  ;;  %v6567_v7 = vld [vmem:[%s10511_s5 + $0x54] ss:$8 sps:$4 sm:$0xff]  }
 0x351   : > { %v3717_v18 = vsel %vm10721_vm9, %v3704_v34, %v6481_v49  ;;  %v3718_v52 = vsel %vm10724_vm11, %v3705_v33, %v6482_v12  ;;  %5224 = vmatprep.mubr.msk.bf16.mxu1 %vm2147_vm10, %v3801_v55 }
 0x352   : > { %v6490_v39 = vpop.permute.xlu1 %6489  ;;  %v6495_v4 = vpop.permute.xlu0 %6494  ;;  %v3731_v38 = vsel %vm3720_vm4, %v3717_v18, %v6486_v43  ;;  %v3732_v32 = vsel %vm3720_vm4, %v3718_v52, %v6487_v30  ;;  %v3996_v20 = vrot.slane %v3972_v56, 1 }
 0x353   : > { %v6492_v50 = vunpack.i.h.bf16 %v6490_v39  ;;  %v6491_v16 = vunpack.i.l.bf16 %v6490_v39  ;;  %v6497_v54 = vunpack.i.h.bf16 %v6495_v4  ;;  %v6496_v37 = vunpack.i.l.bf16 %v6495_v4 }
 0x355   : > { %v3745_v25 = vsel %vm3734_vm5, %v3731_v38, %v6491_v16  ;;  %v3746_v61 = vsel %vm3734_vm5, %v3732_v32, %v6492_v50 }
 0x356   : > { %v6500_v11 = vpop.permute.xlu1 %6499  ;;  %v6505_v29 = vpop.permute.xlu0 %6504  ;;  %v3759_v47 = vsel %vm3748_vm15, %v3745_v25, %v6496_v37  ;;  %v3760_v10 = vsel %vm3748_vm15, %v3746_v61, %v6497_v54 }
 0x357   : > { %v6502_v36 = vunpack.i.h.bf16 %v6500_v11  ;;  %v6501_v19 = vunpack.i.l.bf16 %v6500_v11  ;;  %v6507_v44 = vunpack.i.h.bf16 %v6505_v29  ;;  %v6506_v45 = vunpack.i.l.bf16 %v6505_v29 }
 0x359   : > { %v3773_v22 = vsel %vm3762_vm13, %v3759_v47, %v6501_v19  ;;  %v3774_v5 = vsel %vm3762_vm13, %v3760_v10, %v6502_v36  ;;  %v6550_v10 = vld [vmem:[%s10511_s5] ss:$8 sps:$4 sm:$0xff]  }
 0x35a   : > { %v3425_v0 = vpop.permute.xlu1 %3424  ;;  %v3787_v63 = vsel %vm3776_vm6, %v3773_v22, %v6506_v45  ;;  %v3788_v62 = vsel %vm3776_vm6, %v3774_v5, %v6507_v44  ;;  %v3487_v53 = vpop.permute.xlu0 %3486 }
 0x35b   : > { %v3733_v46 = vsel %vm3720_vm4, %v3719_v14, %v3425_v0  ;;  %v3800_v57 = vpack.c.bf16 %v3788_v62, %v3787_v63  ;;  %v6553_v62 = vld [vmem:[%s10511_s5 + $0x10] ss:$8 sps:$4 sm:$0xff]   ;;  %vm10727_vm4 = vcmask 1042432  }
 0x35c   : > { %v3747_v23 = vsel %vm3734_vm5, %v3733_v46, %v3487_v53  ;;  %vm10731_vm9 = vmmov %vm10727_vm4 }
 0x35d   : > { %3957 = vmatmul.mubr.bf16.gmra.mrb[20].mxu1 %v3800_v57 }
 0x35e   : > { %v3549_v42 = vpop.permute.xlu1 %3548  ;;  %5225 = vmatprep.mubr.msk.bf16.mxu1 %vm2147_vm10, %v3803_v58  ;;  %v3588_v35 = vpop.permute.xlu0 %3587  ;;  %v6555_v58 = vld [vmem:[%s10511_s5 + $0x14] ss:$8 sps:$4 sm:$0xff]  }
 0x35f   : > { %v3761_v8 = vsel %vm3748_vm15, %v3747_v23, %v3549_v42  ;;  %vm10726_vm15 = vcmask 1041408   ;;  %v6556_v42 = vld [vmem:[%s10511_s5 + $0x20] ss:$8 sps:$4 sm:$0xff]  }
 0x360   : > { %v3775_v27 = vsel %vm3762_vm13, %v3761_v8, %v3588_v35  ;;  %v6558_v8 = vld [vmem:[%s10511_s5 + $0x24] ss:$8 sps:$4 sm:$0xff]   ;;  %v6559_v35 = vld [vmem:[%s10511_s5 + $0x30] ss:$8 sps:$4 sm:$0xff]  }
 0x361   : > { %v3789_v31 = vsel %vm3776_vm6, %v3775_v27, %v6507_v44  ;;  %v6552_v44 = vld [vmem:[%s10511_s5 + $0x4] ss:$8 sps:$4 sm:$0xff]   ;;  %v6561_v27 = vld [vmem:[%s10511_s5 + $0x34] ss:$8 sps:$4 sm:$0xff]   ;;  %vm10730_vm6 = vmmov %vm10726_vm15 }
 0x362   : > { %v3802_v51 = vpack.c.bf16 %v3789_v31, %v3789_v31  ;;  %4605 = vmatprep.subr.bf16.mxu1 %v6552_v44  ;;  %v6562_v31 = vld [vmem:[%s10511_s5 + $0x40] ss:$8 sps:$4 sm:$0xff]  }
 0x363   : > { %4606 = vmatpush1.bf16.msra.mxu1 %v6550_v10 }
 0x364   : > { %4607 = vmatprep.subr.bf16.mxu1 %v6555_v58 }
 0x365   : > { %3965 = vmatmul.mubr.bf16.gmra.mrb[24].mxu1 %v3802_v51  ;;  %v6564_v51 = vld [vmem:[%s10511_s5 + $0x44] ss:$8 sps:$4 sm:$0xff]  }
 0x367   : > { %4608 = vmatpush1.bf16.msra.mxu1 %v6553_v62 }
 0x368   : > { %4609 = vmatprep.subr.bf16.mxu1 %v6558_v8 }
 0x36b   : > { %4610 = vmatpush1.bf16.msra.mxu1 %v6556_v42  ;;  %v6597_v42 = vld [vmem:[%s10511_s5 + $0xf4] ss:$8 sps:$4 sm:$0xff]  }
 0x36c   : > { %4611 = vmatprep.subr.bf16.mxu1 %v6561_v27 }
 0x36f   : > { %4612 = vmatpush1.bf16.msra.mxu1 %v6559_v35 }
 0x370   : > { %4613 = vmatprep.subr.bf16.mxu1 %v6564_v51  ;;  %v6600_v51 = vld [vmem:[%s10511_s5 + $0x104] ss:$8 sps:$4 sm:$0xff]  }
 0x373   : > { %4614 = vmatpush1.bf16.msra.mxu1 %v6562_v31 }
 0x374   : > { %4615 = vmatprep.subr.bf16.mxu1 %v6567_v7 }
 0x38f   : > { %v3926_v15 = vpop.f32.mrb[4].mxu1 }
 0x390   : > { %v3927_v40 = vadd.f32 %v9978_v17, %v3926_v15  ;;  %v3928_v6 = vpop.f32.mrb[5].mxu1  ;;  %v6565_v15 = vld [vmem:[%s10511_s5 + $0x50] ss:$8 sps:$4 sm:$0xff]  }
 0x391   : > { %v3929_v21 = vpop.f32.mrb[6].mxu1  ;;  %4616 = vmatpush1.bf16.msra.mxu1 %v6565_v15  ;;  %v6573_v6 = vld [vmem:[%s10511_s5 + $0x74] ss:$8 sps:$4 sm:$0xff]  }
 0x392   : > { %v3973_v3 = vmax.f32 %v3927_v40, 0.0  ;;  %v3930_v12 = vadd.f32 %v9978_v17, %v3929_v21  ;;  %v3931_v49 = vpop.f32.mrb[7].mxu1  ;;  %v6568_v40 = vld [vmem:[%s10511_s5 + $0x60] ss:$8 sps:$4 sm:$0xff]   ;;  %v6571_v21 = vld [vmem:[%s10511_s5 + $0x70] ss:$8 sps:$4 sm:$0xff]  }
 0x393   : > { %v6579_v49 = vld [vmem:[%s10511_s5 + $0x94] ss:$8 sps:$4 sm:$0xff]  }
 0x394   : > { %v3997_v55 = vrot.slane %v3973_v3, 1  ;;  %v3974_v33 = vmax.f32 %v3930_v12, 0.0  ;;  %v6574_v12 = vld [vmem:[%s10511_s5 + $0x80] ss:$8 sps:$4 sm:$0xff]  }
 0x396   : > { %v3998_v34 = vsel %vm624_vm1, %v3996_v20, %v3997_v55  ;;  %v3999_v30 = vrot.slane %v3974_v33, 1  ;;  %v6577_v20 = vld [vmem:[%s10511_s5 + $0x90] ss:$8 sps:$4 sm:$0xff]  }
 0x397   : > { %v4030_v43 = vmax.f32 %v3972_v56, %v3998_v34  ;;  %v6570_v56 = vld [vmem:[%s10511_s5 + $0x64] ss:$8 sps:$4 sm:$0xff]   ;;  %v6585_v34 = vld [vmem:[%s10511_s5 + $0xb4] ss:$8 sps:$4 sm:$0xff]  }
 0x398   : > { %v4000_v60 = vsel %vm624_vm1, %v3997_v55, %v3999_v30  ;;  %4617 = vmatprep.subr.bf16.mxu1 %v6570_v56  ;;  %v6582_v55 = vld [vmem:[%s10511_s5 + $0xa4] ss:$8 sps:$4 sm:$0xff]  }
 0x399   : > { %v4031_v1 = vmax.f32 %v3973_v3, %v4000_v60  ;;  %4618 = vmatpush1.bf16.msra.mxu1 %v6568_v40  ;;  %v6576_v3 = vld [vmem:[%s10511_s5 + $0x84] ss:$8 sps:$4 sm:$0xff]  }
 0x39a   : > { %4619 = vmatprep.subr.bf16.mxu1 %v6573_v6 }
 0x39b   : > { %v4051_v13 = vrot.slane %v4031_v1, 2 }
 0x39d   : > { %4620 = vmatpush1.bf16.msra.mxu1 %v6571_v21 }
 0x39e   : > { %4621 = vmatprep.subr.bf16.mxu1 %v6576_v3 }
 0x3a1   : > { %4622 = vmatpush1.bf16.msra.mxu1 %v6574_v12 }
 0x3a2   : > { %4623 = vmatprep.subr.bf16.mxu1 %v6579_v49 }
 0x3a5   : > { %4624 = vmatpush1.bf16.msra.mxu1 %v6577_v20 }
 0x3a6   : > { %4625 = vmatprep.subr.bf16.mxu1 %v6582_v55 }
 0x3c3   : > { %v3934_v18 = vpop.f32.mrb[8].mxu1 }
 0x3c4   : > { %v3935_v52 = vadd.f32 %v9978_v17, %v3934_v18  ;;  %v3936_v39 = vpop.f32.mrb[9].mxu1 }
 0x3c5   : > { %v3937_v50 = vpop.f32.mrb[10].mxu1 }
 0x3c6   : > { %v3975_v16 = vmax.f32 %v3935_v52, 0.0  ;;  %v9987_v4 = vadd.f32 %v9978_v17, %v3937_v50  ;;  %v3939_v38 = vpop.f32.mrb[11].mxu1  ;;  %v6586_v52 = vld [vmem:[%s10511_s5 + $0xc0] ss:$8 sps:$4 sm:$0xff]   ;;  %v6591_v50 = vld [vmem:[%s10511_s5 + $0xd4] ss:$8 sps:$4 sm:$0xff]  }
 0x3c8   : > { %v4001_v32 = vrot.slane %v3975_v16, 1  ;;  %v3976_v54 = vmax.f32 %v9987_v4, 0.0  ;;  %v6592_v4 = vld [vmem:[%s10511_s5 + $0xe0] ss:$8 sps:$4 sm:$0xff]  }
 0x3ca   : > { %v4002_v37 = vsel %vm624_vm1, %v3999_v30, %v4001_v32  ;;  %v9993_v25 = vrot.slane %v3976_v54, 1  ;;  %v6583_v30 = vld [vmem:[%s10511_s5 + $0xb0] ss:$8 sps:$4 sm:$0xff]  }
 0x3cb   : > { %v9995_v61 = vmax.f32 %v3974_v33, %v4002_v37  ;;  %v6580_v33 = vld [vmem:[%s10511_s5 + $0xa0] ss:$8 sps:$4 sm:$0xff]  }
 0x3cc   : > { %v4004_v11 = vsel %vm624_vm1, %v4001_v32, %v9993_v25  ;;  %4626 = vmatpush1.bf16.msra.mxu1 %v6580_v33 }
 0x3cd   : > { %v4052_v36 = vrot.slane %v9995_v61, 2  ;;  %v10000_v19 = vmax.f32 %v3975_v16, %v4004_v11  ;;  %4627 = vmatprep.subr.bf16.mxu1 %v6585_v34 }
 0x3cf   : > { %v4053_v29 = vsel %vm427_vm0, %v4051_v13, %v4052_v36  ;;  %v4054_v47 = vrot.slane %v10000_v19, 2  ;;  %v6589_v13 = vld [vmem:[%s10511_s5 + $0xd0] ss:$8 sps:$4 sm:$0xff]  }
 0x3d0   : > { %v4077_v45 = vmax.f32 %v4030_v43, %v4053_v29  ;;  %v6588_v43 = vld [vmem:[%s10511_s5 + $0xc4] ss:$8 sps:$4 sm:$0xff]   ;;  %4628 = vmatpush1.bf16.msra.mxu1 %v6583_v30 }
 0x3d1   : > { %v4055_v22 = vsel %vm427_vm0, %v4052_v36, %v4054_v47  ;;  %4629 = vmatprep.subr.bf16.mxu1 %v6588_v43 }
 0x3d2   : > { %v4086_v5 = vrot.slane %v4077_v45, 3  ;;  %v4088_v14 = vrot.slane %v4077_v45, 4  ;;  %v4090_v0 = vrot.slane %v4077_v45, 5  ;;  %v4078_v63 = vmax.f32 %v4031_v1, %v4055_v22 }
 0x3d4   : > { %v4125_v46 = vsel %vm3058_vm14, %v4086_v5, %v4088_v14  ;;  %v4093_v53 = vrot.slane %v4078_v63, 6  ;;  %4630 = vmatpush1.bf16.msra.mxu1 %v6586_v52 }
 0x3d5   : > { %v4126_v57 = vsel %vm10726_vm15, %v4125_v46, %v4090_v0  ;;  %4631 = vmatprep.subr.bf16.mxu1 %v6591_v50 }
 0x3d6   : > { %v10022_v23 = vsel %vm10727_vm4, %v4126_v57, %v4093_v53  ;;  %v6595_v57 = vld [vmem:[%s10511_s5 + $0xf0] ss:$8 sps:$4 sm:$0xff]  }
 0x3d8   : > { %4632 = vmatpush1.bf16.msra.mxu1 %v6589_v13 }
 0x3fe   : > { %v3942_v60 = vpop.f32.mrb[12].mxu1 }
 0x3ff   : > { %v3943_v1 = vadd.f32 %v9978_v17, %v3942_v60  ;;  %v3944_v18 = vpop.f32.mrb[13].mxu1 }
 0x400   : > { %v3945_v39 = vpop.f32.mrb[14].mxu1 }
 0x401   : > { %v3977_v16 = vmax.f32 %v3943_v1, 0.0  ;;  %v3946_v38 = vadd.f32 %v9978_v17, %v3945_v39  ;;  %v3947_v32 = vpop.f32.mrb[15].mxu1 }
 0x403   : > { %v4005_v37 = vrot.slane %v3977_v16, 1  ;;  %v3978_v11 = vmax.f32 %v3946_v38, 0.0 }
 0x405   : > { %v4006_v36 = vsel %vm624_vm1, %v9993_v25, %v4005_v37  ;;  %v4007_v29 = vrot.slane %v3978_v11, 1 }
 0x406   : > { %v4034_v10 = vmax.f32 %v3976_v54, %v4006_v36  ;;  %v6594_v54 = vld [vmem:[%s10511_s5 + $0xe4] ss:$8 sps:$4 sm:$0xff]  }
 0x407   : > { %v4008_v44 = vsel %vm624_vm1, %v4005_v37, %v4007_v29  ;;  %4633 = vmatprep.subr.bf16.mxu1 %v6594_v54 }
 0x408   : > { %v4056_v45 = vrot.slane %v4034_v10, 2  ;;  %v4035_v22 = vmax.f32 %v3977_v16, %v4008_v44  ;;  %4634 = vmatpush1.bf16.msra.mxu1 %v6592_v4 }
 0x409   : > { %4635 = vmatprep.subr.bf16.mxu1 %v6597_v42 }
 0x40a   : > { %v4057_v5 = vsel %vm427_vm0, %v4054_v47, %v4056_v45  ;;  %v4058_v14 = vrot.slane %v4035_v22, 2 }
 0x40b   : > { %v4079_v0 = vmax.f32 %v9995_v61, %v4057_v5 }
 0x40c   : > { %v4059_v63 = vsel %vm427_vm0, %v4056_v45, %v4058_v14  ;;  %4636 = vmatpush1.bf16.msra.mxu1 %v6595_v57 }
 0x40d   : > { %v4096_v62 = vrot.slane %v4079_v0, 3  ;;  %v4080_v25 = vmax.f32 %v10000_v19, %v4059_v63  ;;  %4646 = vmatprep.subr.bf16.mxu1 %v6600_v51 }
 0x40f   : > { %v4128_v58 = vsel %vm445_vm3, %v10022_v23, %v4096_v62  ;;  %v4099_v47 = vrot.slane %v4080_v25, 4  ;;  %v4101_v46 = vrot.slane %v4080_v25, 5  ;;  %v4103_v61 = vrot.slane %v4080_v25, 6 }
 0x411   : > { %v4129_v53 = vsel %vm1132_vm2, %v4128_v58, %v4099_v47 }
 0x412   : > { %v4130_v19 = vsel %vm427_vm0, %v4129_v53, %v4101_v46 }
 0x413   : > { %v10126_v8 = vsel %vm624_vm1, %v4130_v19, %v4103_v61 }
 0x414   : > { %v4140_v23 = vrot.slane %v10126_v8, 1  ;;  %v4154_v35 = vrot.slane %v10126_v8, 5  ;;  %v4144_v27 = vrot.slane %v10126_v8, 2  ;;  %v4158_v31 = vrot.slane %v10126_v8, 6 }
 0x415   : > { %v4148_v56 = vrot.slane %v10126_v8, 3  ;;  %v4162_v40 = vrot.slane %v10126_v8, 7 }
 0x416   : > { %v6508_v7 = vpack.i.bf16 %v4140_v23, %v4154_v35  ;;  %v6513_v15 = vpack.i.bf16 %v4144_v27, %v4158_v31 }
 0x417   : > { %v6518_v6 = vpack.i.bf16 %v4148_v56, %v4162_v40 }
 0x418   : > { %6509 = vrot.lane.b32.xlu1 %v6508_v7, %s10582_s22  ;;  %6514 = vrot.lane.b32.xlu0 %v6513_v15, %s10728_s0 }
 0x41c   : > { %6519 = vrot.lane.b32.xlu1 %v6518_v6, %s10729_s16 }
 0x423   : > { %v3950_v21 = vpop.f32.mrb[16].mxu1 }
 0x424   : > { %v3951_v3 = vadd.f32 %v9978_v17, %v3950_v21  ;;  %v3952_v12 = vpop.f32.mrb[17].mxu1 }
 0x425   : > { %v3953_v49 = vpop.f32.mrb[18].mxu1 }
 0x426   : > { %v3979_v20 = vmax.f32 %v3951_v3, 0.0  ;;  %v3954_v55 = vadd.f32 %v9978_v17, %v3953_v49  ;;  %v3955_v33 = vpop.f32.mrb[19].mxu1 }
 0x428   : > { %v4009_v34 = vrot.slane %v3979_v20, 1  ;;  %v3980_v30 = vmax.f32 %v3954_v55, 0.0 }
 0x42a   : > { %v4010_v43 = vsel %vm624_vm1, %v4007_v29, %v4009_v34  ;;  %v4011_v60 = vrot.slane %v3980_v30, 1 }
 0x42b   : > { %v4036_v1 = vmax.f32 %v3978_v11, %v4010_v43 }
 0x42c   : > { %v4012_v18 = vsel %vm624_vm1, %v4009_v34, %v4011_v60 }
 0x42d   : > { %v4037_v52 = vmax.f32 %v3979_v20, %v4012_v18  ;;  %v4060_v39 = vrot.slane %v4036_v1, 2 }
 0x42f   : > { %v4061_v50 = vrot.slane %v4037_v52, 2 }
 0x430   : > { %v3958_v16 = vpop.f32.mrb[20].mxu1 }
 0x431   : > { %v4062_v38 = vsel %vm427_vm0, %v4060_v39, %v4061_v50  ;;  %v3959_v32 = vadd.f32 %v9978_v17, %v3958_v16  ;;  %v3960_v37 = vpop.f32.mrb[21].mxu1 }
 0x432   : > { %v4081_v13 = vmax.f32 %v4035_v22, %v4062_v38  ;;  %v3961_v36 = vpop.f32.mrb[22].mxu1  ;;  %v6646_v37 = vld [vmem:[%s10513_s7] ss:$8 sps:$4 sm:$0xff]  }
 0x433   : > { %v3981_v10 = vmax.f32 %v3959_v32, 0.0  ;;  %v3962_v44 = vadd.f32 %v9978_v17, %v3961_v36  ;;  %v3963_v45 = vpop.f32.mrb[23].mxu1  ;;  %v6651_v36 = vld [vmem:[%s10513_s7 + $0x14] ss:$8 sps:$4 sm:$0xff]  }
 0x434   : > { %v4106_v62 = vrot.slane %v4081_v13, 3  ;;  %v4108_v25 = vrot.slane %v4081_v13, 4  ;;  %v4110_v19 = vrot.slane %v4081_v13, 5  ;;  %v6648_v13 = vld [vmem:[%s10513_s7 + $0x4] ss:$8 sps:$4 sm:$0xff]  }
 0x435   : > { %v4013_v29 = vrot.slane %v3981_v10, 1  ;;  %v3982_v5 = vmax.f32 %v3962_v44, 0.0  ;;  %4895 = vmatprep.subr.bf16.mxu0 %v6648_v13  ;;  %v6660_v44 = vld [vmem:[%s10513_s7 + $0x44] ss:$8 sps:$4 sm:$0xff]   ;;  %v6663_v45 = vld [vmem:[%s10513_s7 + $0x54] ss:$8 sps:$4 sm:$0xff]  }
 0x436   : > { %v4132_v23 = vsel %vm3058_vm14, %v4106_v62, %v4108_v25  ;;  %4896 = vmatpush1.bf16.msra.mxu0 %v6646_v37  ;;  %v6670_v62 = vld [vmem:[%s10513_s7 + $0x80] ss:$8 sps:$4 sm:$0xff]   ;;  %v6675_v25 = vld [vmem:[%s10513_s7 + $0x94] ss:$8 sps:$4 sm:$0xff]   ;;  %v6613_v37 = vld [vmem:[%s10511_s5 + $0x150] ss:$8 sps:$4 sm:$0xff]  }
 0x437   : > { %v4014_v11 = vsel %vm624_vm1, %v4011_v60, %v4013_v29  ;;  %v4015_v14 = vrot.slane %v3982_v5, 1  ;;  %v4133_v15 = vsel %vm10730_vm6, %v4132_v23, %v4110_v19  ;;  %4897 = vmatprep.subr.bf16.mxu0 %v6651_v36  ;;  %v6618_v13 = vld [vmem:[%s10511_s5 + $0x164] ss:$8 sps:$4 sm:$0xff]   ;;  %v6616_v36 = vld [vmem:[%s10511_s5 + $0x160] ss:$8 sps:$4 sm:$0xff]   ;;  %vm10744_vm14 = vcmask 195584  }
 0x438   : > { %v4038_v0 = vmax.f32 %v3980_v30, %v4014_v11  ;;  %v3966_v63 = vpop.f32.mrb[24].mxu1  ;;  %v6664_v11 = vld [vmem:[%s10513_s7 + $0x60] ss:$8 sps:$4 sm:$0xff]  }
 0x439   : > { %v4016_v4 = vsel %vm624_vm1, %v4013_v29, %v4015_v14  ;;  %v3967_v54 = vadd.f32 %v9978_v17, %v3966_v63  ;;  %v3968_v58 = vpop.f32.mrb[25].mxu1  ;;  %v6661_v29 = vld [vmem:[%s10513_s7 + $0x50] ss:$8 sps:$4 sm:$0xff]   ;;  %v6672_v63 = vld [vmem:[%s10513_s7 + $0x84] ss:$8 sps:$4 sm:$0xff]  }
 0x43a   : > { %v4063_v22 = vrot.slane %v4038_v0, 2  ;;  %v4039_v47 = vmax.f32 %v3981_v10, %v4016_v4  ;;  %v3969_v46 = vpop.f32.mrb[26].mxu1  ;;  %v6655_v10 = vld [vmem:[%s10513_s7 + $0x30] ss:$8 sps:$4 sm:$0xff]   ;;  %v6676_v58 = vld [vmem:[%s10513_s7 + $0xa0] ss:$8 sps:$4 sm:$0xff]  }
 0x43b   : > { %v3983_v61 = vmax.f32 %v3967_v54, 0.0  ;;  %v3970_v53 = vpop.f32.mrb[27].mxu1  ;;  %v6673_v4 = vld [vmem:[%s10513_s7 + $0x90] ss:$8 sps:$4 sm:$0xff]   ;;  %v6678_v54 = vld [vmem:[%s10513_s7 + $0xa4] ss:$8 sps:$4 sm:$0xff]  }
 0x43c   : > { %v4064_v57 = vsel %vm427_vm0, %v4061_v50, %v4063_v22  ;;  %v4065_v42 = vrot.slane %v4039_v47, 2  ;;  %v6679_v47 = vld [vmem:[%s10513_s7 + $0xb0] ss:$8 sps:$4 sm:$0xff]   ;;  %v6684_v46 = vld [vmem:[%s10513_s7 + $0xc4] ss:$8 sps:$4 sm:$0xff]  }
 0x43d   : > { %v4082_v35 = vmax.f32 %v4036_v1, %v4064_v57  ;;  %v4017_v27 = vrot.slane %v3983_v61, 1  ;;  %v6682_v61 = vld [vmem:[%s10513_s7 + $0xc0] ss:$8 sps:$4 sm:$0xff]   ;;  %v6687_v53 = vld [vmem:[%s10513_s7 + $0xd4] ss:$8 sps:$4 sm:$0xff]  }
 0x43e   : > { %v4066_v31 = vsel %vm427_vm0, %v4063_v22, %v4065_v42  ;;  %v6681_v22 = vld [vmem:[%s10513_s7 + $0xb4] ss:$8 sps:$4 sm:$0xff]  }
 0x43f   : > { %v4113_v51 = vrot.slane %v4082_v35, 6  ;;  %v4083_v7 = vmax.f32 %v4037_v52, %v4066_v31  ;;  %v4018_v17 = vsel %vm624_vm1, %v4015_v14, %v4017_v27  ;;  %v6669_v14 = vld [vmem:[%s10513_s7 + $0x74] ss:$8 sps:$4 sm:$0xff]   ;;  %v6685_v27 = vld [vmem:[%s10513_s7 + $0xd0] ss:$8 sps:$4 sm:$0xff]  }
 0x440   : > { %v4040_v56 = vmax.f32 %v3982_v5, %v4018_v17  ;;  %v6666_v5 = vld [vmem:[%s10513_s7 + $0x64] ss:$8 sps:$4 sm:$0xff]  }
 0x441   : > { %v4134_v40 = vsel %vm10731_vm9, %v4133_v15, %v4113_v51  ;;  %v4116_v6 = vrot.slane %v4083_v7, 3  ;;  %v6690_v7 = vld [vmem:[%s10513_s7 + $0xe4] ss:$8 sps:$4 sm:$0xff]  }
 0x442   : > { %v4067_v21 = vrot.slane %v4040_v56, 2 }
 0x443   : > { %v4135_v3 = vsel %vm445_vm3, %v4134_v40, %v4116_v6 }
 0x444   : > { %v4068_v12 = vsel %vm427_vm0, %v4065_v42, %v4067_v21  ;;  %v4152_v42 = vrot.slane %v10126_v8, 4  ;;  %v6688_v21 = vld [vmem:[%s10513_s7 + $0xe0] ss:$8 sps:$4 sm:$0xff]  }
 0x445   : > { %v4084_v49 = vmax.f32 %v4038_v0, %v4068_v12  ;;  %v6667_v0 = vld [vmem:[%s10513_s7 + $0x70] ss:$8 sps:$4 sm:$0xff]  }
 0x447   : > { %v4119_v20 = vrot.slane %v4084_v49, 4  ;;  %v4121_v55 = vrot.slane %v4084_v49, 5  ;;  %v4123_v33 = vrot.slane %v4084_v49, 6  ;;  %v6693_v49 = vld [vmem:[%s10513_s7 + $0xf4] ss:$8 sps:$4 sm:$0xff]  }
 0x449   : > { %v4136_v34 = vsel %vm1132_vm2, %v4135_v3, %v4119_v20 }
 0x44a   : > { %v4137_v30 = vsel %vm427_vm0, %v4136_v34, %v4121_v55  ;;  %vm10738_vm0 = vmmov %vm10724_vm11  ;;  %v6598_v34 = vld [vmem:[%s10511_s5 + $0x100] ss:$8 sps:$4 sm:$0xff]   ;;  %vm10745_vm11 = vcmask 228352  }
 0x44b   : > { %v10161_v43 = vsel %vm624_vm1, %v4137_v30, %v4123_v33  ;;  %vm10739_vm1 = vmmov %vm10738_vm0  ;;  %v6603_v30 = vld [vmem:[%s10511_s5 + $0x114] ss:$8 sps:$4 sm:$0xff]  }
 0x44c   : > { %v4171_v60 = vrot.slane %v10161_v43, 2  ;;  %v4185_v1 = vrot.slane %v10161_v43, 6  ;;  %v4167_v18 = vrot.slane %v10161_v43, 1  ;;  %v4181_v52 = vrot.slane %v10161_v43, 5  ;;  %vm10740_vm2 = vmmov %vm10738_vm0 }
 0x44d   : > { %v4175_v16 = vrot.slane %v10161_v43, 3  ;;  %v4189_v38 = vrot.slane %v10161_v43, 7  ;;  %vm10741_vm3 = vmmov %vm10738_vm0 }
 0x44e   : > { %v6528_v39 = vpack.i.bf16 %v4171_v60, %v4185_v1  ;;  %v6523_v50 = vpack.i.bf16 %v4167_v18, %v4181_v52  ;;  %v6691_v60 = vld [vmem:[%s10513_s7 + $0xf0] ss:$8 sps:$4 sm:$0xff]   ;;  %v6606_v18 = vld [vmem:[%s10511_s5 + $0x124] ss:$8 sps:$4 sm:$0xff]   ;;  %v6604_v52 = vld [vmem:[%s10511_s5 + $0x120] ss:$8 sps:$4 sm:$0xff]  }
 0x44f   : > { %v6533_v32 = vpack.i.bf16 %v4175_v16, %v4189_v38  ;;  %v6601_v1 = vld [vmem:[%s10511_s5 + $0x110] ss:$8 sps:$4 sm:$0xff]   ;;  %v6612_v16 = vld [vmem:[%s10511_s5 + $0x144] ss:$8 sps:$4 sm:$0xff]   ;;  %v6610_v38 = vld [vmem:[%s10511_s5 + $0x140] ss:$8 sps:$4 sm:$0xff]  }
 0x450   : > { %6529 = vrot.lane.b32.xlu1 %v6528_v39, %s10728_s0  ;;  %6524 = vrot.lane.b32.xlu0 %v6523_v50, %s10582_s22  ;;  %v6609_v39 = vld [vmem:[%s10511_s5 + $0x134] ss:$8 sps:$4 sm:$0xff]   ;;  %v6607_v50 = vld [vmem:[%s10511_s5 + $0x130] ss:$8 sps:$4 sm:$0xff]   ;;  %vm10746_vm12 = vmmov %vm10738_vm0  ;;  %s379_s22 = scalar_lea.vmem [#allocation2], %s378_s15 }
 0x451   : > { %s5123_s14 = sshll.u32 %s379_s22, 4  ;;  %s10466_s14 = int_to_ptr.vmem [resolvable:$true] %s5123_s14 }
 0x454   : > { %6534 = vrot.lane.b32.xlu0 %v6533_v32, %s10729_s16  ;;  %777 = vrot.lane.b32.xlu1 %v699_v26, %s10732_s30  ;;  %s10735_s30 = smov 16   ;;  %v6654_v26 = vld [vmem:[%s10513_s7 + $0x24] ss:$8 sps:$4 sm:$0xff]   ;;  %v6615_v32 = vld [vmem:[%s10511_s5 + $0x154] ss:$8 sps:$4 sm:$0xff]  }
 0x458   : > { %970 = vrot.lane.b32.xlu0 %v8760_v59, %s10733_s13  ;;  %1090 = vrot.lane.b32.xlu1 %v10674_v28, %s10734_s12  ;;  %v6649_v59 = vld [vmem:[%s10513_s7 + $0x10] ss:$8 sps:$4 sm:$0xff]   ;;  %s10736_s13 = smov 20   ;;  %v6652_v28 = vld [vmem:[%s10513_s7 + $0x20] ss:$8 sps:$4 sm:$0xff]   ;;  %s6715_s12 = scalar_lea.vmem %s10466_s14, 16 }
 0x459   : > { %4898 = vmatpush1.bf16.msra.mxu0 %v6649_v59  ;;  %v6621_v59 = vld [vmem:[%s10511_s5 + $0x174] ss:$8 sps:$4 sm:$0xff]   ;;  %p6716_p11 = scmp.ne.s32.totalorder %s10466_s14, %s6715_s12 }
 0x45a   : > { %4899 = vmatprep.subr.bf16.mxu0 %v6654_v26  ;;  %v6619_v26 = vld [vmem:[%s10511_s5 + $0x170] ss:$8 sps:$4 sm:$0xff]  }
 0x45b   : > { %p6717_p12 = pnand %p6716_p11, %p6894_p5 }
 0x45c   : > { %1288 = vrot.lane.b32.xlu0 %v10675_v48, %s10735_s30  ;;  %1485 = vrot.lane.b32.xlu1 %v10672_v2, %s10736_s13  ;;  %v6657_v48 = vld [vmem:[%s10513_s7 + $0x34] ss:$8 sps:$4 sm:$0xff]   ;;  %s5111_s13 = scalar_lea.sflag [#allocation3], %s378_s15 }
 0x45d   : > { %4900 = vmatpush1.bf16.msra.mxu0 %v6652_v28  ;;  %v6624_v28 = vld [vmem:[%s10511_s5 + $0x184] ss:$8 sps:$4 sm:$0xff]   ;;  %p6718_p13 = pneg %p6717_p12 }
 0x45e   : > { %4901 = vmatprep.subr.bf16.mxu0 %v6657_v48  ;;  %v6622_v48 = vld [vmem:[%s10511_s5 + $0x180] ss:$8 sps:$4 sm:$0xff]  }
 0x460   : > { %1603 = vrot.lane.b32.xlu0 %v10672_v2, %s10737_s25  ;;  %v6658_v2 = vld [vmem:[%s10513_s7 + $0x40] ss:$8 sps:$4 sm:$0xff]   ;;  %s5338_s25 = sshll.u32 %s6877_s21, 4  ;;  %s6795_s21 = smov [#allocation2]  }
 0x461   : > { %4902 = vmatpush1.bf16.msra.mxu0 %v6655_v10  ;;  %v6627_v10 = vld [vmem:[%s10511_s5 + $0x194] ss:$8 sps:$4 sm:$0xff]   ;;  %s10464_s30 = scalar_lea.hbm %s10517_s11, %s5338_s25  ;;  %s6719_s24 = sshll.u32 %s6795_s21, 4  ;;  %s6720_s24 = int_to_ptr.vmem [resolvable:$false] %s6719_s24 }
 0x462   : > { %4903 = vmatprep.subr.bf16.mxu0 %v6660_v44  ;;  %v6625_v44 = vld [vmem:[%s10511_s5 + $0x190] ss:$8 sps:$4 sm:$0xff]   ;;  %s6721_s29 = scalar_lea.vmem %s6720_s24, 32  ;;  %p6722_p0 = scmp.lt.s32.totalorder %s10466_s14, %s6720_s24 }
 0x463   : > { %p6723_p1 = scmp.lt.s32.totalorder %s6721_s29, %s6715_s12 }
 0x465   : > { %4904 = vmatpush1.bf16.msra.mxu0 %v6658_v2  ;;  %v6630_v2 = vld [vmem:[%s10511_s5 + $0x1a4] ss:$8 sps:$4 sm:$0xff]   ;;  %p6724_p2 = por %p6723_p1, %p6722_p0 }
 0x466   : > { %4905 = vmatprep.subr.bf16.mxu0 %v6663_v45  ;;  %v6628_v45 = vld [vmem:[%s10511_s5 + $0x1a0] ss:$8 sps:$4 sm:$0xff]  }
 0x467   : > { %p6725_p3 = pnand %p6724_p2, %p6718_p13 }
 0x469   : > { %4906 = vmatpush1.bf16.msra.mxu0 %v6661_v29  ;;  %v6633_v29 = vld [vmem:[%s10511_s5 + $0x1b4] ss:$8 sps:$4 sm:$0xff]  }
 0x46a   : > { %4907 = vmatprep.subr.bf16.mxu0 %v6666_v5  ;;  %v6631_v5 = vld [vmem:[%s10511_s5 + $0x1b0] ss:$8 sps:$4 sm:$0xff]  }
 0x46d   : > { %4908 = vmatpush1.bf16.msra.mxu0 %v6664_v11  ;;  %v6636_v11 = vld [vmem:[%s10511_s5 + $0x1c4] ss:$8 sps:$4 sm:$0xff]  }
 0x46e   : > { %4909 = vmatprep.subr.bf16.mxu0 %v6669_v14 }
 0x471   : > { %4910 = vmatpush1.bf16.msra.mxu0 %v6667_v0 }
 0x472   : > { %4911 = vmatprep.subr.bf16.mxu0 %v6672_v63  ;;  %v6634_v63 = vld [vmem:[%s10511_s5 + $0x1c0] ss:$8 sps:$4 sm:$0xff]  }
 0x475   : > { %4912 = vmatpush1.bf16.msra.mxu0 %v6670_v62  ;;  %v4179_v62 = vrot.slane %v10161_v43, 4 }
 0x476   : > { %4913 = vmatprep.subr.bf16.mxu0 %v6675_v25 }
 0x479   : > { %4914 = vmatpush1.bf16.msra.mxu0 %v6673_v4  ;;  %v6639_v4 = vld [vmem:[%s10511_s5 + $0x1d4] ss:$8 sps:$4 sm:$0xff]  }
 0x47a   : > { %4915 = vmatprep.subr.bf16.mxu0 %v6678_v54 }
 0x47d   : > { %4916 = vmatpush1.bf16.msra.mxu0 %v6676_v58 }
 0x47e   : > { %4917 = vmatprep.subr.bf16.mxu0 %v6681_v22 }
 0x481   : > { %4918 = vmatpush1.bf16.msra.mxu0 %v6679_v47  ;;  %v6637_v47 = vld [vmem:[%s10511_s5 + $0x1d0] ss:$8 sps:$4 sm:$0xff]  }
 0x482   : > { %4919 = vmatprep.subr.bf16.mxu0 %v6684_v46 }
 0x485   : > { %4920 = vmatpush1.bf16.msra.mxu0 %v6682_v61 }
 0x486   : > { %4921 = vmatprep.subr.bf16.mxu0 %v6687_v53  ;;  %v6642_v53 = vld [vmem:[%s10511_s5 + $0x1e4] ss:$8 sps:$4 sm:$0xff]  }
 0x489   : > { %4922 = vmatpush1.bf16.msra.mxu0 %v6685_v27  ;;  %v6640_v27 = vld [vmem:[%s10511_s5 + $0x1e0] ss:$8 sps:$4 sm:$0xff]  }
 0x48a   : > { %v6510_v19 = vpop.permute.xlu1 %6509  ;;  %v6515_v57 = vpop.permute.xlu0 %6514  ;;  %4923 = vmatprep.subr.bf16.mxu0 %v6690_v7 }
 0x48b   : > { %v6512_v23 = vunpack.i.h.bf16 %v6510_v19  ;;  %v6511_v35 = vunpack.i.l.bf16 %v6510_v19  ;;  %v6517_v31 = vunpack.i.h.bf16 %v6515_v57  ;;  %v6516_v51 = vunpack.i.l.bf16 %v6515_v57 }
 0x48d   : > { %v4193_v17 = vsel %vm10738_vm0, %v10126_v8, %v6512_v23  ;;  %v4196_v15 = vsel %vm10739_vm1, %v4152_v42, %v6511_v35  ;;  %4924 = vmatpush1.bf16.msra.mxu0 %v6688_v21  ;;  %v6643_v21 = vld [vmem:[%s10511_s5 + $0x1f0] ss:$8 sps:$4 sm:$0xff]  }
 0x48e   : > { %v6520_v56 = vpop.permute.xlu1 %6519  ;;  %v4194_v3 = vsel %vm3734_vm5, %v4193_v17, %v6517_v31  ;;  %v4197_v12 = vsel %vm3734_vm5, %v4196_v15, %v6516_v51  ;;  %4925 = vmatprep.subr.bf16.mxu0 %v6693_v49 }
 0x48f   : > { %v6522_v40 = vunpack.i.h.bf16 %v6520_v56  ;;  %v6521_v6 = vunpack.i.l.bf16 %v6520_v56 }
 0x491   : > { %v4195_v8 = vsel %vm3762_vm13, %v4194_v3, %v6522_v40  ;;  %v4198_v20 = vsel %vm3762_vm13, %v4197_v12, %v6521_v6  ;;  %4926 = vmatpush1.bf16.msra.mxu0 %v6691_v60 }
 0x492   : > { %v4205_v55 = vpack.c.bf16 %v4195_v8, %v4195_v8  ;;  %v4206_v33 = vpack.c.bf16 %v4198_v20, %v4198_v20 }
 0x494   : > { %4637 = vmatprep.mubr.bf16.mxu1 %v4206_v33 }
 0x495   : > { %4638 = vmatmul.mubr.bf16.vlgmr.msra.gmra.mrb[28].mxu1 %v4205_v55 }
 0x496   : > { %4647 = vmatpush1.bf16.msra.mxu1 %v6598_v34 }
 0x497   : > { %4648 = vmatprep.subr.bf16.mxu1 %v6603_v30 }
 0x49a   : > { %4649 = vmatpush1.bf16.msra.mxu1 %v6601_v1  ;;  %v6694_v1 = vld [vmem:[%s10515_s9 + $0x40] sm:$0xff]  }
 0x49b   : > { %4650 = vmatprep.subr.bf16.mxu1 %v6606_v18  ;;  %v6695_v18 = vld [vmem:[%s10515_s9] sm:$0xff]  }
 0x49e   : > { %4651 = vmatpush1.bf16.msra.mxu1 %v6604_v52  ;;  %v6696_v52 = vld [vmem:[%s10515_s9 + $0x48] sm:$0xff]  }
 0x49f   : > { %4652 = vmatprep.subr.bf16.mxu1 %v6609_v39  ;;  %v6699_v39 = vld [vmem:[%s10515_s9 + $0x10] sm:$0xff]  }
 0x4a2   : > { %4653 = vmatpush1.bf16.msra.mxu1 %v6607_v50  ;;  %v6700_v50 = vld [vmem:[%s10515_s9 + $0x58] sm:$0xff]  }
 0x4a3   : > { %4654 = vmatprep.subr.bf16.mxu1 %v6612_v16  ;;  %v6701_v16 = vld [vmem:[%s10515_s9 + $0x18] sm:$0xff]  }
 0x4a6   : > { %4655 = vmatpush1.bf16.msra.mxu1 %v6610_v38  ;;  %v6702_v38 = vld [vmem:[%s10515_s9 + $0x60] sm:$0xff]  }
 0x4a7   : > { %4656 = vmatprep.subr.bf16.mxu1 %v6615_v32  ;;  %v6703_v32 = vld [vmem:[%s10515_s9 + $0x20] sm:$0xff]  }
 0x4aa   : > { %4657 = vmatpush1.bf16.msra.mxu1 %v6613_v37  ;;  %v6704_v37 = vld [vmem:[%s10515_s9 + $0x68] sm:$0xff]  }
 0x4ab   : > { %4658 = vmatprep.subr.bf16.mxu1 %v6618_v13  ;;  %v6705_v13 = vld [vmem:[%s10515_s9 + $0x28] sm:$0xff]  }
 0x4ae   : > { %4659 = vmatpush1.bf16.msra.mxu1 %v6616_v36  ;;  %v4595_v36 = vlaneseq }
 0x4af   : > { %4660 = vmatprep.subr.bf16.mxu1 %v6621_v59 }
 0x4b0   : > { %v4596_v59 = vshrl.u32 %v4595_v36, 7 }
 0x4b2   : > { %4661 = vmatpush1.bf16.msra.mxu1 %v6619_v26  ;;  %v4597_v26 = vsub.s32 0, %v4596_v59 }
 0x4b3   : > { %4662 = vmatprep.subr.bf16.mxu1 %v6624_v28  ;;  %v4273_v28 = vld [vmem:[%s10512_s6] sm:$0x3] }
 0x4b6   : > { %4663 = vmatpush1.bf16.msra.mxu1 %v6622_v48  ;;  %v4601_v48 = vsub.s32 1, %v4596_v59 }
 0x4b7   : > { %4664 = vmatprep.subr.bf16.mxu1 %v6627_v10  ;;  %v4598_v10 = vrot.slane %v4273_v28, %v4597_v26 }
 0x4ba   : > { %4665 = vmatpush1.bf16.msra.mxu1 %v6625_v44  ;;  %v4602_v44 = vrot.slane %v4273_v28, %v4601_v48 }
 0x4bb   : > { %4666 = vmatprep.subr.bf16.mxu1 %v6630_v2 }
 0x4be   : > { %4667 = vmatpush1.bf16.msra.mxu1 %v6628_v45 }
 0x4bf   : > { %4668 = vmatprep.subr.bf16.mxu1 %v6633_v29 }
 0x4c2   : > { %4669 = vmatpush1.bf16.msra.mxu1 %v6631_v5  ;;  %v6530_v14 = vpop.permute.xlu1 %6529  ;;  %v6525_v0 = vpop.permute.xlu0 %6524 }
 0x4c3   : > { %v6526_v25 = vunpack.i.l.bf16 %v6525_v0  ;;  %4670 = vmatprep.subr.bf16.mxu1 %v6636_v11  ;;  %v6531_v54 = vunpack.i.l.bf16 %v6530_v14  ;;  %v6527_v19 = vunpack.i.h.bf16 %v6525_v0  ;;  %v6532_v7 = vunpack.i.h.bf16 %v6530_v14 }
 0x4c5   : > { %v4202_v58 = vsel %vm10740_vm2, %v4179_v62, %v6526_v25  ;;  %v4199_v15 = vsel %vm10741_vm3, %v10161_v43, %v6527_v19  ;;  %v4723_v19 = vld [vmem:[%s10514_s8] sm:$0x3] }
 0x4c6   : > { %4671 = vmatpush1.bf16.msra.mxu1 %v6634_v63  ;;  %v6535_v22 = vpop.permute.xlu0 %6534  ;;  %v778_v46 = vpop.permute.xlu1 %777  ;;  %v4203_v42 = vsel %vm3734_vm5, %v4202_v58, %v6531_v54  ;;  %v4200_v12 = vsel %vm3734_vm5, %v4199_v15, %v6532_v7  ;;  %vm10747_vm5 = vcmask 293888  }
 0x4c7   : > { %v6536_v61 = vunpack.i.l.bf16 %v6535_v22  ;;  %4672 = vmatprep.subr.bf16.mxu1 %v6639_v4  ;;  %v2064_v57 = vsel %vm2025_vm7, %v8681_v24, %v778_v46  ;;  %v6645_v24 = vld [vmem:[%s10511_s5 + $0x1f4] ss:$8 sps:$4 sm:$0xff]   ;;  %v6537_v56 = vunpack.i.h.bf16 %v6535_v22  ;;  %vm10742_vm7 = vcmask 97280  }
 0x4c8   : > { %v6707_v46 = vld [vmem:[%s10515_s9 + $0x30] sm:$0xff]  }
 0x4c9   : > { %v4204_v23 = vsel %vm3762_vm13, %v4203_v42, %v6536_v61  ;;  %v4201_v8 = vsel %vm3762_vm13, %v4200_v12, %v6537_v56  ;;  %v6708_v61 = vld [vmem:[%s10515_s9 + $0x78] sm:$0xff]   ;;  %v4892_v42 = vrot.slane %v4723_v19, %v4601_v48 }
 0x4ca   : > { %4673 = vmatpush1.bf16.msra.mxu1 %v6637_v47  ;;  %v971_v35 = vpop.permute.xlu0 %970  ;;  %v4208_v31 = vpack.c.bf16 %v4204_v23, %v4204_v23  ;;  %v1091_v51 = vpop.permute.xlu1 %1090  ;;  %v4207_v55 = vpack.c.bf16 %v4201_v8, %v4201_v8  ;;  %v6706_v47 = vld [vmem:[%s10515_s9 + $0x70] sm:$0xff]  }
 0x4cb   : > { %v2104_v17 = vsel %vm2065_vm8, %v2064_v57, %v971_v35  ;;  %4674 = vmatprep.subr.bf16.mxu1 %v6642_v53  ;;  %vm10743_vm8 = vcmask 162816   ;;  %v6709_v53 = vld [vmem:[%s10515_s9 + $0x38] sm:$0xff]   ;;  %v4888_v57 = vrot.slane %v4723_v19, %v4597_v26 }
 0x4cc   : > { %4678 = vmatprep.mubr.bf16.mxu1 %v4208_v31  ;;  %v2146_v40 = vsel %vm10742_vm7, %v2104_v17, %v1091_v51 }
 0x4ce   : > { %4675 = vmatpush1.bf16.msra.mxu1 %v6640_v27  ;;  %v1289_v6 = vpop.permute.xlu0 %1288  ;;  %v1486_v3 = vpop.permute.xlu1 %1485 }
 0x4cf   : > { %v2188_v49 = vsel %vm2147_vm10, %v2146_v40, %v1289_v6  ;;  %4676 = vmatprep.subr.bf16.mxu1 %v6645_v24  ;;  %v4972_v6 = vld [vmem:[%s10516_s10] sm:$0x1] }
 0x4d0   : > { %v2230_v43 = vsel %vm10743_vm8, %v2188_v49, %v1486_v3 }
 0x4d2   : > { %4677 = vmatpush1.bf16.msra.mxu1 %v6643_v21  ;;  %v1604_v20 = vpop.permute.xlu0 %1603 }
 0x4d3   : > { %v2272_v33 = vsel %vm10744_vm14, %v2230_v43, %v1604_v20  ;;  %5365 = vmatprep.subr.bf16.mxu1 %v6694_v1 }
 0x4d4   : > { %v2314_v34 = vsel %vm10745_vm11, %v2272_v33, %v9087_v41  ;;  %v6697_v41 = vld [vmem:[%s10515_s9 + $0x8] sm:$0xff]  }
 0x4d5   : > { %v2356_v30 = vsel %vm10746_vm12, %v2314_v34, %v9089_v9  ;;  %4679 = vmatmul.mubr.bf16.vlgmr.msra.gmra.mrb[28].mxu1 %v4207_v55  ;;  %v6698_v9 = vld [vmem:[%s10515_s9 + $0x50] sm:$0xff]  }
 0x4d6   : > { %v2377_v60 = vpack.c.bf16 %v2356_v30, %v2356_v30  ;;  %5366 = vmatpush3.bf16.msra.mxu1 %v6695_v18 }
 0x4d7   : > { %5367 = vmatprep.subr.bf16.mxu1 %v6696_v52 }
 0x4d8   : > { %5474 = vmatmul.mubr.msk.bf16.gmra.mrb[80].mxu0 %vm10747_vm5, %v2377_v60 }
 0x4da   : > { %5368 = vmatpush3.bf16.msra.mxu1 %v6697_v41 }
 0x4db   : > { %5369 = vmatprep.subr.bf16.mxu1 %v6698_v9 }
 0x4de   : > { %5370 = vmatpush3.bf16.msra.mxu1 %v6699_v39 }
 0x4df   : > { %5371 = vmatprep.subr.bf16.mxu1 %v6700_v50 }
 0x4e2   : > { %5372 = vmatpush3.bf16.msra.mxu1 %v6701_v16 }
 0x4e3   : > { %5373 = vmatprep.subr.bf16.mxu1 %v6702_v38 }
 0x4e6   : > { %5374 = vmatpush3.bf16.msra.mxu1 %v6703_v32 }
 0x4e7   : > { %5375 = vmatprep.subr.bf16.mxu1 %v6704_v37 }
 0x4ea   : > { %5376 = vmatpush3.bf16.msra.mxu1 %v6705_v13 }
 0x4eb   : > { %5377 = vmatprep.subr.bf16.mxu1 %v6706_v47 }
 0x4ee   : > { %5378 = vmatpush3.bf16.msra.mxu1 %v6707_v46 }
 0x4ef   : > { %5379 = vmatprep.subr.bf16.mxu1 %v6708_v61 }
 0x4f2   : > { %5380 = vmatpush3.bf16.msra.mxu1 %v6709_v53 }
 0x5a8   : > { %v4680_v2 = vpop.f32.mrb[28].mxu1 }
 0x5a9   : > { %v5477_v45 = vadd.f32 %v4680_v2, %v4598_v10  ;;  %v4682_v29 = vpop.f32.mrb[29].mxu1 }
 0x5aa   : > { %v5478_v5 = vadd.f32 %v4682_v29, %v4602_v44  ;;  %v4684_v11 = vpop.f32.mrb[30].mxu1 }
 0x5ab   : > { %v4687_v14 = vmax.f32 %v5477_v45, 0.0  ;;  %v4685_v0 = vpop.f32.mrb[31].mxu1  ;;  %v2658_v63 = vpop.f32.mrb[80].mxu0 }
 0x5ac   : > { %v4688_v62 = vmax.f32 %v5478_v5, 0.0  ;;  %v5475_v25 = vpop.f32.mrb[81].mxu0 }
 0x5ad   : > { %v2660_v4 = vpop.f32.mrb[82].mxu0  ;;  %v4689_v22 = vpack.c.bf16 %v4687_v14, %v4687_v14 }
 0x5ae   : > { %v4690_v54 = vpack.c.bf16 %v4688_v62, %v4688_v62  ;;  %v5476_v58 = vpop.f32.mrb[83].mxu0 }
 0x5b0   : > { %4927 = vmatprep.mubr.bf16.mxu0 %v4690_v54 }
 0x5b1   : > { %4928 = vmatmul.mubr.bf16.vlgmr.msra.gmra.mrb[84].mxu0 %v4689_v22 }
 0x684   : > { %v4929_v23 = vpop.f32.mrb[84].mxu0 }
 0x685   : > { %v4930_v35 = vadd.f32 %v4929_v23, %v4888_v57  ;;  %v4931_v27 = vpop.f32.mrb[85].mxu0 }
 0x686   : > { %v4932_v31 = vadd.f32 %v4931_v27, %v4892_v42  ;;  %v4933_v51 = vpop.f32.mrb[86].mxu0 }
 0x687   : > { %v4936_v7 = vmax.f32 %v4930_v35, 0.0  ;;  %v4934_v17 = vpop.f32.mrb[87].mxu0 }
 0x688   : > { %v4937_v24 = vmax.f32 %v4932_v31, 0.0 }
 0x689   : > { %v4938_v56 = vpack.c.bf16 %v4936_v7, %v4936_v7 }
 0x68a   : > { %v4939_v15 = vpack.c.bf16 %v4937_v24, %v4937_v24 }
 0x68c   : > { %5101 = vmatprep.mubr.bf16.mxu1 %v4939_v15 }
 0x68d   : > { %5102 = vmatmul.mubr.bf16.vlgmr.msra.gmra.mrb[32].mxu1 %v4938_v56 }
 0x760   : > { %v5381_v40 = vpop.f32.mrb[32].mxu1 }
 0x761   : > { %v5382_v21 = vpop.f32.mrb[33].mxu1 }
 0x762   : > { %v5383_v3 = vadd.f32 %v5382_v21, %v5381_v40  ;;  %v5384_v12 = vpop.f32.mrb[34].mxu1 }
 0x763   : > { %v5385_v49 = vpop.f32.mrb[35].mxu1 }
 0x764   : > { %v5104_v8 = vadd.f32 %v5383_v3, %v4972_v6 }
 0x766   : > { %5109 = vst [vmem:[%s379_s22] sm:$0x1] %v5104_v8 }
 0x767   : > { %6728 = shalt.err (!%p6725_p3)
}
 0x768   : > { %s6729_s15 = scalar_lea.hbm %s10464_s30, 16  ;;  %s6733_s0 = scalar_lea.hbm %s10517_s11, 32 }
 0x769   : > { %p6730_p4 = scmp.ne.s32.totalorder %s10464_s30, %s6729_s15  ;;  %p6734_p9 = scmp.lt.u32.totalorder %s10464_s30, %s10517_s11 }
 0x76a   : > { %p6735_p10 = scmp.lt.u32.totalorder %s6733_s0, %s6729_s15  ;;  %p6737_p12 = scmp.lt.u32.totalorder %s6729_s15, %s10464_s30 }
 0x76b   : > { %p6731_p7 = pnand %p6730_p4, %p6894_p5 }
 0x76c   : > { %p6736_p11 = por %p6735_p10, %p6734_p9 }
 0x76d   : > { %p6732_p8 = pneg %p6731_p7 }
 0x76e   : > { %p6738_p13 = por %p6737_p12, %p6736_p11 }
 0x770   : > { %p6739_p0 = pnand %p6738_p13, %p6732_p8 }
 0x772   : > { %6742 = shalt.err (!%p6739_p0)
}
 0x773   : > { %5483 = dma.vmem_to_hbm [thread:$0]  (%p6894_p5), %s10466_s14, 16, %s10464_s30, %s5111_s13  }
 0x774 PF: > { %p5489_p1 = scmp.ge.s32.totalorder %s6777_s20, 2  ;;  %s5135_s12 = sand.u32 1, %s6765_s17  }
 0x775   : > { %s5136_s24 = scalar_lea.sflag [#allocation3], %s5135_s12 }
 0x776   : > { %p5486_p2 = pnand %p5489_p1, %p6898_p6 }
 0x778   : > { %6760 = dma.done.wait (!%p5486_p2), %s5136_s24, 16  }
 0x779   : > { %6762 = vsyncadd (!%p5486_p2), %s5136_s24, 4294967280  ;;  %p21_p3 = scmp.ge.s32.totalorder %s6881_s23, 4   ;;  %s10748_s17 = smov %s6769_s18 }
 0x77a   : > { %s10749_s18 = smov %s6773_s19  ;;  %s10750_s19 = smov %s6892_s26 }
 0x77b   : > { %s10751_s20 = smov %s6881_s23  ;;  %23 = sbr.rel (!%p21_p3) target bundleno = 5 (0x5), region = 99 }
 0x782   :  { %5140 = vsyncpa [#allocation3], 1 }
 0x783   :  { %5142 = vsyncpa [#allocation3 + $0x1], 1 }

</bundles_post_ra>
